<compile_context>
chip_gen: v7x
topology: tpu7x:2x2x1
jax: 0.10.0
libtpu: 0.0.40
codegen_flags: <defaults>
</compile_context>

<pallas_src>
import functools

import jax
import jax.numpy as jnp
from jax.experimental import pallas as pl
from jax.experimental.pallas import tpu as pltpu


def _san_kernel(img_ref, ques_ref,
                w_img_ref, w_q_ref, b_q_ref, w13_ref,
                wq_ref, bq_ref, wh_ref,
                out_ref, *, num_stacks, matmul_dtype):
    """One batch tile (TB rows) per grid step; all hops computed in-kernel."""
    tb, L, Fi = img_ref.shape
    att_p = w13_ref.shape[-1]
    S = num_stacks - 1
    cdt = matmul_dtype

    # Flatten regions into MXU rows; cast only the dot operands to bf16.
    img = img_ref[...].reshape(tb * L, Fi).astype(cdt)        # (TB*L, Fi)
    ques = ques_ref[...].astype(cdt)                          # (TB, Fq)

    # ---- ONE wide matmul for every image-side projection: [fc12 | fc15 | fc_i[s]...]
    img_proj = jnp.dot(img, w_img_ref[...],
                       preferred_element_type=jnp.float32)     # (TB*L, (2+S)*att_p)
    img_proj = img_proj.reshape(tb, L, (2 + S) * att_p)
    img_emb = img_proj[:, :, 0:att_p]                          # fc12(img)
    img_emb_1 = img_proj[:, :, att_p:2 * att_p]                # fc15(img)

    # ---- ONE matmul for both question-side projections: [fc11 | fc14]
    q_proj = jnp.dot(ques, w_q_ref[...],
                     preferred_element_type=jnp.float32) + b_q_ref[...]   # (TB, 2*att_p)
    ques_emb = q_proj[:, 0:att_p]
    ques_emb_1 = q_proj[:, att_p:2 * att_p]

    def lane_softmax(s):                     # s: (TB, L), softmax over regions (lanes)
        m = jnp.max(s, axis=-1, keepdims=True)
        e = jnp.exp(s - m)
        return e * pl.reciprocal(jnp.sum(e, axis=-1, keepdims=True), approx=False)

    def region_scores(h, w_row3):            # h: (TB, L, att_p), w_row3: (1, 1, att_p)
        # Bias (b13/bh) dropped: softmax is invariant to a per-row constant shift.
        return jnp.sum(h * w_row3, axis=-1)  # (TB, L), lane reduce

    def weighted_sum(p, ie):                 # VPU multiply + sublane reduce (no M=1 MXU dots)
        return jnp.sum(ie * p[:, :, None], axis=1)             # (TB, att_p)

    w13_row = w13_ref[...].reshape(1, 1, att_p)                # hoisted broadcast source

    # ---- first attention hop -------------------------------------------------
    h1 = jnp.tanh(img_emb + ques_emb[:, None, :])
    # TODO(synk): dropout(h1) skipped -- inference-mode identity.
    p1 = lane_softmax(region_scores(h1, w13_row))              # (TB, L)
    u = ques_emb_1 + weighted_sum(p1, img_emb_1)               # (TB, att_p), f32

    # ---- remaining stacks (static Python unroll; img projections precomputed) -
    for s in range(S):
        ie = img_proj[:, :, (2 + s) * att_p:(3 + s) * att_p]   # fc_i[s](img), precomputed
        qe = jnp.dot(u.astype(cdt), wq_ref[s],
                     preferred_element_type=jnp.float32) + bq_ref[s]      # (TB, att_p)
        h = jnp.tanh(ie + qe[:, None, :])
        # TODO(synk): dropout(h) skipped -- inference-mode identity.
        p = lane_softmax(region_scores(h, wh_ref[s].reshape(1, 1, att_p)))
        u = u + weighted_sum(p, ie)

    out_ref[...] = u.astype(out_ref.dtype)


def _pick_batch_tile(B, batch_tile):
    if B > batch_tile:
        return batch_tile
    # v7x has 2 TensorCores: give the "parallel" grid axis >= 2 steps when B can
    # be split into equal 8-aligned tiles with no padding.
    if B >= 16 and B % 16 == 0:
        return B // 2
    return B


def stacked_attention_pallas(img_feat, ques_feat, params, num_stacks,
                             batch_tile=128, matmul_dtype=jnp.bfloat16):
    B, L, Fi = img_feat.shape
    _, Fq = ques_feat.shape
    att = params["w11"].shape[1]
    att_p = ((att + 127) // 128) * 128          # lane-dense att (padded to 128 multiple)
    S = num_stacks - 1

    def pad_att(x):
        cfg = [(0, 0)] * (x.ndim - 1) + [(0, att_p - att)]
        return jnp.pad(x, cfg)

    # Fused image-side projection weights: [fc12 | fc15 | fc_i[0] | ... ], bf16.
    img_blocks = [pad_att(params["w12"]), pad_att(params["w15"])]
    for s in range(S):
        img_blocks.append(pad_att(params["wi"][s]))
    w_img_cat = jnp.concatenate(img_blocks, axis=1).astype(matmul_dtype)   # (Fi, (2+S)*att_p)

    # Fused question-side projection weights/bias: [fc11 | fc14].
    w_q_cat = jnp.concatenate([pad_att(params["w11"]), pad_att(params["w14"])],
                              axis=1).astype(matmul_dtype)                 # (Fq, 2*att_p)
    b_q_cat = jnp.concatenate([pad_att(params["b11"]), pad_att(params["b14"])],
                              axis=1)                                      # (1, 2*att_p) f32

    w13_row = pad_att(params["w13"].T)                                     # (1, att_p) f32 (VPU)
    # b13 / bh are NOT passed: softmax is shift-invariant to a per-row constant.

    if S > 0:
        wq = jnp.pad(params["wq"],
                     ((0, 0), (0, att_p - att), (0, att_p - att))).astype(matmul_dtype)
        bq = pad_att(params["bq"])                                         # (S, 1, att_p) f32
        wh_rows = pad_att(jnp.swapaxes(params["wh"], 1, 2))                # (S, 1, att_p) f32
    else:  # dummies, never read (stack loop has zero trip count)
        wq = jnp.zeros((1, att_p, att_p), matmul_dtype)
        bq = jnp.zeros((1, 1, att_p), jnp.float32)
        wh_rows = jnp.zeros((1, 1, att_p), jnp.float32)

    weight_args = [w_img_cat, w_q_cat, b_q_cat, w13_row, wq, bq, wh_rows]

    tb = _pick_batch_tile(B, batch_tile)
    grid = (pl.cdiv(B, tb),)
    # TODO(synk): if B % tb != 0 the padded rows of the final tile flow through
    # exp/reciprocal (garbage, masked off on the output store); valid rows are correct.

    def full_spec(a):
        zeros = (0,) * a.ndim
        return pl.BlockSpec(a.shape, lambda b, _z=zeros: _z)   # resident, never re-DMA'd

    in_specs = [
        pl.BlockSpec((tb, L, Fi), lambda b: (b, 0, 0)),        # img_feat batch tile
        pl.BlockSpec((tb, Fq), lambda b: (b, 0)),              # ques_feat batch tile
    ] + [full_spec(a) for a in weight_args]

    out_spec = pl.BlockSpec((tb, att_p), lambda b: (b, 0))

    kernel = functools.partial(_san_kernel, num_stacks=num_stacks,
                               matmul_dtype=matmul_dtype)

    out_padded = pl.pallas_call(
        kernel,
        grid=grid,
        in_specs=in_specs,
        out_specs=out_spec,
        out_shape=jax.ShapeDtypeStruct((B, att_p), jnp.float32),
        compiler_params=pltpu.CompilerParams(dimension_semantics=("parallel",)),
    )(img_feat, ques_feat, *weight_args)

    return out_padded[:, :att]


def stacked_attention_ref(img_feat, ques_feat, p, num_stacks, matmul_dtype=jnp.float32):
    """Pure-JAX reference mirroring the PyTorch forward (v_mask=False, eval).

    matmul_dtype lets the reference mimic bf16 MXU operands (f32 accumulate) so the
    kernel can be checked tightly; matmul_dtype=float32 reproduces the exact PyTorch math.
    """
    def mm(a, w):
        return jnp.dot(a.astype(matmul_dtype), w.astype(matmul_dtype),
                       preferred_element_type=jnp.float32)

    ques_emb = mm(ques_feat, p["w11"]) + p["b11"]
    img_emb = mm(img_feat, p["w12"])
    h1 = jnp.tanh(ques_emb[:, None, :] + img_emb)
    h1_emb = h1 @ p["w13"] + p["b13"]
    p1 = jax.nn.softmax(h1_emb, axis=1)
    ques_emb_1 = mm(ques_feat, p["w14"]) + p["b14"]
    img_emb_1 = mm(img_feat, p["w15"])
    u = ques_emb_1 + jnp.sum(img_emb_1 * p1, axis=1)
    for s in range(num_stacks - 1):
        qe = mm(u, p["wq"][s]) + p["bq"][s]
        ie = mm(img_feat, p["wi"][s])
        h = jnp.tanh(qe[:, None, :] + ie)
        he = h @ p["wh"][s] + p["bh"][s]
        ps = jax.nn.softmax(he, axis=1)
        u = u + jnp.sum(ie * ps, axis=1)
    return u


def init_params(key, img_feat_size, ques_feat_size, att_size, num_stacks):
    """Deterministic synthetic init (shapes match the PyTorch __init__)."""
    ks = jax.random.split(key, 16)

    def u(k, shape, fan_in):
        bound = 1.0 / jnp.sqrt(jnp.float32(fan_in))
        return jax.random.uniform(k, shape, jnp.float32, -bound, bound)

    S = num_stacks - 1
    params = {
        "w11": u(ks[0], (ques_feat_size, att_size), ques_feat_size),
        "b11": u(ks[1], (1, att_size), ques_feat_size),
        "w12": u(ks[2], (img_feat_size, att_size), img_feat_size),
        "w13": u(ks[3], (att_size, 1), att_size),
        "b13": u(ks[4], (1, 1), att_size),
        "w14": u(ks[5], (ques_feat_size, att_size), ques_feat_size),
        "b14": u(ks[6], (1, att_size), ques_feat_size),
        "w15": u(ks[7], (img_feat_size, att_size), img_feat_size),
        "wq":  u(ks[8], (S, att_size, att_size), att_size),
        "bq":  u(ks[9], (S, 1, att_size), att_size),
        "wi":  u(ks[10], (S, img_feat_size, att_size), img_feat_size),
        "wh":  u(ks[11], (S, att_size, 1), att_size),
        "bh":  u(ks[12], (S, 1, 1), att_size),
    }
    return params


if __name__ == "__main__":
    # Module config: num_stacks=2, img_feat_size=32, ques_feat_size=32,
    # att_size=32, output_size=16 (unused in forward), drop_ratio=0.5 (eval).
    # B=32 so the batch splits into two 8-aligned grid steps (exercises the
    # "parallel" grid axis / v7x two-TensorCore path).
    B, L = 32, 16
    img_feat_size, ques_feat_size, att_size = 32, 32, 32
    num_stacks = 2

    key = jax.random.PRNGKey(0)
    k_img, k_q, k_p = jax.random.split(key, 3)
    img_feat = jax.random.normal(k_img, (B, L, img_feat_size), jnp.float32)
    ques_feat = jax.random.normal(k_q, (B, ques_feat_size), jnp.float32)
    params = init_params(k_p, img_feat_size, ques_feat_size, att_size, num_stacks)

    out = stacked_attention_pallas(img_feat, ques_feat, params, num_stacks)
    out = jax.block_until_ready(out)
    assert out.shape == (B, att_size)

    # Tight check vs a precision-matched reference (bf16 matmul operands, f32 acc).
    ref_bf16 = stacked_attention_ref(img_feat, ques_feat, params, num_stacks,
                                     matmul_dtype=jnp.bfloat16)
    assert jnp.allclose(out, ref_bf16, atol=1e-2, rtol=1e-2), "mismatch vs bf16-matched reference"

    # Loose algorithmic sanity check vs the full-f32 PyTorch-equivalent reference.
    ref_f32 = stacked_attention_ref(img_feat, ques_feat, params, num_stacks)
    assert jnp.allclose(out, ref_f32, atol=1e-1, rtol=1e-1), "mismatch vs f32 reference"

    print("KERNEL_OK")
</pallas_src>

<mosaic_0001>
module attributes {stable_mosaic.version = 11 : i64} {
  func.func @_san_kernel(%arg0: i32, %arg1: memref<16x16x32xf32, #tpu.memory_space<vmem>>, %arg2: memref<16x32xf32, #tpu.memory_space<vmem>>, %arg3: memref<32x384xbf16, #tpu.memory_space<vmem>>, %arg4: memref<32x256xbf16, #tpu.memory_space<vmem>>, %arg5: memref<1x256xf32, #tpu.memory_space<vmem>>, %arg6: memref<1x128xf32, #tpu.memory_space<vmem>>, %arg7: memref<1x128x128xbf16, #tpu.memory_space<vmem>>, %arg8: memref<1x1x128xf32, #tpu.memory_space<vmem>>, %arg9: memref<1x1x128xf32, #tpu.memory_space<vmem>>, %arg10: memref<16x128xf32, #tpu.memory_space<vmem>>) attributes {dimension_semantics = [#tpu.dimension_semantics<parallel>], iteration_bounds = array<i64: 2>, scalar_prefetch = 0 : i64, scratch_operands = 0 : i64, tpu.core_type = #tpu.core_type<tc>, window_params = [{transform_indices = @transform_0, window_bounds = array<i64: 16, 16, 32>}, {transform_indices = @transform_1, window_bounds = array<i64: 16, 32>}, {pipeline_mode = #tpu.pipeline_mode<synchronous>, transform_indices = @transform_2, window_bounds = array<i64: 32, 384>}, {pipeline_mode = #tpu.pipeline_mode<synchronous>, transform_indices = @transform_3, window_bounds = array<i64: 32, 256>}, {pipeline_mode = #tpu.pipeline_mode<synchronous>, transform_indices = @transform_4, window_bounds = array<i64: 1, 256>}, {pipeline_mode = #tpu.pipeline_mode<synchronous>, transform_indices = @transform_5, window_bounds = array<i64: 1, 128>}, {pipeline_mode = #tpu.pipeline_mode<synchronous>, transform_indices = @transform_6, window_bounds = array<i64: 1, 128, 128>}, {pipeline_mode = #tpu.pipeline_mode<synchronous>, transform_indices = @transform_7, window_bounds = array<i64: 1, 1, 128>}, {pipeline_mode = #tpu.pipeline_mode<synchronous>, transform_indices = @transform_8, window_bounds = array<i64: 1, 1, 128>}, {transform_indices = @transform_9, window_bounds = array<i64: 16, 128>}]} {
    %c0 = arith.constant 0 : index
    %c0_0 = arith.constant 0 : index
    %c0_1 = arith.constant 0 : index
    %0 = vector.load %arg1[%c0, %c0_0, %c0_1] : memref<16x16x32xf32, #tpu.memory_space<vmem>>, vector<16x16x32xf32>
    %1 = vector.shape_cast %0 : vector<16x16x32xf32> to vector<256x32xf32>
    %2 = arith.truncf %1 : vector<256x32xf32> to vector<256x32xbf16>
    %c0_2 = arith.constant 0 : index
    %c0_3 = arith.constant 0 : index
    %3 = vector.load %arg2[%c0_2, %c0_3] : memref<16x32xf32, #tpu.memory_space<vmem>>, vector<16x32xf32>
    %4 = arith.truncf %3 : vector<16x32xf32> to vector<16x32xbf16>
    %c0_4 = arith.constant 0 : index
    %c0_5 = arith.constant 0 : index
    %5 = vector.load %arg3[%c0_4, %c0_5] : memref<32x384xbf16, #tpu.memory_space<vmem>>, vector<32x384xbf16>
    %cst = arith.constant dense<0.000000e+00> : vector<256x384xf32>
    %6 = tpu.matmul %2, %5, %cst {dimension_numbers = #tpu.dot_dimension_numbers<[1], [0], [0], [1], [0, 0, 1, 1], [], []>} : vector<256x32xbf16>, vector<32x384xbf16>, vector<256x384xf32> -> vector<256x384xf32>
    %7 = vector.shape_cast %6 : vector<256x384xf32> to vector<16x16x384xf32>
    %8 = vector.extract_strided_slice %7 {offsets = [0, 0, 0], sizes = [16, 16, 128], strides = [1, 1, 1]} : vector<16x16x384xf32> to vector<16x16x128xf32>
    %9 = vector.extract_strided_slice %7 {offsets = [0, 0, 128], sizes = [16, 16, 128], strides = [1, 1, 1]} : vector<16x16x384xf32> to vector<16x16x128xf32>
    %c0_6 = arith.constant 0 : index
    %c0_7 = arith.constant 0 : index
    %10 = vector.load %arg4[%c0_6, %c0_7] : memref<32x256xbf16, #tpu.memory_space<vmem>>, vector<32x256xbf16>
    %cst_8 = arith.constant dense<0.000000e+00> : vector<16x256xf32>
    %11 = tpu.matmul %4, %10, %cst_8 {dimension_numbers = #tpu.dot_dimension_numbers<[1], [0], [0], [1], [0, 0, 1, 1], [], []>} : vector<16x32xbf16>, vector<32x256xbf16>, vector<16x256xf32> -> vector<16x256xf32>
    %c0_9 = arith.constant 0 : index
    %c0_10 = arith.constant 0 : index
    %12 = vector.load %arg5[%c0_9, %c0_10] : memref<1x256xf32, #tpu.memory_space<vmem>>, vector<1x256xf32>
    %13 = vector.broadcast %12 : vector<1x256xf32> to vector<16x256xf32>
    %14 = arith.addf %11, %13 : vector<16x256xf32>
    %15 = vector.extract_strided_slice %14 {offsets = [0, 0], sizes = [16, 128], strides = [1, 1]} : vector<16x256xf32> to vector<16x128xf32>
    %16 = vector.extract_strided_slice %14 {offsets = [0, 128], sizes = [16, 128], strides = [1, 1]} : vector<16x256xf32> to vector<16x128xf32>
    %c0_11 = arith.constant 0 : index
    %c0_12 = arith.constant 0 : index
    %17 = vector.load %arg6[%c0_11, %c0_12] : memref<1x128xf32, #tpu.memory_space<vmem>>, vector<1x128xf32>
    %18 = vector.shape_cast %17 : vector<1x128xf32> to vector<1x1x128xf32>
    %19 = vector.shape_cast %15 : vector<16x128xf32> to vector<16x1x128xf32>
    %20 = vector.broadcast %19 : vector<16x1x128xf32> to vector<16x16x128xf32>
    %21 = arith.addf %8, %20 : vector<16x16x128xf32>
    %22 = math.tanh %21 : vector<16x16x128xf32>
    %23 = vector.broadcast %18 : vector<1x1x128xf32> to vector<16x16x128xf32>
    %24 = arith.mulf %22, %23 : vector<16x16x128xf32>
    %cst_13 = arith.constant dense<0.000000e+00> : vector<16x16xf32>
    %25 = vector.multi_reduction <add>, %24, %cst_13 [2] : vector<16x16x128xf32> to vector<16x16xf32>
    %cst_14 = arith.constant dense<0xFF800000> : vector<16xf32>
    %26 = vector.multi_reduction <maximumf>, %25, %cst_14 [1] : vector<16x16xf32> to vector<16xf32>
    %27 = vector.shape_cast %26 : vector<16xf32> to vector<16x1xf32>
    %28 = vector.broadcast %27 : vector<16x1xf32> to vector<16x16xf32>
    %29 = arith.subf %25, %28 : vector<16x16xf32>
    %30 = math.exp %29 : vector<16x16xf32>
    %cst_15 = arith.constant dense<0.000000e+00> : vector<16xf32>
    %31 = vector.multi_reduction <add>, %30, %cst_15 [1] : vector<16x16xf32> to vector<16xf32>
    %32 = vector.shape_cast %31 : vector<16xf32> to vector<16x1xf32>
    %33 = tpu.reciprocal %32 : vector<16x1xf32> -> vector<16x1xf32>
    %34 = vector.broadcast %33 : vector<16x1xf32> to vector<16x16xf32>
    %35 = arith.mulf %30, %34 : vector<16x16xf32>
    %36 = vector.shape_cast %35 : vector<16x16xf32> to vector<16x16x1xf32>
    %37 = vector.broadcast %36 : vector<16x16x1xf32> to vector<16x16x128xf32>
    %38 = arith.mulf %9, %37 : vector<16x16x128xf32>
    %cst_16 = arith.constant dense<0.000000e+00> : vector<16x128xf32>
    %39 = vector.multi_reduction <add>, %38, %cst_16 [1] : vector<16x16x128xf32> to vector<16x128xf32>
    %40 = arith.addf %16, %39 : vector<16x128xf32>
    %41 = vector.extract_strided_slice %7 {offsets = [0, 0, 256], sizes = [16, 16, 128], strides = [1, 1, 1]} : vector<16x16x384xf32> to vector<16x16x128xf32>
    %42 = arith.truncf %40 : vector<16x128xf32> to vector<16x128xbf16>
    %c0_17 = arith.constant 0 : index
    %c0_18 = arith.constant 0 : index
    %c0_19 = arith.constant 0 : index
    %43 = vector.load %arg7[%c0_17, %c0_18, %c0_19] : memref<1x128x128xbf16, #tpu.memory_space<vmem>>, vector<1x128x128xbf16>
    %44 = vector.shape_cast %43 : vector<1x128x128xbf16> to vector<128x128xbf16>
    %cst_20 = arith.constant dense<0.000000e+00> : vector<16x128xf32>
    %45 = tpu.matmul %42, %44, %cst_20 {dimension_numbers = #tpu.dot_dimension_numbers<[1], [0], [0], [1], [0, 0, 1, 1], [], []>} : vector<16x128xbf16>, vector<128x128xbf16>, vector<16x128xf32> -> vector<16x128xf32>
    %c0_21 = arith.constant 0 : index
    %c0_22 = arith.constant 0 : index
    %c0_23 = arith.constant 0 : index
    %46 = vector.load %arg8[%c0_21, %c0_22, %c0_23] : memref<1x1x128xf32, #tpu.memory_space<vmem>>, vector<1x1x128xf32>
    %47 = vector.shape_cast %46 : vector<1x1x128xf32> to vector<1x128xf32>
    %48 = vector.broadcast %47 : vector<1x128xf32> to vector<16x128xf32>
    %49 = arith.addf %45, %48 : vector<16x128xf32>
    %50 = vector.shape_cast %49 : vector<16x128xf32> to vector<16x1x128xf32>
    %51 = vector.broadcast %50 : vector<16x1x128xf32> to vector<16x16x128xf32>
    %52 = arith.addf %41, %51 : vector<16x16x128xf32>
    %53 = math.tanh %52 : vector<16x16x128xf32>
    %c0_24 = arith.constant 0 : index
    %c0_25 = arith.constant 0 : index
    %c0_26 = arith.constant 0 : index
    %54 = vector.load %arg9[%c0_24, %c0_25, %c0_26] : memref<1x1x128xf32, #tpu.memory_space<vmem>>, vector<1x1x128xf32>
    %55 = vector.shape_cast %54 : vector<1x1x128xf32> to vector<1x128xf32>
    %56 = vector.shape_cast %55 : vector<1x128xf32> to vector<1x1x128xf32>
    %57 = vector.broadcast %56 : vector<1x1x128xf32> to vector<16x16x128xf32>
    %58 = arith.mulf %53, %57 : vector<16x16x128xf32>
    %cst_27 = arith.constant dense<0.000000e+00> : vector<16x16xf32>
    %59 = vector.multi_reduction <add>, %58, %cst_27 [2] : vector<16x16x128xf32> to vector<16x16xf32>
    %cst_28 = arith.constant dense<0xFF800000> : vector<16xf32>
    %60 = vector.multi_reduction <maximumf>, %59, %cst_28 [1] : vector<16x16xf32> to vector<16xf32>
    %61 = vector.shape_cast %60 : vector<16xf32> to vector<16x1xf32>
    %62 = vector.broadcast %61 : vector<16x1xf32> to vector<16x16xf32>
    %63 = arith.subf %59, %62 : vector<16x16xf32>
    %64 = math.exp %63 : vector<16x16xf32>
    %cst_29 = arith.constant dense<0.000000e+00> : vector<16xf32>
    %65 = vector.multi_reduction <add>, %64, %cst_29 [1] : vector<16x16xf32> to vector<16xf32>
    %66 = vector.shape_cast %65 : vector<16xf32> to vector<16x1xf32>
    %67 = tpu.reciprocal %66 : vector<16x1xf32> -> vector<16x1xf32>
    %68 = vector.broadcast %67 : vector<16x1xf32> to vector<16x16xf32>
    %69 = arith.mulf %64, %68 : vector<16x16xf32>
    %70 = vector.shape_cast %69 : vector<16x16xf32> to vector<16x16x1xf32>
    %71 = vector.broadcast %70 : vector<16x16x1xf32> to vector<16x16x128xf32>
    %72 = arith.mulf %41, %71 : vector<16x16x128xf32>
    %cst_30 = arith.constant dense<0.000000e+00> : vector<16x128xf32>
    %73 = vector.multi_reduction <add>, %72, %cst_30 [1] : vector<16x16x128xf32> to vector<16x128xf32>
    %74 = arith.addf %40, %73 : vector<16x128xf32>
    %c0_31 = arith.constant 0 : index
    %c0_32 = arith.constant 0 : index
    %75 = vector.load %arg10[%c0_31, %c0_32] : memref<16x128xf32, #tpu.memory_space<vmem>>, vector<16x128xf32>
    tpu.vector_store %arg10[%c0_31, %c0_32], %74 {strides = array<i32>} : memref<16x128xf32, #tpu.memory_space<vmem>>, vector<16x128xf32>,
    return
  }
  func.func @transform_0(%arg0: i32) -> (i32, i32, i32) {
    %c0_i32 = arith.constant 0 : i32
    %c0_i32_0 = arith.constant 0 : i32
    %c0_i32_1 = arith.constant 0 : i32
    return %arg0, %c0_i32, %c0_i32_0 : i32, i32, i32
  }
  func.func @transform_1(%arg0: i32) -> (i32, i32) {
    %c0_i32 = arith.constant 0 : i32
    %c0_i32_0 = arith.constant 0 : i32
    return %arg0, %c0_i32 : i32, i32
  }
  func.func @transform_2(%arg0: i32) -> (i32, i32) {
    %c0_i32 = arith.constant 0 : i32
    %c0_i32_0 = arith.constant 0 : i32
    %c0_i32_1 = arith.constant 0 : i32
    return %c0_i32, %c0_i32_0 : i32, i32
  }
  func.func @transform_3(%arg0: i32) -> (i32, i32) {
    %c0_i32 = arith.constant 0 : i32
    %c0_i32_0 = arith.constant 0 : i32
    %c0_i32_1 = arith.constant 0 : i32
    return %c0_i32, %c0_i32_0 : i32, i32
  }
  func.func @transform_4(%arg0: i32) -> (i32, i32) {
    %c0_i32 = arith.constant 0 : i32
    %c0_i32_0 = arith.constant 0 : i32
    %c0_i32_1 = arith.constant 0 : i32
    return %c0_i32, %c0_i32_0 : i32, i32
  }
  func.func @transform_5(%arg0: i32) -> (i32, i32) {
    %c0_i32 = arith.constant 0 : i32
    %c0_i32_0 = arith.constant 0 : i32
    %c0_i32_1 = arith.constant 0 : i32
    return %c0_i32, %c0_i32_0 : i32, i32
  }
  func.func @transform_6(%arg0: i32) -> (i32, i32, i32) {
    %c0_i32 = arith.constant 0 : i32
    %c0_i32_0 = arith.constant 0 : i32
    %c0_i32_1 = arith.constant 0 : i32
    %c0_i32_2 = arith.constant 0 : i32
    return %c0_i32, %c0_i32_0, %c0_i32_1 : i32, i32, i32
  }
  func.func @transform_7(%arg0: i32) -> (i32, i32, i32) {
    %c0_i32 = arith.constant 0 : i32
    %c0_i32_0 = arith.constant 0 : i32
    %c0_i32_1 = arith.constant 0 : i32
    %c0_i32_2 = arith.constant 0 : i32
    return %c0_i32, %c0_i32_0, %c0_i32_1 : i32, i32, i32
  }
  func.func @transform_8(%arg0: i32) -> (i32, i32, i32) {
    %c0_i32 = arith.constant 0 : i32
    %c0_i32_0 = arith.constant 0 : i32
    %c0_i32_1 = arith.constant 0 : i32
    %c0_i32_2 = arith.constant 0 : i32
    return %c0_i32, %c0_i32_0, %c0_i32_1 : i32, i32, i32
  }
  func.func @transform_9(%arg0: i32) -> (i32, i32) {
    %c0_i32 = arith.constant 0 : i32
    %c0_i32_0 = arith.constant 0 : i32
    return %arg0, %c0_i32 : i32, i32
  }
}

</mosaic_0001>

<bundles_post_ra>
// kernel: tpu_custom_call.1
= control target key start
LH: loop header
LB: loop body
LE: loop exit
PB: predicated region body
PF: predicated region fallthrough
CT: control target
= control target key end

     0   :  { %s6972_s0 = inlined_call_operand.hbm [shape: f32[32,16,32], index: 0, kind: input, shape index: {}]   ;;  %s6973_s1 = inlined_call_operand.hbm [shape: f32[32,32], index: 1, kind: input, shape index: {}]   ;;  %s6974_s2 = inlined_call_operand.hbm [shape: bf16[32,384], index: 2, kind: input, shape index: {}]   ;;  %s6975_s3 = inlined_call_operand.hbm [shape: bf16[32,256], index: 3, kind: input, shape index: {}]   ;;  %s6976_s4 = inlined_call_operand.vmem [shape: f32[1,256], index: 4, kind: input, shape index: {}]   ;;  %s6977_s5 = inlined_call_operand.vmem [shape: f32[1,128], index: 5, kind: input, shape index: {}]   ;;  %s6978_s6 = inlined_call_operand.hbm [shape: bf16[1,128,128], index: 6, kind: input, shape index: {}]   ;;  %s6979_s7 = inlined_call_operand.vmem [shape: f32[1,1,128], index: 7, kind: input, shape index: {}]   ;;  %s6980_s8 = inlined_call_operand.vmem [shape: f32[1,1,128], index: 8, kind: input, shape index: {}]   ;;  %s6981_s9 = inlined_call_operand.hbm [shape: f32[32,128], index: 9, kind: output, shape index: {}]  }
   0x1   :  { %7029 = sst [smem:[#allocation89_spill]] %s6972_s0 }
   0x2   :  { %7030 = sst [smem:[#allocation90_spill]] %s6974_s2 }
   0x3   :  { %7031 = sst [smem:[#allocation91_spill]] %s6975_s3 }
   0x4   :  { %7032 = sst [smem:[#allocation92_spill]] %s6978_s6 }
   0x5   :  { %14 = vsyncpa [#allocation3], 0 }
   0x6   :  { %16 = vsyncpa [#allocation3 + $0x1], 0 }
   0x7   :  { %17 = vsyncpa [#allocation6], 0 }
   0x8   :  { %19 = vsyncpa [#allocation6 + $0x1], 0 }
   0x9   :  { %20 = vsyncpa [#allocation9], 0 }
   0xa   :  { %21 = vsyncpa [#allocation4], 0 }
   0xb   :  { %23 = vsyncpa [#allocation4 + $0x1], 0  ;;  %s5066_s30 = smov 0   ;;  %s5068_s10 = smov 0  }
   0xc   :  { %s5070_s11 = smov 0   ;;  %s5072_s12 = smov 0  }
   0xd LB: > { %7033 = sst [smem:[#allocation17_spill]] %s4984_s30  ;;  %s5087_s13 = sadd.s32 4294967295, %s4996_s12   ;;  %s4996_s12 = sphi %s5072_s12, %s7241_s12   ;;  %s4992_s11 = sphi %s5070_s11, %s7240_s11   ;;  %s4988_s10 = sphi %s5068_s10, %s7239_s10   ;;  %s4984_s30 = sphi %s5066_s30, %s7238_s30  }
   0xe   : > { %s4222_s14 = sadd.s32 4294967294, %s4996_s12   ;;  %p49_p0 = scmp.ne.s32.totalorder %s4988_s10, %s4984_s30 }
   0xf   : > { %p6982_p1 = scmp.eq.s32.totalorder %s5087_s13, 0  ;;  %p252_p3 = scmp.eq.s32.totalorder %s4222_s14, 1 }
  0x10   : > { %p4223_p5 = scmp.ge.s32.totalorder %s4996_s12, 1  ;;  %p259_p7 = scmp.lt.s32.totalorder %s4996_s12, 3 }
  0x11   : > { %p5096_p4 = por %p6982_p1, %p49_p0  ;;  %p5101_p6 = por %p252_p3, %p49_p0 }
  0x12   : > { %p5106_p8 = pnand %p4223_p5, %p259_p7  ;;  %s4998_s18 = smov [#allocation7]  }
  0x13   : > { %s7034_s15 = scalar_select %p5096_p4, 1, 0 }
  0x14   : > { %s7035_s16 = scalar_select %p5101_p6, 1, 0 }
  0x15   : > { %s7037_s17 = scalar_select %p5106_p8, 1, 0 }
  0x16   : > { %7036 = sst [smem:[#allocation18_spill]] %s7035_s16  ;;  %s271_s19 = sshll.u32 %s4998_s18, 4  ;;  %s5110_s19 = int_to_ptr.vmem [resolvable:$true] %s271_s19 }
  0x17   : > { %p4410_p9 = pneg %p5106_p8  ;;  %s4999_s21 = smov [#allocation8]  }
  0x18   : > { %s284_s22 = sshll.u32 %s4999_s21, 4  ;;  %s7039_s2 = sld [smem:[#allocation90_spill]]  ;;  %s5121_s22 = int_to_ptr.vmem [resolvable:$true] %s284_s22 }
  0x19   : > { %p5117_p11 = pnand %p4410_p9, %p6982_p1 }
  0x1b   : > { %p5131_p13 = pneg %p5117_p11 }
  0x1e   : > { %s4774_s25 = scalar_lea.hbm %s7039_s2, 768 }
  0x1f   : > { %p4775_p12 = scmp.ne.s32.totalorder %s7039_s2, %s4774_s25  ;;  %p4781_p5 = scmp.lt.u32.totalorder %s4774_s25, %s7039_s2 }
  0x21   : > { %p4777_p0 = pnand %p5131_p13, %p4775_p12 }
  0x23   : > { %p4778_p3 = pneg %p4777_p0 }
  0x25   : > { %p4783_p7 = pnand %p4781_p5, %p4778_p3 }
  0x27   : > { %4786 = shalt.err (!%p4783_p7)
}
  0x28   : > { %s4787_s18 = scalar_lea.vmem %s5110_s19, 768  ;;  %p4795_p2 = scmp.lt.s32.totalorder %s5110_s19, %s5110_s19 }
  0x29   : > { %p4788_p9 = scmp.ne.s32.totalorder %s5110_s19, %s4787_s18  ;;  %p4796_p6 = scmp.lt.s32.totalorder %s4787_s18, %s4787_s18 }
  0x2b   : > { %p4790_p10 = pnand %p4788_p9, %p5131_p13  ;;  %p4797_p12 = por %p4796_p6, %p4795_p2 }
  0x2d   : > { %p4791_p1 = pneg %p4790_p10 }
  0x2f   : > { %p4798_p0 = pnand %p4797_p12, %p4791_p1 }
  0x31   : > { %4801 = shalt.err (!%p4798_p0)
}
  0x32   : > { %s5000_s21 = smov 192   ;;  %s5001_s23 = smov 12  }
  0x33   : > { %4413 = dma.hbm_to_vmem [thread:$0]  (!%p5117_p11), %s7039_s2, 768, %s5110_s19, [#allocation6], %s5000_s21, %s5000_s21, %s5001_s23  }
  0x34   : > { %s7041_s3 = sld [smem:[#allocation91_spill]] }
  0x3a   : > { %s4802_s29 = scalar_lea.hbm %s7041_s3, 512 }
  0x3b   : > { %p4803_p2 = scmp.ne.s32.totalorder %s7041_s3, %s4802_s29  ;;  %p4809_p10 = scmp.lt.u32.totalorder %s4802_s29, %s7041_s3 }
  0x3d   : > { %p4805_p1 = pnand %p4803_p2, %p5131_p13 }
  0x3f   : > { %p4806_p6 = pneg %p4805_p1 }
  0x41   : > { %p4811_p3 = pnand %p4809_p10, %p4806_p6 }
  0x43   : > { %4814 = shalt.err (!%p4811_p3)
}
  0x44   : > { %s4815_s19 = scalar_lea.vmem %s5121_s22, 512  ;;  %p4823_p12 = scmp.lt.s32.totalorder %s5121_s22, %s5121_s22 }
  0x45   : > { %p4816_p5 = scmp.ne.s32.totalorder %s5121_s22, %s4815_s19  ;;  %p4824_p0 = scmp.lt.s32.totalorder %s4815_s19, %s4815_s19 }
  0x47   : > { %p4818_p7 = pnand %p4816_p5, %p5131_p13  ;;  %p4825_p2 = por %p4824_p0, %p4823_p12 }
  0x49   : > { %p4819_p9 = pneg %p4818_p7 }
  0x4b   : > { %p4826_p1 = pnand %p4825_p2, %p4819_p9 }
  0x4d   : > { %4829 = shalt.err (!%p4826_p1)
}
  0x4e   : > { %s6987_s16 = smov 128   ;;  %s5003_s30 = smov 8  }
  0x4f   : > { %4416 = dma.hbm_to_vmem [thread:$0]  (!%p5117_p11), %s7041_s3, 512, %s5121_s22, [#allocation9], %s6987_s16, %s6987_s16, %s5003_s30  }
  0x50   : > { %s5004_s24 = smov [#allocation10]   ;;  %s7042_s6 = sld [smem:[#allocation92_spill]] }
  0x51   : > { %s303_s25 = sshll.u32 %s5004_s24, 4  ;;  %s304_s25 = int_to_ptr.vmem [resolvable:$true] %s303_s25 }
  0x56   : > { %s4830_s29 = scalar_lea.hbm %s7042_s6, 1024 }
  0x57   : > { %p4831_p6 = scmp.ne.s32.totalorder %s7042_s6, %s4830_s29  ;;  %p4837_p5 = scmp.lt.u32.totalorder %s4830_s29, %s7042_s6 }
  0x59   : > { %p4833_p10 = pnand %p4831_p6, %p5131_p13 }
  0x5b   : > { %p4834_p3 = pneg %p4833_p10 }
  0x5d   : > { %p4839_p7 = pnand %p4837_p5, %p4834_p3 }
  0x5f   : > { %4842 = shalt.err (!%p4839_p7)
}
  0x60   : > { %s4843_s22 = scalar_lea.vmem %s304_s25, 1024  ;;  %p4851_p2 = scmp.lt.s32.totalorder %s304_s25, %s304_s25 }
  0x61   : > { %p4844_p9 = scmp.ne.s32.totalorder %s304_s25, %s4843_s22  ;;  %p4852_p1 = scmp.lt.s32.totalorder %s4843_s22, %s4843_s22 }
  0x63   : > { %p4846_p12 = pnand %p4844_p9, %p5131_p13  ;;  %p4853_p4 = por %p4852_p1, %p4851_p2 }
  0x65   : > { %p4847_p0 = pneg %p4846_p12 }
  0x67   : > { %p4854_p8 = pnand %p4853_p4, %p4847_p0 }
  0x69   : > { %4857 = shalt.err (!%p4854_p8)
}
  0x6a   : > { %s5005_s21 = smov 64   ;;  %s5006_s2 = smov 4  }
  0x6b   : > { %4419 = dma.hbm_to_vmem [thread:$0]  (!%p5117_p11), %s7042_s6, 1024, %s304_s25, [#allocation9], %s5005_s21, %s5005_s21, %s5006_s2  }
  0x6c   : > { %s5197_s24 = sadd.s32 1, %s4996_s12   ;;  %s36_s27 = sadd.s32 1, %s4992_s11 }
  0x6d   : > { %s33_s26 = ssub.s32 %s4996_s12, %s5197_s24  ;;  %p43_p8 = scmp.ne.s32.totalorder %s4992_s11, %s4988_s10 }
  0x6e   : > { %p34_p4 = scmp.eq.s32.totalorder %s33_s26, 0  ;;  %p44_p13 = scmp.eq.s32.totalorder %s4996_s12, 0 }
  0x6f   : > { %p4434_p6 = scmp.lt.s32.totalorder %s4996_s12, 2  ;;  %p7044_p3 = scmp.eq.s32.totalorder %s5087_s13, 1 }
  0x70   : > { %s5207_s29 = scalar_select %p34_p4, %s4992_s11, %s36_s27  }
  0x71   : > { %p45_p10 = por %p44_p13, %p43_p8  ;;  %p5211_p5 = por %p7044_p3, %p43_p8 }
  0x72   : > { %7043 = sst [smem:[#allocation19_spill]] %s5207_s29  ;;  %s5216_s14 = sand.u32 1, %s4992_s11  }
  0x73   : > { %s4302_s25 = sshll.u32 %s4996_s12, 12  ;;  %s4228_s18 = sshll.u32 %s5216_s14, 8 }
  0x74   : > { %s7046_s0 = sld [smem:[#allocation89_spill]]  ;;  %s327_s2 = scalar_lea.vmem [#allocation2], %s4228_s18 }
  0x75   : > { %s335_s28 = sshll.u32 %s327_s2, 4  ;;  %p5225_p11 = pnand %p4434_p6, %p45_p10  ;;  %s5229_s28 = int_to_ptr.vmem [resolvable:$true] %s335_s28 }
  0x76   : > { %s324_s27 = scalar_lea.sflag [#allocation3], %s5216_s14 }
  0x77   : > { %p4860_p9 = pneg %p5225_p11 }
  0x7a   : > { %s5223_s21 = scalar_lea.hbm %s7046_s0, %s4302_s25  ;;  %s4863_s19 = scalar_lea.hbm %s7046_s0, 8192 }
  0x7b   : > { %s4858_s16 = scalar_lea.hbm %s5223_s21, 4096  ;;  %p4864_p2 = scmp.lt.u32.totalorder %s5223_s21, %s7046_s0 }
  0x7c   : > { %p4859_p7 = scmp.ne.s32.totalorder %s5223_s21, %s4858_s16  ;;  %p4865_p1 = scmp.lt.u32.totalorder %s4863_s19, %s4858_s16 }
  0x7d   : > { %p4867_p8 = scmp.lt.u32.totalorder %s4858_s16, %s5223_s21 }
  0x7e   : > { %p4861_p12 = pnand %p4860_p9, %p4859_p7  ;;  %p4866_p4 = por %p4865_p1, %p4864_p2 }
  0x80   : > { %p4862_p0 = pneg %p4861_p12  ;;  %p4868_p13 = por %p4867_p8, %p4866_p4 }
  0x82   : > { %p4869_p6 = pnand %p4868_p13, %p4862_p0 }
  0x84   : > { %4872 = shalt.err (!%p4869_p6)
}
  0x85   : > { %s4873_s26 = scalar_lea.vmem %s5229_s28, 4096  ;;  %s5007_s25 = smov [#allocation2]  }
  0x86   : > { %p4874_p10 = scmp.ne.s32.totalorder %s5229_s28, %s4873_s26  ;;  %s4878_s18 = sshll.u32 %s5007_s25, 4  ;;  %s4879_s18 = int_to_ptr.vmem [resolvable:$false] %s4878_s18 }
  0x87   : > { %s4880_s22 = scalar_lea.vmem %s4879_s18, 8192  ;;  %p4881_p12 = scmp.lt.s32.totalorder %s5229_s28, %s4879_s18 }
  0x88   : > { %p4876_p3 = pnand %p4874_p10, %p4860_p9  ;;  %p4882_p2 = scmp.lt.s32.totalorder %s4880_s22, %s4873_s26 }
  0x8a   : > { %p4877_p7 = pneg %p4876_p3  ;;  %p4883_p1 = por %p4882_p2, %p4881_p12 }
  0x8c   : > { %p4884_p4 = pnand %p4883_p1, %p4877_p7 }
  0x8e   : > { %4887 = shalt.err (!%p4884_p4)
}
  0x8f   : > { %s7048_s16 = smov 128   ;;  %s4232_s19 = sshll.u32 %s5216_s14, 4 }
  0x90   : > { %4423 = dma.hbm_to_vmem [thread:$0]  (!%p5225_p11), %s5223_s21, 4096, %s5229_s28, %s324_s27, %s7048_s16, %s7048_s16, %s5003_s30  }
  0x91   : > { %s4303_s2 = sshll.u32 %s4996_s12, 8  ;;  %s349_s22 = scalar_lea.vmem [#allocation5], %s4232_s19 }
  0x92   : > { %s5268_s18 = scalar_lea.hbm %s6973_s1, %s4303_s2  ;;  %s356_s0 = sshll.u32 %s349_s22, 4  ;;  %s5270_s0 = int_to_ptr.vmem [resolvable:$true] %s356_s0 }
  0x93   : > { %s7049_s3 = sand.u32 1, %s4996_s12   ;;  %s4888_s29 = scalar_lea.hbm %s5268_s18, 256 }
  0x94   : > { %s5274_s6 = scalar_lea.sflag [#allocation6], %s7049_s3  ;;  %p4889_p0 = scmp.ne.s32.totalorder %s5268_s18, %s4888_s29 }
  0x95   : > { %s4893_s28 = scalar_lea.hbm %s6973_s1, 512  ;;  %p4894_p6 = scmp.lt.u32.totalorder %s5268_s18, %s6973_s1 }
  0x96   : > { %p4891_p8 = pnand %p4889_p0, %p4860_p9  ;;  %p4895_p10 = scmp.lt.u32.totalorder %s4893_s28, %s4888_s29 }
  0x97   : > { %p4897_p7 = scmp.lt.u32.totalorder %s4888_s29, %s5268_s18 }
  0x98   : > { %p4892_p13 = pneg %p4891_p8  ;;  %p4896_p3 = por %p4895_p10, %p4894_p6 }
  0x9a   : > { %p4898_p12 = por %p4897_p7, %p4896_p3 }
  0x9c   : > { %p4899_p2 = pnand %p4898_p12, %p4892_p13 }
  0x9e   : > { %4902 = shalt.err (!%p4899_p2)
}
  0x9f   : > { %s4903_s3 = scalar_lea.vmem %s5270_s0, 256  ;;  %s5008_s19 = smov [#allocation5]  }
  0xa0   : > { %p4904_p1 = scmp.ne.s32.totalorder %s5270_s0, %s4903_s3  ;;  %s4908_s26 = sshll.u32 %s5008_s19, 4  ;;  %s4909_s26 = int_to_ptr.vmem [resolvable:$false] %s4908_s26 }
  0xa1   : > { %s4910_s25 = scalar_lea.vmem %s4909_s26, 512  ;;  %p4911_p8 = scmp.lt.s32.totalorder %s5270_s0, %s4909_s26 }
  0xa2   : > { %p4906_p4 = pnand %p4904_p1, %p4860_p9  ;;  %p4912_p6 = scmp.lt.s32.totalorder %s4910_s25, %s4903_s3 }
  0xa4   : > { %p4907_p0 = pneg %p4906_p4  ;;  %p4913_p10 = por %p4912_p6, %p4911_p8 }
  0xa6   : > { %p4914_p3 = pnand %p4913_p10, %p4907_p0 }
  0xa8   : > { %4917 = shalt.err (!%p4914_p3)
}
  0xa9   : > { %4426 = dma.hbm_to_vmem [thread:$0]  (!%p5225_p11), %s5268_s18, 256, %s5270_s0, %s5274_s6, %s7048_s16, %s7048_s16, %s5003_s30  }
  0xaa   : > { %p7050_p9 = scmp.ne.s32.totalorder %s7037_s17, 0 }
  0xac   : > { %368 = sbr.rel (%p7050_p9) target bundleno = 2557 (0x9fd), region = 56 }
  0xb3   : > { %s5306_s29 = sand.u32 1, %s4988_s10   ;;  %p7051_p13 = scmp.ne.s32.totalorder %s7034_s15, 0 }
  0xb4   : > { %s4236_s22 = sshll.u32 %s5306_s29, 8  ;;  %s371_s14 = scalar_lea.sflag [#allocation3], %s5306_s29 }
  0xb5   : > { %s5310_s21 = scalar_lea.vmem [#allocation2], %s4236_s22 }
  0xb6   : > { %4963 = dma.done.wait (%p7051_p13), %s371_s14, 4096  }
  0xb7   : > { %4965 = vsyncadd (%p7051_p13), %s371_s14, 4294963200  ;;  %s379_s0 = sand.u32 1, %s5087_s13   ;;  %s4237_s6 = sshll.u32 %s5306_s29, 4 }
  0xb8   : > { %s380_s17 = scalar_lea.sflag [#allocation6], %s379_s0  ;;  %s5320_s30 = scalar_lea.vmem [#allocation5], %s4237_s6 }
  0xb9   : > { %4967 = dma.done.wait (%p7051_p13), %s380_s17, 256  }
  0xba   : > { %4969 = vsyncadd (%p7051_p13), %s380_s17, 4294967040  ;;  %p7052_p11 = scmp.eq.s32.totalorder %s5087_s13, 0 }
  0xbc   : > { %4971 = dma.done.wait (%p7052_p11), [#allocation6], 768   ;;  %p7053_p7 = pmov %p7052_p11 }
  0xbe   : > { %4973 = vsyncadd (%p7053_p7), [#allocation6], 4294966528  ;;  %p7054_p12 = pmov %p7053_p7 }
  0xbf   : > { %p7055_p2 = pmov %p7053_p7 }
  0xc0   : > { %4975 = dma.done.wait (%p7054_p12), [#allocation9], 1536  }
  0xc1   : > { %4977 = vsyncadd (%p7055_p2), [#allocation9], 4294965760  ;;  %v5009_v0 = vmov 0   ;;  %v4488_v1 = vld [vmem:[#allocation7 + $0x4] ss:$12 sps:$4 sm:$0xff]   ;;  %v440_v6 = vld [vmem:[%s5310_s21 + $0x8] sm:$0xff] }
  0xc2   : > { %611 = vmatprep.mubr.bf16.mxu0 %v5009_v0  ;;  %761 = vmatprep.mubr.bf16.mxu1 %v5009_v0  ;;  %v4490_v2 = vld [vmem:[#allocation7] ss:$12 sps:$4 sm:$0xff]   ;;  %v4491_v3 = vld [vmem:[#allocation7 + $0x1c] ss:$12 sps:$4 sm:$0xff]   ;;  %v4493_v4 = vld [vmem:[#allocation7 + $0x18] ss:$12 sps:$4 sm:$0xff]  }
  0xc3   : > { %4487 = vset.pattern.permute.xlu1 %v5009_v0  ;;  %4486 = vset.pattern.permute.xlu0 %v5009_v0  ;;  %v439_v5 = vld [vmem:[%s5310_s21] sm:$0xff]  ;;  %v469_v7 = vld [vmem:[%s5310_s21 + $0xf0] sm:$0xff]  ;;  %v470_v8 = vld [vmem:[%s5310_s21 + $0xf8] sm:$0xff]  ;;  %vm530_vm0 = vcmask 261120   ;;  %vm1405_vm1 = vcmask 130112   ;;  %vm1542_vm2 = vcmask 1041409  }
  0xc4   : > { %579 = vmatprep.subr.bf16.mxu0 %v4488_v1  ;;  %4388 = vmatprep.subr.bf16.mxu1 %v4488_v1  ;;  %v4494_v9 = vld [vmem:[#allocation7 + $0x8] ss:$12 sps:$4 sm:$0xff]   ;;  %v471_v10 = vpack.c.bf16 %v440_v6, %v439_v5  ;;  %v5342_v11 = vpack.c.bf16 %v470_v8, %v469_v7  ;;  %v4495_v12 = vld [vmem:[#allocation7 + $0x20] ss:$12 sps:$4 sm:$0xff]   ;;  %v442_v14 = vld [vmem:[%s5310_s21 + $0x18] sm:$0xff]  ;;  %vm1544_vm3 = vcmask 1042434  }
  0xc5   : > { %580 = vmatpush1.bf16.msra.mxu0 %v4490_v2  ;;  %4390 = vmatpush1.bf16.msra.mxu1 %v4490_v2  ;;  %v441_v13 = vld [vmem:[%s5310_s21 + $0x10] sm:$0xff]  ;;  %v443_v16 = vld [vmem:[%s5310_s21 + $0x20] sm:$0xff]  ;;  %v444_v17 = vld [vmem:[%s5310_s21 + $0x28] sm:$0xff]  ;;  %vm1546_vm4 = vcmask 1043459   ;;  %vm1548_vm5 = vcmask 1044484   ;;  %vm1550_vm6 = vcmask 1045509  }
  0xc6   : > { %581 = vmatprep.subr.bf16.mxu0 %v4491_v3  ;;  %4389 = vmatprep.subr.bf16.mxu1 %v4491_v3  ;;  %v4498_v15 = vld [vmem:[#allocation8 + $0x4] ss:$8 sps:$4 sm:$0xff]   ;;  %v472_v18 = vpack.c.bf16 %v442_v14, %v441_v13  ;;  %v4496_v19 = vld [vmem:[#allocation8] ss:$8 sps:$4 sm:$0xff]   ;;  %v473_v20 = vpack.c.bf16 %v444_v17, %v443_v16  ;;  %v4501_v21 = vld [vmem:[#allocation8 + $0x14] ss:$8 sps:$4 sm:$0xff]  }
  0xc7   : > { %v445_v22 = vld [vmem:[%s5310_s21 + $0x30] sm:$0xff]  ;;  %v446_v23 = vld [vmem:[%s5310_s21 + $0x38] sm:$0xff]  ;;  %v447_v24 = vld [vmem:[%s5310_s21 + $0x40] sm:$0xff]  ;;  %vm1552_vm7 = vcmask 1046534   ;;  %vm1554_vm8 = vcmask 1047559   ;;  %vm1565_vm9 = vcmask 130048  }
  0xc8   : > { %v448_v25 = vld [vmem:[%s5310_s21 + $0x48] sm:$0xff]  ;;  %v474_v27 = vpack.c.bf16 %v446_v23, %v445_v22  ;;  %v449_v29 = vld [vmem:[%s5310_s21 + $0x50] sm:$0xff]  ;;  %v450_v30 = vld [vmem:[%s5310_s21 + $0x58] sm:$0xff]  ;;  %vm5012_vm10 = vmmov 0   ;;  %s6901_s19 = scalar_lea.vmem [#allocation11], %s4237_s6  ;;  %s4304_s26 = sshll.u32 %s5087_s13, 8 }
  0xc9   : > { %582 = vmatpush1.bf16.msra.mxu0 %v4493_v4  ;;  %4391 = vmatpush1.bf16.msra.mxu1 %v4493_v4  ;;  %v4499_v26 = vld [vmem:[#allocation8 + $0x10] ss:$8 sps:$4 sm:$0xff]   ;;  %v475_v28 = vpack.c.bf16 %v448_v25, %v447_v24  ;;  %v476_v33 = vpack.c.bf16 %v450_v30, %v449_v29  ;;  %v453_v35 = vld [vmem:[%s5310_s21 + $0x70] sm:$0xff]  ;;  %v454_v36 = vld [vmem:[%s5310_s21 + $0x78] sm:$0xff]  ;;  %s4098_s25 = sshll.u32 %s6901_s19, 4  ;;  %s4085_s0 = scalar_lea.sflag [#allocation4], %s5306_s29  ;;  %s6926_s25 = int_to_ptr.vmem [resolvable:$true] %s4098_s25 }
  0xca   : > { %4332 = vmatprep.subr.bf16.mxu1 %v4494_v9  ;;  %v451_v31 = vld [vmem:[%s5310_s21 + $0x60] sm:$0xff]  ;;  %v452_v32 = vld [vmem:[%s5310_s21 + $0x68] sm:$0xff]  ;;  %v478_v39 = vpack.c.bf16 %v454_v36, %v453_v35  ;;  %v457_v41 = vld [vmem:[%s5310_s21 + $0x90] sm:$0xff]  ;;  %s4918_s6 = scalar_lea.vmem %s6926_s25, 256  ;;  %s5013_s13 = smov [#allocation11]  }
  0xcb   : > { %v477_v34 = vpack.c.bf16 %v452_v32, %v451_v31  ;;  %v455_v37 = vld [vmem:[%s5310_s21 + $0x80] sm:$0xff]  ;;  %v456_v38 = vld [vmem:[%s5310_s21 + $0x88] sm:$0xff]  ;;  %v458_v42 = vld [vmem:[%s5310_s21 + $0x98] sm:$0xff]  ;;  %p4919_p1 = scmp.ne.s32.totalorder %s6926_s25, %s4918_s6  ;;  %s4922_s17 = sshll.u32 %s5013_s13, 4  ;;  %s4923_s17 = int_to_ptr.vmem [resolvable:$false] %s4922_s17 }
  0xcc   : > { %4248 = vmatmul.mubr.msk.bf16.vlgmr.msra.gmra.mrb[0].mxu0 %vm530_vm0, %v471_v10  ;;  %4263 = vmatmul.mubr.msk.bf16.vlgmr.msra.gmra.mrb[0].mxu1 %vm530_vm0, %v5342_v11  ;;  %v479_v40 = vpack.c.bf16 %v456_v38, %v455_v37  ;;  %v459_v43 = vld [vmem:[%s5310_s21 + $0xa0] sm:$0xff]  ;;  %v460_v44 = vld [vmem:[%s5310_s21 + $0xa8] sm:$0xff]  ;;  %v480_v45 = vpack.c.bf16 %v458_v42, %v457_v41  ;;  %v461_v47 = vld [vmem:[%s5310_s21 + $0xb0] sm:$0xff]  ;;  %p4925_p8 = scmp.lt.s32.totalorder %s6926_s25, %s4923_s17 }
  0xcd   : > { %4333 = vmatpush3.bf16.msra.mxu1 %v4494_v9  ;;  %621 = vmatprep.mubr.bf16.mxu0 %v5009_v0  ;;  %v481_v46 = vpack.c.bf16 %v460_v44, %v459_v43  ;;  %v462_v48 = vld [vmem:[%s5310_s21 + $0xb8] sm:$0xff]  ;;  %v463_v49 = vld [vmem:[%s5310_s21 + $0xc0] sm:$0xff]  ;;  %v464_v50 = vld [vmem:[%s5310_s21 + $0xc8] sm:$0xff]  ;;  %p4920_p4 = pnand %p4919_p1, %p5211_p5 }
  0xce   : > { %4334 = vmatprep.subr.bf16.mxu1 %v4495_v12  ;;  %4336 = vmatprep.mubr.msk.bf16.mxu1 %vm530_vm0, %v471_v10  ;;  %v482_v51 = vpack.c.bf16 %v462_v48, %v461_v47  ;;  %v483_v52 = vpack.c.bf16 %v464_v50, %v463_v49  ;;  %v465_v53 = vld [vmem:[%s5310_s21 + $0xd0] sm:$0xff]  ;;  %v466_v54 = vld [vmem:[%s5310_s21 + $0xd8] sm:$0xff]  ;;  %v467_v55 = vld [vmem:[%s5310_s21 + $0xe0] sm:$0xff] }
  0xcf   : > { %v468_v56 = vld [vmem:[%s5310_s21 + $0xe8] sm:$0xff]  ;;  %v484_v57 = vpack.c.bf16 %v466_v54, %v465_v53  ;;  %v487_v59 = vld [vmem:[%s5320_s30] sm:$0xff]  ;;  %s6924_s21 = scalar_lea.hbm %s6981_s9, %s4304_s26  ;;  %p4921_p0 = pneg %p4920_p4 }
  0xd0   : > { %v485_v58 = vpack.c.bf16 %v468_v56, %v467_v55  ;;  %v488_v60 = vld [vmem:[%s5320_s30 + $0x8] sm:$0xff]  ;;  %s4924_s30 = scalar_lea.vmem %s4923_s17, 512 }
  0xd1   : > { %4335 = vmatpush3.bf16.msra.mxu1 %v4495_v12  ;;  %v489_v61 = vpack.c.bf16 %v488_v60, %v487_v59  ;;  %p4926_p6 = scmp.lt.s32.totalorder %s4924_s30, %s4918_s6 }
  0xd2   : > { %972 = vmatprep.subr.bf16.mxu1 %v4498_v15 }
  0xd3   : > { %p4927_p10 = por %p4926_p6, %p4925_p8 }
  0xd4   : > { %4249 = vmatmul.mubr.msk.bf16.gmra.mrb[4].mxu0 %vm530_vm0, %v472_v18  ;;  %4337 = vmatmul.mubr.msk.bf16.vlgmr.msra.gmra.mrb[4].mxu1 %vm530_vm0, %v472_v18 }
  0xd5   : > { %973 = vmatpush1.bf16.msra.mxu1 %v4496_v19  ;;  %631 = vmatprep.mubr.bf16.mxu0 %v5009_v0  ;;  %p4928_p3 = pnand %p4927_p10, %p4921_p0 }
  0xd6   : > { %4340 = vmatprep.mubr.msk.bf16.mxu1 %vm530_vm0, %v473_v20  ;;  %974 = vmatprep.subr.bf16.mxu1 %v4501_v21 }
  0xd9   : > { %975 = vmatpush1.bf16.msra.mxu1 %v4499_v26 }
  0xdc   : > { %4250 = vmatmul.mubr.msk.bf16.gmra.mrb[8].mxu0 %vm530_vm0, %v473_v20  ;;  %4341 = vmatmul.mubr.msk.bf16.gmra.mrb[8].mxu1 %vm530_vm0, %v474_v27 }
  0xdd   : > { %641 = vmatprep.mubr.bf16.mxu0 %v5009_v0  ;;  %4344 = vmatprep.mubr.msk.bf16.mxu1 %vm530_vm0, %v475_v28 }
  0xe4   : > { %4251 = vmatmul.mubr.msk.bf16.gmra.mrb[12].mxu0 %vm530_vm0, %v474_v27  ;;  %4345 = vmatmul.mubr.msk.bf16.gmra.mrb[12].mxu1 %vm530_vm0, %v476_v33 }
  0xe5   : > { %651 = vmatprep.mubr.bf16.mxu0 %v5009_v0  ;;  %4348 = vmatprep.mubr.msk.bf16.mxu1 %vm530_vm0, %v477_v34 }
  0xec   : > { %4252 = vmatmul.mubr.msk.bf16.gmra.mrb[16].mxu0 %vm530_vm0, %v475_v28  ;;  %4349 = vmatmul.mubr.msk.bf16.gmra.mrb[16].mxu1 %vm530_vm0, %v478_v39 }
  0xed   : > { %661 = vmatprep.mubr.bf16.mxu0 %v5009_v0  ;;  %4352 = vmatprep.mubr.msk.bf16.mxu1 %vm530_vm0, %v479_v40 }
  0xf4   : > { %4253 = vmatmul.mubr.msk.bf16.gmra.mrb[20].mxu0 %vm530_vm0, %v476_v33  ;;  %4353 = vmatmul.mubr.msk.bf16.gmra.mrb[20].mxu1 %vm530_vm0, %v480_v45 }
  0xf5   : > { %671 = vmatprep.mubr.bf16.mxu0 %v5009_v0  ;;  %4356 = vmatprep.mubr.msk.bf16.mxu1 %vm530_vm0, %v481_v46 }
  0xfc   : > { %4254 = vmatmul.mubr.msk.bf16.gmra.mrb[24].mxu0 %vm530_vm0, %v477_v34  ;;  %4357 = vmatmul.mubr.msk.bf16.gmra.mrb[24].mxu1 %vm530_vm0, %v482_v51 }
  0xfd   : > { %681 = vmatprep.mubr.bf16.mxu0 %v5009_v0  ;;  %4360 = vmatprep.mubr.msk.bf16.mxu1 %vm530_vm0, %v483_v52 }
 0x104   : > { %4255 = vmatmul.mubr.msk.bf16.gmra.mrb[28].mxu0 %vm530_vm0, %v478_v39  ;;  %4361 = vmatmul.mubr.msk.bf16.gmra.mrb[28].mxu1 %vm530_vm0, %v484_v57 }
 0x105   : > { %691 = vmatprep.mubr.bf16.mxu0 %v5009_v0  ;;  %4364 = vmatprep.mubr.msk.bf16.mxu1 %vm530_vm0, %v485_v58 }
 0x10c   : > { %4256 = vmatmul.mubr.msk.bf16.gmra.mrb[32].mxu0 %vm530_vm0, %v479_v40  ;;  %4365 = vmatmul.mubr.msk.bf16.gmra.mrb[32].mxu1 %vm530_vm0, %v5342_v11 }
 0x10d   : > { %701 = vmatprep.mubr.bf16.mxu0 %v5009_v0  ;;  %1004 = vmatprep.mubr.bf16.mxu1 %v5009_v0 }
 0x114   : > { %4257 = vmatmul.mubr.msk.bf16.gmra.mrb[36].mxu0 %vm530_vm0, %v480_v45  ;;  %4284 = vmatmul.mubr.msk.bf16.vlgmr.msra.gmra.mrb[36].mxu1 %vm530_vm0, %v489_v61 }
 0x115   : > { %711 = vmatprep.mubr.bf16.mxu0 %v5009_v0 }
 0x11c   : > { %4258 = vmatmul.mubr.msk.bf16.gmra.mrb[40].mxu0 %vm530_vm0, %v481_v46 }
 0x11d   : > { %721 = vmatprep.mubr.bf16.mxu0 %v5009_v0 }
 0x124   : > { %4259 = vmatmul.mubr.msk.bf16.gmra.mrb[44].mxu0 %vm530_vm0, %v482_v51 }
 0x125   : > { %731 = vmatprep.mubr.bf16.mxu0 %v5009_v0 }
 0x12c   : > { %4260 = vmatmul.mubr.msk.bf16.gmra.mrb[48].mxu0 %vm530_vm0, %v483_v52 }
 0x12d   : > { %741 = vmatprep.mubr.bf16.mxu0 %v5009_v0 }
 0x134   : > { %4261 = vmatmul.mubr.msk.bf16.gmra.mrb[52].mxu0 %vm530_vm0, %v484_v57 }
 0x135   : > { %751 = vmatprep.mubr.bf16.mxu0 %v5009_v0 }
 0x13c   : > { %4262 = vmatmul.mubr.msk.bf16.gmra.mrb[56].mxu0 %vm530_vm0, %v485_v58  ;;  %v6999_v58 = vlaneseq }
 0x19f   : > { %v5424_v62 = vpop.f32.mrb[0].mxu1  ;;  %v5426_v63 = vpop.f32.mrb[0].mxu0 }
 0x1a0   : > { %v5428_v1 = vpop.f32.mrb[1].mxu1  ;;  %v5430_v2 = vpop.f32.mrb[1].mxu0 }
 0x1a1   : > { %7056 = vst [vmem:[#allocation20_spill] sm:$0xff] %v5428_v1  ;;  %7057 = vst [vmem:[#allocation21_spill] sm:$0xff] %v5430_v2  ;;  %v5432_v3 = vpop.f32.mrb[2].mxu1  ;;  %v5434_v4 = vpop.f32.mrb[2].mxu0 }
 0x1a2   : > { %v5436_v5 = vpop.f32.mrb[3].mxu1  ;;  %v5438_v6 = vpop.f32.mrb[3].mxu0 }
 0x1a3   : > { %7058 = vst [vmem:[#allocation22_spill] sm:$0xff] %v5436_v5  ;;  %7059 = vst [vmem:[#allocation23_spill] sm:$0xff] %v5438_v6 }
 0x1a7   : > { %v5440_v7 = vpop.f32.mrb[4].mxu1  ;;  %v5442_v0 = vpop.f32.mrb[4].mxu0 }
 0x1a8   : > { %7060 = vst [vmem:[#allocation24_spill] sm:$0xff] %v5440_v7  ;;  %v5444_v8 = vpop.f32.mrb[5].mxu1  ;;  %v5446_v9 = vpop.f32.mrb[5].mxu0 }
 0x1a9   : > { %7061 = vst [vmem:[#allocation25_spill] sm:$0xff] %v5444_v8  ;;  %7062 = vst [vmem:[#allocation26_spill] sm:$0xff] %v5446_v9  ;;  %v5448_v10 = vpop.f32.mrb[6].mxu1  ;;  %v5450_v11 = vpop.f32.mrb[6].mxu0 }
 0x1aa   : > { %7063 = vst [vmem:[#allocation27_spill] sm:$0xff] %v5448_v10  ;;  %v5452_v12 = vpop.f32.mrb[7].mxu1  ;;  %v5454_v13 = vpop.f32.mrb[7].mxu0 }
 0x1ab   : > { %7064 = vst [vmem:[#allocation28_spill] sm:$0xff] %v5452_v12  ;;  %7065 = vst [vmem:[#allocation29_spill] sm:$0xff] %v5454_v13 }
 0x1af   : > { %v5456_v14 = vpop.f32.mrb[8].mxu1  ;;  %v5458_v15 = vpop.f32.mrb[8].mxu0 }
 0x1b0   : > { %7066 = vst [vmem:[#allocation30_spill] sm:$0xff] %v5456_v14  ;;  %v5460_v16 = vpop.f32.mrb[9].mxu1  ;;  %v5462_v17 = vpop.f32.mrb[9].mxu0 }
 0x1b1   : > { %7067 = vst [vmem:[#allocation31_spill] sm:$0xff] %v5460_v16  ;;  %7068 = vst [vmem:[#allocation32_spill] sm:$0xff] %v5462_v17  ;;  %v5464_v18 = vpop.f32.mrb[10].mxu1  ;;  %v5466_v19 = vpop.f32.mrb[10].mxu0 }
 0x1b2   : > { %7069 = vst [vmem:[#allocation33_spill] sm:$0xff] %v5464_v18  ;;  %v5468_v20 = vpop.f32.mrb[11].mxu1  ;;  %v5470_v21 = vpop.f32.mrb[11].mxu0 }
 0x1b3   : > { %7070 = vst [vmem:[#allocation34_spill] sm:$0xff] %v5468_v20  ;;  %7071 = vst [vmem:[#allocation35_spill] sm:$0xff] %v5470_v21 }
 0x1b7   : > { %v5472_v22 = vpop.f32.mrb[12].mxu1  ;;  %v5474_v23 = vpop.f32.mrb[12].mxu0 }
 0x1b8   : > { %7072 = vst [vmem:[#allocation36_spill] sm:$0xff] %v5472_v22  ;;  %v5476_v24 = vpop.f32.mrb[13].mxu1  ;;  %v5478_v25 = vpop.f32.mrb[13].mxu0 }
 0x1b9   : > { %7073 = vst [vmem:[#allocation37_spill] sm:$0xff] %v5476_v24  ;;  %7074 = vst [vmem:[#allocation38_spill] sm:$0xff] %v5478_v25  ;;  %v5480_v26 = vpop.f32.mrb[14].mxu1  ;;  %v5482_v27 = vpop.f32.mrb[14].mxu0 }
 0x1ba   : > { %7075 = vst [vmem:[#allocation39_spill] sm:$0xff] %v5480_v26  ;;  %v5484_v28 = vpop.f32.mrb[15].mxu1  ;;  %v5486_v29 = vpop.f32.mrb[15].mxu0 }
 0x1bb   : > { %7076 = vst [vmem:[#allocation40_spill] sm:$0xff] %v5484_v28  ;;  %7077 = vst [vmem:[#allocation41_spill] sm:$0xff] %v5486_v29 }
 0x1bf   : > { %v5488_v30 = vpop.f32.mrb[16].mxu1  ;;  %v5490_v31 = vpop.f32.mrb[16].mxu0 }
 0x1c0   : > { %7078 = vst [vmem:[#allocation42_spill] sm:$0xff] %v5488_v30  ;;  %v5492_v32 = vpop.f32.mrb[17].mxu1  ;;  %v5494_v33 = vpop.f32.mrb[17].mxu0 }
 0x1c1   : > { %7079 = vst [vmem:[#allocation43_spill] sm:$0xff] %v5492_v32  ;;  %7080 = vst [vmem:[#allocation44_spill] sm:$0xff] %v5494_v33  ;;  %v5496_v34 = vpop.f32.mrb[18].mxu1  ;;  %v5498_v35 = vpop.f32.mrb[18].mxu0 }
 0x1c2   : > { %7081 = vst [vmem:[#allocation45_spill] sm:$0xff] %v5496_v34  ;;  %v5500_v36 = vpop.f32.mrb[19].mxu1  ;;  %v5502_v37 = vpop.f32.mrb[19].mxu0 }
 0x1c3   : > { %7082 = vst [vmem:[#allocation46_spill] sm:$0xff] %v5500_v36  ;;  %7083 = vst [vmem:[#allocation47_spill] sm:$0xff] %v5502_v37 }
 0x1c7   : > { %v5504_v38 = vpop.f32.mrb[20].mxu1  ;;  %v5506_v39 = vpop.f32.mrb[20].mxu0 }
 0x1c8   : > { %7084 = vst [vmem:[#allocation48_spill] sm:$0xff] %v5504_v38  ;;  %v5508_v40 = vpop.f32.mrb[21].mxu1  ;;  %v5510_v41 = vpop.f32.mrb[21].mxu0 }
 0x1c9   : > { %7085 = vst [vmem:[#allocation49_spill] sm:$0xff] %v5508_v40  ;;  %7086 = vst [vmem:[#allocation50_spill] sm:$0xff] %v5510_v41  ;;  %v5512_v42 = vpop.f32.mrb[22].mxu1  ;;  %v5514_v43 = vpop.f32.mrb[22].mxu0 }
 0x1ca   : > { %7087 = vst [vmem:[#allocation51_spill] sm:$0xff] %v5512_v42  ;;  %v5516_v44 = vpop.f32.mrb[23].mxu1  ;;  %v5518_v45 = vpop.f32.mrb[23].mxu0 }
 0x1cb   : > { %7088 = vst [vmem:[#allocation52_spill] sm:$0xff] %v5516_v44  ;;  %7089 = vst [vmem:[#allocation53_spill] sm:$0xff] %v5518_v45 }
 0x1cf   : > { %v5520_v46 = vpop.f32.mrb[24].mxu1  ;;  %v5522_v47 = vpop.f32.mrb[24].mxu0 }
 0x1d0   : > { %7090 = vst [vmem:[#allocation54_spill] sm:$0xff] %v5520_v46  ;;  %v5524_v48 = vpop.f32.mrb[25].mxu1  ;;  %v5526_v49 = vpop.f32.mrb[25].mxu0  ;;  %v5553_v46 = vshrl.u32 %v6999_v58, 7  ;;  %v937_v58 = vld [vmem:[%s6976_s4] sm:$0x3] }
 0x1d1   : > { %7091 = vst [vmem:[#allocation55_spill] sm:$0xff] %v5524_v48  ;;  %7092 = vst [vmem:[#allocation56_spill] sm:$0xff] %v5526_v49  ;;  %v5528_v50 = vpop.f32.mrb[26].mxu1  ;;  %v5530_v51 = vpop.f32.mrb[26].mxu0 }
 0x1d2   : > { %7093 = vst [vmem:[#allocation57_spill] sm:$0xff] %v5528_v50  ;;  %v5532_v52 = vpop.f32.mrb[27].mxu1  ;;  %v5534_v53 = vpop.f32.mrb[27].mxu0  ;;  %v5562_v38 = vsub.s32 0, %v5553_v46 }
 0x1d3   : > { %7094 = vst [vmem:[#allocation58_spill] sm:$0xff] %v5532_v52  ;;  %7095 = vst [vmem:[#allocation59_spill] sm:$0xff] %v5534_v53  ;;  %v5010_v52 = vmov 1966171168  }
 0x1d4   : > { %v942_v34 = vrot.slane %v937_v58, %v5562_v38 }
 0x1d7   : > { %v5536_v54 = vpop.f32.mrb[28].mxu1  ;;  %v5538_v55 = vpop.f32.mrb[28].mxu0 }
 0x1d8   : > { %7096 = vst [vmem:[#allocation60_spill] sm:$0xff] %v5536_v54  ;;  %v5540_v56 = vpop.f32.mrb[29].mxu1  ;;  %v5542_v57 = vpop.f32.mrb[29].mxu0  ;;  %v1020_v54 = vunpack.c.l.s4 %v5010_v52 }
 0x1d9   : > { %7097 = vst [vmem:[#allocation61_spill] sm:$0xff] %v5540_v56  ;;  %7098 = vst [vmem:[#allocation62_spill] sm:$0xff] %v5542_v57  ;;  %v5544_v59 = vpop.f32.mrb[30].mxu1  ;;  %v5546_v60 = vpop.f32.mrb[30].mxu0 }
 0x1da   : > { %7099 = vst [vmem:[#allocation63_spill] sm:$0xff] %v5544_v59  ;;  %v5548_v61 = vpop.f32.mrb[31].mxu1  ;;  %v5550_v50 = vpop.f32.mrb[31].mxu0  ;;  %v1021_v40 = vunpack.c.0.s8 %v1020_v54 }
 0x1db   : > { %7100 = vst [vmem:[#allocation64_spill] sm:$0xff] %v5548_v61  ;;  %7101 = vst [vmem:[#allocation65_spill] sm:$0xff] %v5550_v50  ;;  %v5572_v61 = vsub.s32 1, %v5553_v46 }
 0x1dd   : > { %v946_v30 = vrot.slane %v937_v58, %v5572_v61 }
 0x1df   : > { %v5555_v48 = vpop.f32.mrb[32].mxu1  ;;  %v5557_v42 = vpop.f32.mrb[32].mxu0 }
 0x1e0   : > { %7102 = vst [vmem:[#allocation66_spill] sm:$0xff] %v5555_v48  ;;  %v5559_v56 = vpop.f32.mrb[33].mxu1  ;;  %v5564_v59 = vpop.f32.mrb[33].mxu0 }
 0x1e1   : > { %7103 = vst [vmem:[#allocation67_spill] sm:$0xff] %v5559_v56  ;;  %7104 = vst [vmem:[#allocation68_spill] sm:$0xff] %v5564_v59  ;;  %v5566_v44 = vpop.f32.mrb[34].mxu1  ;;  %v5574_v52 = vpop.f32.mrb[34].mxu0 }
 0x1e2   : > { %7105 = vst [vmem:[#allocation69_spill] sm:$0xff] %v5566_v44  ;;  %v5576_v48 = vpop.f32.mrb[35].mxu1  ;;  %v5578_v56 = vpop.f32.mrb[35].mxu0  ;;  %v5583_v44 = vsub.s32 %v1021_v40, %v5553_v46 }
 0x1e3   : > { %7106 = vst [vmem:[#allocation70_spill] sm:$0xff] %v5576_v48  ;;  %7107 = vst [vmem:[#allocation71_spill] sm:$0xff] %v5578_v56 }
 0x1e4   : > { %7108 = vst [vmem:[#allocation72_spill] sm:$0xff] %v5583_v44 }
 0x1e7   : > { %v1006_v36 = vpop.f32.mrb[36].mxu1  ;;  %v5585_v32 = vpop.f32.mrb[36].mxu0 }
 0x1e8   : > { %v1007_v26 = vadd.f32 %v1006_v36, %v942_v34  ;;  %v1008_v22 = vpop.f32.mrb[37].mxu1  ;;  %v5587_v28 = vpop.f32.mrb[37].mxu0 }
 0x1e9   : > { %7109 = vst [vmem:[#allocation73_spill] sm:$0xff] %v5587_v28  ;;  %v5589_v24 = vadd.f32 %v1008_v22, %v946_v30  ;;  %v1010_v48 = vpop.f32.mrb[38].mxu1  ;;  %v5591_v54 = vpop.f32.mrb[38].mxu0 }
 0x1ea   : > { %v1018_v18 = vcombine.high %v1007_v26, %v1007_v26  ;;  %v1025_v14 = vrot.slane %v1007_v26, %v5583_v44  ;;  %v1011_v20 = vadd.f32 %v1010_v48, %v942_v34  ;;  %v1012_v58 = vpop.f32.mrb[39].mxu1  ;;  %v5594_v16 = vpop.f32.mrb[39].mxu0 }
 0x1eb   : > { %7110 = vst [vmem:[#allocation74_spill] sm:$0xff] %v5589_v24  ;;  %7111 = vst [vmem:[#allocation75_spill] sm:$0xff] %v5594_v16  ;;  %v5596_v40 = vadd.f32 %v1012_v58, %v946_v30 }
 0x1ec   : > { %v1032_v10 = vrot.slane %v1018_v18, %v5583_v44  ;;  %v1033_v36 = vcombine.high %v1025_v14, %v1025_v14  ;;  %v1041_v7 = vrot.slane %v1025_v14, %v5583_v44  ;;  %v1067_v12 = vcombine.high %v1011_v20, %v1011_v20 }
 0x1ed   : > { %7112 = vst [vmem:[#allocation76_spill] sm:$0xff] %v5596_v40  ;;  %v1074_v22 = vrot.slane %v1011_v20, %v5583_v44 }
 0x1ee   : > { %v1034_v8 = vcombine.high %v1032_v10, %v1032_v10  ;;  %v1048_v5 = vrot.slane %v1032_v10, %v5583_v44  ;;  %v1055_v1 = vrot.slane %v1033_v36, %v5583_v44  ;;  %v1063_v26 = vcombine.high %v1041_v7, %v1041_v7 }
 0x1ef   : > { %v1119_v34 = vrot.slane %v1041_v7, %v5562_v38  ;;  %v1081_v48 = vrot.slane %v1067_v12, %v5583_v44  ;;  %v1082_v30 = vcombine.high %v1074_v22, %v1074_v22  ;;  %v713_v58 = vpop.f32.mrb[40].mxu0  ;;  %v1090_v59 = vrot.slane %v1074_v22, %v5583_v44 }
 0x1f0   : > { %v1062_v18 = vrot.slane %v1034_v8, %v5583_v44  ;;  %v1064_v40 = vcombine.high %v1048_v5, %v1048_v5  ;;  %v1065_v24 = vcombine.high %v1055_v1, %v1055_v1  ;;  %v1123_v14 = vrot.slane %v1055_v1, %v5562_v38  ;;  %v5607_v16 = vpop.f32.mrb[41].mxu0 }
 0x1f1   : > { %7113 = vst [vmem:[#allocation77_spill] sm:$0xff] %v5607_v16  ;;  %v1127_v20 = vrot.slane %v1063_v26, %v5562_v38  ;;  %v1135_v10 = vrot.slane %v1048_v5, %v5562_v38  ;;  %v1196_v36 = vadd.f32 %v1119_v34, %v5426_v63  ;;  %v1197_v7 = vadd.f32 %v1119_v34, %v5434_v4  ;;  %v717_v28 = vpop.f32.mrb[42].mxu0 }
 0x1f2   : > { %v1131_v12 = vrot.slane %v1065_v24, %v5562_v38  ;;  %v1139_v56 = vrot.slane %v1062_v18, %v5562_v38  ;;  %v1143_v8 = vrot.slane %v1064_v40, %v5562_v38  ;;  %v5617_v1 = vpop.f32.mrb[43].mxu0  ;;  %v1198_v16 = vadd.f32 %v1123_v14, %v5442_v0 }
 0x1f3   : > { %7114 = vst [vmem:[#allocation78_spill] sm:$0xff] %v5617_v1  ;;  %v1199_v26 = vadd.f32 %v1123_v14, %v5450_v11  ;;  %v1200_v5 = vadd.f32 %v1127_v20, %v5458_v15  ;;  %v5623_v63 = vadd.f32 %v1127_v20, %v5466_v19  ;;  %v1066_v4 = vcombine.high %v1062_v18, %v1062_v18 }
 0x1f4   : > { %v5626_v24 = vadd.f32 %v1131_v12, %v5474_v23  ;;  %v5629_v34 = vadd.f32 %v1131_v12, %v5482_v27  ;;  %v1204_v40 = vadd.f32 %v1135_v10, %v5490_v31  ;;  %v5633_v22 = vadd.f32 %v1135_v10, %v5498_v35 }
 0x1f5   : > { %v5636_v0 = vadd.f32 %v1139_v56, %v5506_v39  ;;  %v5639_v11 = vadd.f32 %v1139_v56, %v5514_v43  ;;  %v5642_v15 = vadd.f32 %v1143_v8, %v5522_v47  ;;  %v5645_v19 = vadd.f32 %v1143_v8, %v5530_v51 }
 0x1f6   : > { %4510 = vtanh.f32 %v1196_v36  ;;  %v1151_v23 = vrot.slane %v1090_v59, %v5562_v38  ;;  %v1104_v27 = vrot.slane %v1082_v30, %v5583_v44  ;;  %v1112_v31 = vcombine.high %v1090_v59, %v1090_v59 }
 0x1f7   : > { %v723_v35 = vpop.f32.mrb[44].mxu0  ;;  %v1083_v18 = vcombine.high %v1081_v48, %v1081_v48  ;;  %4512 = vtanh.f32 %v1197_v7  ;;  %v1147_v51 = vrot.slane %v1066_v4, %v5562_v38 }
 0x1f8   : > { %v1212_v39 = vadd.f32 %v1151_v23, %v5557_v42  ;;  %v1213_v43 = vadd.f32 %v1151_v23, %v5574_v52  ;;  %v1155_v56 = vrot.slane %v1104_v27, %v5562_v38  ;;  %v5652_v47 = vpop.f32.mrb[45].mxu0  ;;  %v1159_v14 = vrot.slane %v1112_v31, %v5562_v38 }
 0x1f9   : > { %7115 = vst [vmem:[#allocation79_spill] sm:$0xff] %v5652_v47  ;;  %v1114_v20 = vcombine.high %v1104_v27, %v1104_v27  ;;  %v727_v10 = vpop.f32.mrb[46].mxu0  ;;  %v1097_v42 = vrot.slane %v1081_v48, %v5583_v44  ;;  %v1111_v52 = vrot.slane %v1083_v18, %v5583_v44 }
 0x1fa   : > { %v1214_v30 = vadd.f32 %v1155_v56, %v5585_v32  ;;  %v5658_v59 = vadd.f32 %v1155_v56, %v5591_v54  ;;  %v5660_v36 = vpop.f32.mrb[47].mxu0  ;;  %v1216_v7 = vadd.f32 %v1159_v14, %v713_v58  ;;  %v5664_v12 = vadd.f32 %v1159_v14, %v717_v28  ;;  %v5677_v54 = vld [vmem:[%s6977_s5] ss:$0 sm:$0xff] }
 0x1fb   : > { %7116 = vst [vmem:[#allocation80_spill] sm:$0xff] %v5660_v36  ;;  %v1163_v8 = vrot.slane %v1114_v20, %v5562_v38  ;;  %v1115_v4 = vcombine.high %v1111_v52, %v1111_v52  ;;  %4514 = vtanh.f32 %v1212_v39  ;;  %v5672_v32 = vadd.f32 %v1147_v51, %v5538_v55 }
 0x1fc   : > { %v1167_v48 = vrot.slane %v1097_v42, %v5562_v38  ;;  %v5682_v58 = vadd.f32 %v1147_v51, %v5546_v60  ;;  %4516 = vtanh.f32 %v1200_v5  ;;  %v1171_v5 = vrot.slane %v1111_v52, %v5562_v38 }
 0x1fd   : > { %v5667_v23 = vadd.f32 %v1163_v8, %v723_v35  ;;  %v5669_v27 = vadd.f32 %v1163_v8, %v727_v10  ;;  %v1179_v28 = vrot.slane %v1115_v4, %v5562_v38  ;;  %4518 = vtanh.f32 %v1204_v40 }
 0x1fe   : > { %4520 = vtanh.f32 %v1199_v26 }
 0x1ff   : > { %v733_v31 = vpop.f32.mrb[48].mxu0  ;;  %v5689_v55 = vadd.f32 %v1179_v28, %v5424_v62  ;;  %v1227_v56 = vadd.f32 %v1179_v28, %v5432_v3  ;;  %4522 = vtanh.f32 %v1198_v16  ;;  %v1113_v16 = vcombine.high %v1097_v42, %v1097_v42 }
 0x200   : > { %v4511_v35 = vpop.eup %4510  ;;  %v5684_v18 = vadd.f32 %v1167_v48, %v733_v31  ;;  %v5686_v39 = vpop.f32.mrb[49].mxu0 }
 0x201   : > { %7117 = vst [vmem:[#allocation81_spill] sm:$0xff] %v5686_v39  ;;  %v1266_v14 = vmul.f32 %v4511_v35, %v5677_v54  ;;  %v737_v20 = vpop.f32.mrb[50].mxu0  ;;  %v4513_v10 = vpop.eup %4512 }
 0x202   : > { %v1221_v8 = vadd.f32 %v1167_v48, %v737_v20  ;;  %v5693_v4 = vpop.f32.mrb[51].mxu0  ;;  %v1267_v60 = vmul.f32 %v4513_v10, %v5677_v54 }
 0x203   : > { %7118 = vst [vmem:[#allocation82_spill] sm:$0xff] %v5693_v4  ;;  %1298 = vadd.xlane.f32.xlu0 %v1266_v14  ;;  %v1175_v14 = vrot.slane %v1113_v16, %v5562_v38 }
 0x204   : > { %4524 = vtanh.f32 %v1221_v8 }
 0x205   : > { %v4515_v51 = vpop.eup %4514  ;;  %4526 = vtanh.f32 %v1214_v30 }
 0x206   : > { %v1282_v48 = vmul.f32 %v4515_v51, %v5677_v54  ;;  %4528 = vtanh.f32 %v1227_v56  ;;  %v4517_v40 = vpop.eup %4516 }
 0x207   : > { %1300 = vadd.xlane.f32.xlu0 %v1267_v60  ;;  %v743_v62 = vpop.f32.mrb[52].mxu0  ;;  %4530 = vtanh.f32 %v1213_v43  ;;  %v1270_v52 = vmul.f32 %v4517_v40, %v5677_v54  ;;  %v4519_v30 = vpop.eup %4518 }
 0x208   : > { %v5697_v3 = vadd.f32 %v1171_v5, %v743_v62  ;;  %v5699_v28 = vpop.f32.mrb[53].mxu0  ;;  %4532 = vtanh.f32 %v1216_v7  ;;  %v4521_v20 = vpop.eup %4520  ;;  %v1274_v60 = vmul.f32 %v4519_v30, %v5677_v54 }
 0x209   : > { %7119 = vst [vmem:[#allocation83_spill] sm:$0xff] %v5699_v28  ;;  %v747_v31 = vpop.f32.mrb[54].mxu0  ;;  %v4523_v10 = vpop.eup %4522  ;;  %v1269_v16 = vmul.f32 %v4521_v20, %v5677_v54 }
 0x20a   : > { %v1223_v26 = vadd.f32 %v1171_v5, %v747_v31  ;;  %v5702_v35 = vpop.f32.mrb[55].mxu0  ;;  %v1268_v7 = vmul.f32 %v4523_v10, %v5677_v54 }
 0x20b   : > { %7120 = vst [vmem:[#allocation84_spill] sm:$0xff] %v5702_v35  ;;  %1330 = vadd.xlane.f32.xlu0 %v1282_v48 }
 0x20c   : > { %4534 = vtanh.f32 %v1223_v26  ;;  %1302 = vadd.xlane.f32.xlu1 %v1268_v7 }
 0x20d   : > { %4536 = vtanh.f32 %v5623_v63 }
 0x20e   : > { %4538 = vtanh.f32 %v5626_v24  ;;  %v4525_v42 = vpop.eup %4524 }
 0x20f   : > { %1306 = vadd.xlane.f32.xlu0 %v1270_v52  ;;  %v753_v56 = vpop.f32.mrb[56].mxu0  ;;  %v4527_v51 = vpop.eup %4526  ;;  %4540 = vtanh.f32 %v5633_v22  ;;  %v5716_v63 = vmul.f32 %v4525_v42, %v5677_v54 }
 0x210   : > { %v5707_v8 = vadd.f32 %v1175_v14, %v753_v56  ;;  %v5709_v43 = vpop.f32.mrb[57].mxu0  ;;  %v4529_v31 = vpop.eup %4528  ;;  %4542 = vtanh.f32 %v5636_v0  ;;  %v1284_v22 = vmul.f32 %v4527_v51, %v5677_v54  ;;  %1304 = vadd.xlane.f32.xlu1 %v1269_v16 }
 0x211   : > { %7121 = vst [vmem:[#allocation85_spill] sm:$0xff] %v5709_v43  ;;  %v757_v5 = vpop.f32.mrb[58].mxu0  ;;  %v4531_v24 = vpop.eup %4530  ;;  %v5722_v40 = vmul.f32 %v4529_v31, %v5677_v54 }
 0x212   : > { %v1225_v62 = vadd.f32 %v1175_v14, %v757_v5  ;;  %v5718_v48 = vpop.f32.mrb[59].mxu0  ;;  %v4533_v26 = vpop.eup %4532  ;;  %v1283_v14 = vmul.f32 %v4531_v24, %v5677_v54 }
 0x213   : > { %7122 = vst [vmem:[#allocation86_spill] sm:$0xff] %v5718_v48  ;;  %1314 = vadd.xlane.f32.xlu0 %v1274_v60  ;;  %v1286_v56 = vmul.f32 %v4533_v26, %v5677_v54 }
 0x214   : > { %4544 = vtanh.f32 %v1225_v62  ;;  %1332 = vadd.xlane.f32.xlu1 %v1283_v14 }
 0x215   : > { %4546 = vtanh.f32 %v5658_v59 }
 0x216   : > { %v4535_v52 = vpop.eup %4534  ;;  %4548 = vtanh.f32 %v5642_v15 }
 0x217   : > { %1334 = vadd.xlane.f32.xlu0 %v1284_v22  ;;  %v5728_v30 = vmul.f32 %v4535_v52, %v5677_v54  ;;  %v4537_v0 = vpop.eup %4536  ;;  %4550 = vtanh.f32 %v5664_v12 }
 0x218   : > { %v4539_v10 = vpop.eup %4538  ;;  %4552 = vtanh.f32 %v5672_v32  ;;  %v1271_v42 = vmul.f32 %v4537_v0, %v5677_v54 }
 0x219   : > { %v4541_v20 = vpop.eup %4540  ;;  %v1272_v7 = vmul.f32 %v4539_v10, %v5677_v54  ;;  %4554 = vtanh.f32 %v5667_v23 }
 0x21a   : > { %v4543_v59 = vpop.eup %4542  ;;  %1308 = vadd.xlane.f32.xlu1 %v1271_v42  ;;  %4556 = vtanh.f32 %v5629_v34  ;;  %v1275_v5 = vmul.f32 %v4541_v20, %v5677_v54 }
 0x21b   : > { %1338 = vadd.xlane.f32.xlu0 %v1286_v56  ;;  %v1276_v51 = vmul.f32 %v4543_v59, %v5677_v54  ;;  %4558 = vtanh.f32 %v5684_v18 }
 0x21c   : > { %4560 = vtanh.f32 %v5639_v11 }
 0x21d   : > { %4562 = vtanh.f32 %v5697_v3 }
 0x21e   : > { %v4545_v60 = vpop.eup %4544  ;;  %1316 = vadd.xlane.f32.xlu1 %v1275_v5  ;;  %4564 = vtanh.f32 %v5645_v19 }
 0x21f   : > { %1310 = vadd.xlane.f32.xlu0 %v1272_v7  ;;  %v1295_v15 = vmul.f32 %v4545_v60, %v5677_v54  ;;  %v4547_v12 = vpop.eup %4546  ;;  %4566 = vtanh.f32 %v5707_v8 }
 0x220   : > { %v4549_v32 = vpop.eup %4548  ;;  %v1285_v23 = vmul.f32 %v4547_v12, %v5677_v54  ;;  %4568 = vtanh.f32 %v5682_v58 }
 0x221   : > { %v4551_v62 = vpop.eup %4550  ;;  %v1278_v31 = vmul.f32 %v4549_v32, %v5677_v54  ;;  %4570 = vtanh.f32 %v5669_v27 }
 0x222   : > { %v4553_v24 = vpop.eup %4552  ;;  %1336 = vadd.xlane.f32.xlu1 %v1285_v23  ;;  %v1287_v26 = vmul.f32 %v4551_v62, %v5677_v54  ;;  %4572 = vtanh.f32 %v5689_v55 }
 0x223   : > { %1318 = vadd.xlane.f32.xlu0 %v1276_v51  ;;  %v4555_v34 = vpop.eup %4554  ;;  %v1280_v18 = vmul.f32 %v4553_v24, %v5677_v54 }
 0x224   : > { %v4557_v16 = vpop.eup %4556  ;;  %v1288_v3 = vmul.f32 %v4555_v34, %v5677_v54 }
 0x225   : > { %v4559_v11 = vpop.eup %4558  ;;  %v1273_v22 = vmul.f32 %v4557_v16, %v5677_v54 }
 0x226   : > { %1340 = vadd.xlane.f32.xlu1 %v1287_v26  ;;  %v4561_v52 = vpop.eup %4560  ;;  %v1290_v8 = vmul.f32 %v4559_v11, %v5677_v54 }
 0x227   : > { %1322 = vadd.xlane.f32.xlu0 %v1278_v31  ;;  %v4563_v19 = vpop.eup %4562  ;;  %v1277_v0 = vmul.f32 %v4561_v52, %v5677_v54 }
 0x228   : > { %v4565_v14 = vpop.eup %4564  ;;  %v1292_v10 = vmul.f32 %v4563_v19, %v5677_v54 }
 0x229   : > { %v4567_v58 = vpop.eup %4566  ;;  %v1279_v56 = vmul.f32 %v4565_v14, %v5677_v54 }
 0x22a   : > { %1312 = vadd.xlane.f32.xlu1 %v1273_v22  ;;  %v4569_v20 = vpop.eup %4568  ;;  %v1294_v55 = vmul.f32 %v4567_v58, %v5677_v54 }
 0x22b   : > { %1326 = vadd.xlane.f32.xlu0 %v1280_v18  ;;  %v4571_v27 = vpop.eup %4570  ;;  %v1281_v59 = vmul.f32 %v4569_v20, %v5677_v54  ;;  %v7123_v18 = vlaneseq }
 0x22c   : > { %v4573_v42 = vpop.eup %4572  ;;  %v1289_v7 = vmul.f32 %v4571_v27, %v5677_v54 }
 0x22d   : > { %v1296_v60 = vmul.f32 %v4573_v42, %v5677_v54  ;;  %v1395_v16 = vand.u32 127, %v7123_v18 }
 0x22e   : > { %1320 = vadd.xlane.f32.xlu1 %v1277_v0 }
 0x22f   : > { %1342 = vadd.xlane.f32.xlu0 %v1288_v3  ;;  %v1400_v22 = vadd.s32 4294967288, %v1395_v16 }
 0x231   : > { %v5803_v52 = vsub.s32 %v1400_v22, %v5553_v46 }
 0x232   : > { %1324 = vadd.xlane.f32.xlu1 %v1279_v56 }
 0x233   : > { %1346 = vadd.xlane.f32.xlu0 %v1290_v8  ;;  %v5810_v8 = vsub.s32 %v1395_v16, %v5553_v46 }
 0x236   : > { %1328 = vadd.xlane.f32.xlu1 %v1281_v59 }
 0x237   : > { %1350 = vadd.xlane.f32.xlu0 %v1292_v10 }
 0x23a   : > { %1344 = vadd.xlane.f32.xlu1 %v1289_v7 }
 0x23b   : > { %1354 = vadd.xlane.f32.xlu0 %v1294_v55 }
 0x23e   : > { %1348 = vadd.xlane.f32.xlu1 %v5716_v63 }
 0x23f   : > { %1358 = vadd.xlane.f32.xlu0 %v1296_v60 }
 0x242   : > { %1352 = vadd.xlane.f32.xlu1 %v5728_v30 }
 0x246   : > { %1356 = vadd.xlane.f32.xlu1 %v1295_v15 }
 0x24a   : > { %1360 = vadd.xlane.f32.xlu1 %v5722_v40 }
 0x290   : > { %v5767_v12 = vpop.xlane.xlu0 %1298 }
 0x291   : > { %v1399_v55 = vrot.slane %v5767_v12, %v5810_v8 }
 0x294   : > { %v5769_v5 = vpop.xlane.xlu0 %1300 }
 0x295   : > { %v1404_v10 = vrot.slane %v5769_v5, %v5803_v52 }
 0x297   : > { %v1406_v16 = vsel %vm1405_vm1, %v1404_v10, %v1399_v55 }
 0x298   : > { %v5771_v51 = vpop.xlane.xlu0 %1330 }
 0x299   : > { %v5775_v62 = vpop.xlane.xlu1 %1302 }
 0x29a   : > { %v1410_v56 = vrot.slane %v5775_v62, %v5810_v8 }
 0x29c   : > { %v5773_v32 = vpop.xlane.xlu0 %1306 }
 0x29d   : > { %v5779_v23 = vpop.xlane.xlu1 %1304  ;;  %v1419_v27 = vrot.slane %v5773_v32, %v5810_v8 }
 0x29e   : > { %v1414_v14 = vrot.slane %v5779_v23, %v5803_v52 }
 0x2a0   : > { %v5777_v54 = vpop.xlane.xlu0 %1314  ;;  %v1415_v42 = vsel %vm1405_vm1, %v1414_v14, %v1410_v56 }
 0x2a1   : > { %v5783_v30 = vpop.xlane.xlu1 %1332  ;;  %v1543_v48 = vsel %vm1542_vm2, %v1415_v42, %v1406_v16 }
 0x2a4   : > { %v5781_v63 = vpop.xlane.xlu0 %1334 }
 0x2a7   : > { %v5787_v40 = vpop.xlane.xlu1 %1308 }
 0x2a8   : > { %v5785_v15 = vpop.xlane.xlu0 %1338  ;;  %v1423_v58 = vrot.slane %v5787_v40, %v5803_v52 }
 0x2aa   : > { %v1424_v60 = vsel %vm1405_vm1, %v1423_v58, %v1419_v27 }
 0x2ab   : > { %v5791_v24 = vpop.xlane.xlu1 %1316  ;;  %v1545_v43 = vsel %vm1544_vm3, %v1424_v60, %v1543_v48 }
 0x2ac   : > { %v5789_v31 = vpop.xlane.xlu0 %1310  ;;  %v1441_v14 = vrot.slane %v5791_v24, %v5803_v52 }
 0x2ad   : > { %v1428_v7 = vrot.slane %v5789_v31, %v5810_v8 }
 0x2af   : > { %v5795_v26 = vpop.xlane.xlu1 %1336 }
 0x2b0   : > { %v5793_v34 = vpop.xlane.xlu0 %1318 }
 0x2b1   : > { %v1446_v58 = vrot.slane %v5793_v34, %v5810_v8 }
 0x2b3   : > { %v5800_v3 = vpop.xlane.xlu1 %1340 }
 0x2b4   : > { %v5798_v11 = vpop.xlane.xlu0 %1322 }
 0x2b5   : > { %v1455_v55 = vrot.slane %v5798_v11, %v5810_v8 }
 0x2b7   : > { %v5805_v19 = vpop.xlane.xlu1 %1312 }
 0x2b8   : > { %v5807_v0 = vpop.xlane.xlu0 %1326  ;;  %v1432_v20 = vrot.slane %v5805_v19, %v5803_v52 }
 0x2b9   : > { %v1464_v35 = vrot.slane %v5807_v0, %v5810_v8 }
 0x2ba   : > { %v1433_v22 = vsel %vm1405_vm1, %v1432_v20, %v1428_v7  ;;  %v1437_v20 = vrot.slane %v5777_v54, %v5810_v8 }
 0x2bb   : > { %v5824_v59 = vpop.xlane.xlu1 %1320  ;;  %v1547_v27 = vsel %vm1546_vm4, %v1433_v22, %v1545_v43 }
 0x2bc   : > { %v5832_v18 = vpop.xlane.xlu0 %1342  ;;  %v1450_v44 = vrot.slane %v5824_v59, %v5803_v52  ;;  %v1442_v48 = vsel %vm1405_vm1, %v1441_v14, %v1437_v20 }
 0x2bd   : > { %v1549_v22 = vsel %vm1548_vm5, %v1442_v48, %v1547_v27  ;;  %v1486_v27 = vrot.slane %v5795_v26, %v5803_v52 }
 0x2be   : > { %v1451_v42 = vsel %vm1405_vm1, %v1450_v44, %v1446_v58 }
 0x2bf   : > { %v5841_v56 = vpop.xlane.xlu1 %1324  ;;  %v1551_v44 = vsel %vm1550_vm6, %v1451_v42, %v1549_v22  ;;  %v1495_v42 = vrot.slane %v5800_v3, %v5803_v52 }
 0x2c0   : > { %v1459_v10 = vrot.slane %v5841_v56, %v5803_v52  ;;  %v5857_v60 = vpop.xlane.xlu0 %1346 }
 0x2c1   : > { %v1509_v47 = vrot.slane %v5857_v60, %v5810_v8 }
 0x2c2   : > { %v1460_v16 = vsel %vm1405_vm1, %v1459_v10, %v1455_v55 }
 0x2c3   : > { %v5855_v7 = vpop.xlane.xlu1 %1328  ;;  %v1553_v58 = vsel %vm1552_vm7, %v1460_v16, %v1551_v44  ;;  %v1477_v16 = vrot.slane %v5783_v30, %v5803_v52  ;;  %v1491_v44 = vrot.slane %v5785_v15, %v5810_v8 }
 0x2c4   : > { %v1468_v43 = vrot.slane %v5855_v7, %v5803_v52  ;;  %v5872_v28 = vpop.xlane.xlu0 %1350 }
 0x2c5   : > { %v1496_v36 = vsel %vm1405_vm1, %v1495_v42, %v1491_v44 }
 0x2c6   : > { %v1469_v14 = vsel %vm1405_vm1, %v1468_v43, %v1464_v35  ;;  %v1482_v43 = vrot.slane %v5781_v63, %v5810_v8 }
 0x2c7   : > { %v5868_v20 = vpop.xlane.xlu1 %1344  ;;  %v1555_v10 = vsel %vm1554_vm8, %v1469_v14, %v1553_v58  ;;  %v1473_v58 = vrot.slane %v5771_v51, %v5810_v8 }
 0x2c8   : > { %v1566_v55 = vsel %vm1565_vm9, %v1555_v10, -inf  ;;  %v5882_v48 = vpop.xlane.xlu0 %1354  ;;  %v1504_v22 = vrot.slane %v5868_v20, %v5803_v52  ;;  %v1487_v10 = vsel %vm1405_vm1, %v1486_v27, %v1482_v43  ;;  %v1518_v27 = vrot.slane %v5872_v28, %v5810_v8 }
 0x2c9   : > { %1567 = vmax.xlane.f32.xlu0 %v1566_v55  ;;  %v1500_v55 = vrot.slane %v5832_v18, %v5810_v8  ;;  %v1478_v50 = vsel %vm1405_vm1, %v1477_v16, %v1473_v58  ;;  %v1527_v42 = vrot.slane %v5882_v48, %v5810_v8 }
 0x2ca   : > { %v1556_v53 = vsel %vm1542_vm2, %v1487_v10, %v1478_v50 }
 0x2cb   : > { %v5874_v4 = vpop.xlane.xlu1 %1348  ;;  %v1505_v57 = vsel %vm1405_vm1, %v1504_v22, %v1500_v55  ;;  %v1557_v45 = vsel %vm1544_vm3, %v1496_v36, %v1556_v53 }
 0x2cc   : > { %v1513_v14 = vrot.slane %v5874_v4, %v5803_v52  ;;  %v5916_v44 = vpop.xlane.xlu0 %1358  ;;  %v1558_v22 = vsel %vm1546_vm4, %v1505_v57, %v1557_v45 }
 0x2cd   : > { %v1536_v50 = vrot.slane %v5916_v44, %v5810_v8 }
 0x2ce   : > { %v1514_v49 = vsel %vm1405_vm1, %v1513_v14, %v1509_v47 }
 0x2cf   : > { %v5880_v35 = vpop.xlane.xlu1 %1352  ;;  %v1559_v14 = vsel %vm1548_vm5, %v1514_v49, %v1558_v22  ;;  %v5944_v22 = vsub.s32 4, %v5553_v46 }
 0x2d0   : > { %v1522_v39 = vrot.slane %v5880_v35, %v5803_v52 }
 0x2d2   : > { %v1523_v16 = vsel %vm1405_vm1, %v1522_v39, %v1518_v27  ;;  %v5935_v39 = vsub.s32 2, %v5553_v46  ;;  %v5938_v27 = vsub.s32 3, %v5553_v46 }
 0x2d3   : > { %v5904_v1 = vpop.xlane.xlu1 %1356  ;;  %v1560_v10 = vsel %vm1550_vm6, %v1523_v16, %v1559_v14 }
 0x2d4   : > { %v1531_v43 = vrot.slane %v5904_v1, %v5803_v52 }
 0x2d6   : > { %v1532_v55 = vsel %vm1405_vm1, %v1531_v43, %v1527_v42 }
 0x2d7   : > { %v5921_v58 = vpop.xlane.xlu1 %1360  ;;  %v1561_v36 = vsel %vm1552_vm7, %v1532_v55, %v1560_v10 }
 0x2d8   : > { %v1540_v47 = vrot.slane %v5921_v58, %v5803_v52 }
 0x2da   : > { %v1541_v53 = vsel %vm1405_vm1, %v1540_v47, %v1536_v50 }
 0x2db   : > { %v1562_v45 = vsel %vm1554_vm8, %v1541_v53, %v1561_v36 }
 0x2dc   : > { %v1569_v57 = vsel %vm1565_vm9, %v1562_v45, -inf  ;;  %v5952_v45 = vsub.s32 5, %v5553_v46 }
 0x2dd   : > { %1570 = vmax.xlane.f32.xlu1 %v1569_v57 }
 0x356   : > { %v1568_v43 = vpop.xlane.xlu0 %1567 }
 0x357   : > { %v1577_v49 = vrot.slane %v1568_v43, %v5562_v38  ;;  %v1581_v42 = vrot.slane %v1568_v43, %v5572_v61  ;;  %v1585_v16 = vrot.slane %v1568_v43, %v5935_v39  ;;  %v1589_v55 = vrot.slane %v1568_v43, %v5938_v27 }
 0x358   : > { %v1593_v57 = vrot.slane %v1568_v43, %v5944_v22 }
 0x359   : > { %v1654_v50 = vsub.f32 %v5767_v12, %v1577_v49  ;;  %v1655_v47 = vsub.f32 %v5769_v5, %v1577_v49  ;;  %v1659_v14 = vsub.f32 %v5787_v40, %v1585_v16  ;;  %v1656_v10 = vsub.f32 %v5775_v62, %v1581_v42 }
 0x35a   : > { %v1661_v37 = vsub.f32 %v5805_v19, %v1589_v55  ;;  %v1657_v12 = vsub.f32 %v5779_v23, %v1581_v42  ;;  %v5958_v5 = vsub.s32 6, %v5553_v46  ;;  %v1597_v62 = vrot.slane %v1568_v43, %v5952_v45 }
 0x35b   : > { %v1686_v53 = vmul.f32 1.442695, %v1654_v50  ;;  %v1688_v36 = vmul.f32 1.442695, %v1655_v47  ;;  %v1696_v41 = vmul.f32 1.442695, %v1659_v14  ;;  %v1663_v49 = vsub.f32 %v5791_v24, %v1593_v57 }
 0x35c   : > { %v1690_v33 = vmul.f32 1.442695, %v1656_v10  ;;  %v1700_v40 = vmul.f32 1.442695, %v1661_v37  ;;  %v1692_v50 = vmul.f32 1.442695, %v1657_v12  ;;  %v1658_v47 = vsub.f32 %v5773_v32, %v1585_v16 }
 0x35d   : > { %4574 = vpow2.f32 %v1686_v53  ;;  %v5964_v14 = vsub.s32 7, %v5553_v46  ;;  %v1601_v19 = vrot.slane %v1568_v43, %v5958_v5  ;;  %v1704_v23 = vmul.f32 1.442695, %v1663_v49 }
 0x35e   : > { %4576 = vpow2.f32 %v1688_v36  ;;  %v1665_v42 = vsub.f32 %v5824_v59, %v1597_v62  ;;  %v1694_v10 = vmul.f32 1.442695, %v1658_v47 }
 0x35f   : > { %4578 = vpow2.f32 %v1696_v41  ;;  %v1660_v41 = vsub.f32 %v5789_v31, %v1589_v55  ;;  %v1667_v32 = vsub.f32 %v5841_v56, %v1601_v19  ;;  %v1662_v31 = vsub.f32 %v5777_v54, %v1593_v57 }
 0x360   : > { %4580 = vpow2.f32 %v1690_v33  ;;  %v1605_v33 = vrot.slane %v1568_v43, %v5964_v14  ;;  %v1708_v46 = vmul.f32 1.442695, %v1665_v42  ;;  %v1664_v54 = vsub.f32 %v5793_v34, %v1597_v62 }
 0x361   : > { %4582 = vpow2.f32 %v1700_v40  ;;  %v1698_v59 = vmul.f32 1.442695, %v1660_v41  ;;  %v1712_v56 = vmul.f32 1.442695, %v1667_v32  ;;  %v1702_v12 = vmul.f32 1.442695, %v1662_v31 }
 0x362   : > { %4584 = vpow2.f32 %v1692_v50  ;;  %v1669_v36 = vsub.f32 %v5855_v7, %v1605_v33  ;;  %v1706_v47 = vmul.f32 1.442695, %v1664_v54  ;;  %v1666_v34 = vsub.f32 %v5798_v11, %v1601_v19 }
 0x363   : > { %4586 = vpow2.f32 %v1704_v23  ;;  %v1668_v41 = vsub.f32 %v5807_v0, %v1605_v33 }
 0x364   : > { %4588 = vpow2.f32 %v1694_v10  ;;  %v1716_v50 = vmul.f32 1.442695, %v1669_v36  ;;  %v1710_v19 = vmul.f32 1.442695, %v1666_v34 }
 0x365   : > { %4590 = vpow2.f32 %v1708_v46 }
 0x366   : > { %4592 = vpow2.f32 %v1698_v59 }
 0x367   : > { %v5969_v37 = vpop.eup %4574  ;;  %4594 = vpow2.f32 %v1712_v56  ;;  %v1714_v56 = vmul.f32 1.442695, %v1668_v41 }
 0x368   : > { %v5971_v24 = vpop.eup %4576  ;;  %1783 = vperm.xlu0 %4486, %v5969_v37   ;;  %4596 = vpow2.f32 %v1702_v12 }
 0x369   : > { %1786 = vperm.xlu1 %4487, %v5971_v24   ;;  %v5980_v55 = vpop.eup %4578  ;;  %4598 = vpow2.f32 %v1716_v50 }
 0x36a   : > { %v5977_v16 = vpop.xlane.xlu1 %1570  ;;  %v5982_v53 = vpop.eup %4580  ;;  %4600 = vpow2.f32 %v1706_v47 }
 0x36b   : > { %v5987_v43 = vrot.slane %v5977_v16, %v5935_v39  ;;  %v5992_v57 = vpop.eup %4582  ;;  %v5999_v49 = vrot.slane %v5977_v16, %v5938_v27  ;;  %v6012_v42 = vrot.slane %v5977_v16, %v5944_v22  ;;  %v1609_v11 = vrot.slane %v5977_v16, %v5562_v38 }
 0x36c   : > { %1798 = vperm.xlu0 %4486, %v5980_v55   ;;  %v5994_v40 = vpop.eup %4584  ;;  %v6027_v59 = vrot.slane %v5977_v16, %v5952_v45  ;;  %v6040_v12 = vrot.slane %v5977_v16, %v5958_v5 }
 0x36d   : > { %1789 = vperm.xlu1 %4487, %v5982_v53   ;;  %v1675_v7 = vsub.f32 %v5800_v3, %v5987_v43  ;;  %v6005_v62 = vpop.eup %4586  ;;  %v1677_v3 = vsub.f32 %v5868_v20, %v5999_v49  ;;  %v1679_v31 = vsub.f32 %v5874_v4, %v6012_v42  ;;  %v1670_v0 = vsub.f32 %v5771_v51, %v1609_v11 }
 0x36e   : > { %v6007_v23 = vpop.eup %4588  ;;  %v1681_v4 = vsub.f32 %v5880_v35, %v6027_v59  ;;  %v1613_v51 = vrot.slane %v5977_v16, %v5572_v61 }
 0x36f   : > { %v1728_v10 = vmul.f32 1.442695, %v1675_v7  ;;  %v6020_v46 = vpop.eup %4590  ;;  %v1732_v20 = vmul.f32 1.442695, %v1677_v3  ;;  %v1736_v54 = vmul.f32 1.442695, %v1679_v31  ;;  %v1671_v7 = vsub.f32 %v5783_v30, %v1609_v11 }
 0x370   : > { %1804 = vperm.xlu0 %4486, %v5992_v57   ;;  %v6022_v32 = vpop.eup %4592  ;;  %v1718_v50 = vmul.f32 1.442695, %v1670_v0  ;;  %v1740_v35 = vmul.f32 1.442695, %v1681_v4  ;;  %v1683_v3 = vsub.f32 %v5904_v1, %v6040_v12  ;;  %v1672_v30 = vsub.f32 %v5781_v63, %v1613_v51 }
 0x371   : > { %1792 = vperm.xlu1 %4487, %v5994_v40   ;;  %4602 = vpow2.f32 %v1728_v10  ;;  %v6033_v33 = vpop.eup %4594  ;;  %v6055_v10 = vrot.slane %v5977_v16, %v5964_v14  ;;  %v1673_v1 = vsub.f32 %v5795_v26, %v1613_v51  ;;  %v1674_v4 = vsub.f32 %v5785_v15, %v5987_v43 }
 0x372   : > { %4604 = vpow2.f32 %v1710_v19  ;;  %v6035_v36 = vpop.eup %4596  ;;  %v1720_v19 = vmul.f32 1.442695, %v1671_v7  ;;  %v1744_v16 = vmul.f32 1.442695, %v1683_v3  ;;  %v1722_v31 = vmul.f32 1.442695, %v1672_v30 }
 0x373   : > { %4606 = vpow2.f32 %v1732_v20  ;;  %v6048_v47 = vpop.eup %4598  ;;  %v1685_v20 = vsub.f32 %v5921_v58, %v6055_v10  ;;  %v1726_v26 = vmul.f32 1.442695, %v1674_v4  ;;  %v1676_v51 = vsub.f32 %v5832_v18, %v5999_v49 }
 0x374   : > { %1810 = vperm.xlu0 %4486, %v6005_v62   ;;  %4608 = vpow2.f32 %v1714_v56  ;;  %v6050_v34 = vpop.eup %4600  ;;  %v1678_v43 = vsub.f32 %v5857_v60, %v6012_v42  ;;  %v1680_v49 = vsub.f32 %v5872_v28, %v6027_v59  ;;  %v1682_v42 = vsub.f32 %v5882_v48, %v6040_v12 }
 0x375   : > { %1795 = vperm.xlu1 %4487, %v6007_v23   ;;  %4610 = vpow2.f32 %v1736_v54  ;;  %v1748_v0 = vmul.f32 1.442695, %v1685_v20  ;;  %v1724_v54 = vmul.f32 1.442695, %v1673_v1  ;;  %v1730_v15 = vmul.f32 1.442695, %v1676_v51 }
 0x376   : > { %4612 = vpow2.f32 %v1718_v50  ;;  %v1734_v18 = vmul.f32 1.442695, %v1678_v43  ;;  %v1738_v60 = vmul.f32 1.442695, %v1680_v49  ;;  %v1684_v28 = vsub.f32 %v5916_v44, %v6055_v10 }
 0x377   : > { %4614 = vpow2.f32 %v1740_v35 }
 0x378   : > { %1816 = vperm.xlu0 %4486, %v6020_v46   ;;  %4616 = vpow2.f32 %v1720_v19  ;;  %v1746_v1 = vmul.f32 1.442695, %v1684_v28 }
 0x379   : > { %1801 = vperm.xlu1 %4487, %v6022_v32   ;;  %4618 = vpow2.f32 %v1744_v16 }
 0x37a   : > { %4620 = vpow2.f32 %v1722_v31  ;;  %v1742_v31 = vmul.f32 1.442695, %v1682_v42 }
 0x37b   : > { %v6061_v11 = vpop.eup %4602  ;;  %4622 = vpow2.f32 %v1748_v0 }
 0x37c   : > { %1822 = vperm.xlu0 %4486, %v6033_v33   ;;  %v6063_v41 = vpop.eup %4604  ;;  %4624 = vpow2.f32 %v1724_v54 }
 0x37d   : > { %1807 = vperm.xlu1 %4487, %v6035_v36   ;;  %v6070_v56 = vpop.eup %4606  ;;  %4626 = vpow2.f32 %v1726_v26 }
 0x37e   : > { %v6072_v63 = vpop.eup %4608  ;;  %4628 = vpow2.f32 %v1730_v15 }
 0x37f   : > { %v6078_v58 = vpop.eup %4610  ;;  %4630 = vpow2.f32 %v1734_v18 }
 0x380   : > { %1828 = vperm.xlu0 %4486, %v6048_v47   ;;  %v6080_v50 = vpop.eup %4612  ;;  %4632 = vpow2.f32 %v1738_v60 }
 0x381   : > { %1813 = vperm.xlu1 %4487, %v6050_v34   ;;  %v6086_v7 = vpop.eup %4614  ;;  %4634 = vpow2.f32 %v1742_v31 }
 0x382   : > { %v6088_v35 = vpop.eup %4616  ;;  %4636 = vpow2.f32 %v1746_v1 }
 0x383   : > { %v6094_v3 = vpop.eup %4618 }
 0x384   : > { %1846 = vperm.xlu0 %4486, %v6061_v11   ;;  %v6096_v19 = vpop.eup %4620 }
 0x385   : > { %1819 = vperm.xlu1 %4487, %v6063_v41   ;;  %v6102_v30 = vpop.eup %4622 }
 0x386   : > { %7124 = vst [vmem:[#allocation87_spill] sm:$0xff] %v6102_v30  ;;  %v6104_v16 = vpop.eup %4624 }
 0x387   : > { %v6110_v20 = vpop.eup %4626 }
 0x388   : > { %1852 = vperm.xlu0 %4486, %v6070_v56   ;;  %v6115_v59 = vpop.eup %4628 }
 0x389   : > { %1825 = vperm.xlu1 %4487, %v6072_v63   ;;  %v6118_v0 = vpop.eup %4630 }
 0x38a   : > { %v6121_v48 = vpop.eup %4632 }
 0x38b   : > { %v6124_v12 = vpop.eup %4634 }
 0x38c   : > { %1858 = vperm.xlu0 %4486, %v6078_v58   ;;  %v6127_v44 = vpop.eup %4636 }
 0x38d   : > { %1831 = vperm.xlu1 %4487, %v6080_v50   ;;  %7125 = vst [vmem:[#allocation88_spill] sm:$0xff] %v6127_v44 }
 0x390   : > { %1864 = vperm.xlu0 %4486, %v6086_v7  }
 0x391   : > { %1834 = vperm.xlu1 %4487, %v6088_v35  }
 0x394   : > { %1870 = vperm.xlu0 %4486, %v6094_v3  }
 0x395   : > { %1837 = vperm.xlu1 %4487, %v6096_v19  }
 0x398   : > { %1876 = vperm.xlu0 %4486, %v6102_v30  }
 0x399   : > { %1840 = vperm.xlu1 %4487, %v6104_v16  }
 0x39d   : > { %1843 = vperm.xlu1 %4487, %v6110_v20  }
 0x3a1   : > { %1849 = vperm.xlu1 %4487, %v6115_v59  }
 0x3a5   : > { %1855 = vperm.xlu1 %4487, %v6118_v0  }
 0x3a9   : > { %1861 = vperm.xlu1 %4487, %v6121_v48  }
 0x3ad   : > { %1867 = vperm.xlu1 %4487, %v6124_v12  }
 0x3b1   : > { %1873 = vperm.xlu1 %4487, %v6127_v44  }
 0x3e7   : > { %v1784_v10 = vpop.permute.xlu0 %1783 }
 0x3e8   : > { %v1787_v54 = vpop.permute.xlu1 %1786  ;;  %v1881_v25 = vrot.slane %v1784_v10, %v5810_v8 }
 0x3e9   : > { %v1885_v21 = vrot.slane %v1787_v54, %v5803_v52 }
 0x3eb   : > { %v1799_v4 = vpop.permute.xlu0 %1798  ;;  %v1886_v54 = vsel %vm1405_vm1, %v1885_v21, %v1881_v25 }
 0x3ec   : > { %v1790_v26 = vpop.permute.xlu1 %1789  ;;  %v1903_v9 = vrot.slane %v1799_v4, %v5803_v52 }
 0x3ed   : > { %v1890_v17 = vrot.slane %v1790_v26, %v5810_v8 }
 0x3ef   : > { %v1805_v51 = vpop.permute.xlu0 %1804 }
 0x3f0   : > { %v1793_v15 = vpop.permute.xlu1 %1792  ;;  %v1912_v6 = vrot.slane %v1805_v51, %v5803_v52 }
 0x3f1   : > { %v1894_v31 = vrot.slane %v1793_v15, %v5803_v52 }
 0x3f3   : > { %v1811_v43 = vpop.permute.xlu0 %1810  ;;  %v1895_v15 = vsel %vm1405_vm1, %v1894_v31, %v1890_v17 }
 0x3f4   : > { %v1796_v18 = vpop.permute.xlu1 %1795  ;;  %v1921_v30 = vrot.slane %v1811_v43, %v5803_v52 }
 0x3f5   : > { %v1899_v28 = vrot.slane %v1796_v18, %v5810_v8 }
 0x3f7   : > { %v1817_v60 = vpop.permute.xlu0 %1816  ;;  %v1904_v10 = vsel %vm1405_vm1, %v1903_v9, %v1899_v28 }
 0x3f8   : > { %v1802_v49 = vpop.permute.xlu1 %1801  ;;  %v1930_v26 = vrot.slane %v1817_v60, %v5803_v52 }
 0x3f9   : > { %v1908_v13 = vrot.slane %v1802_v49, %v5810_v8 }
 0x3fb   : > { %v1823_v1 = vpop.permute.xlu0 %1822  ;;  %v1913_v49 = vsel %vm1405_vm1, %v1912_v6, %v1908_v13 }
 0x3fc   : > { %v1808_v42 = vpop.permute.xlu1 %1807  ;;  %v1939_v51 = vrot.slane %v1823_v1, %v5803_v52 }
 0x3fd   : > { %v1917_v2 = vrot.slane %v1808_v42, %v5810_v8  ;;  %v2022_v42 = vsel %vm1542_vm2, %v1895_v15, %v1886_v54 }
 0x3fe   : > { %v2023_v43 = vsel %vm1544_vm3, %v1904_v10, %v2022_v42 }
 0x3ff   : > { %v1922_v17 = vsel %vm1405_vm1, %v1921_v30, %v1917_v2  ;;  %v2024_v31 = vsel %vm1546_vm4, %v1913_v49, %v2023_v43 }
 0x400   : > { %v1814_v29 = vpop.permute.xlu1 %1813 }
 0x401   : > { %v1926_v18 = vrot.slane %v1814_v29, %v5810_v8  ;;  %v1829_v29 = vpop.permute.xlu0 %1828 }
 0x402   : > { %v1948_v6 = vrot.slane %v1829_v29, %v5803_v52 }
 0x403   : > { %v1931_v9 = vsel %vm1405_vm1, %v1930_v26, %v1926_v18 }
 0x404   : > { %v1820_v44 = vpop.permute.xlu1 %1819 }
 0x405   : > { %v1935_v4 = vrot.slane %v1820_v44, %v5810_v8  ;;  %v2025_v44 = vsel %vm1548_vm5, %v1922_v17, %v2024_v31  ;;  %v1847_v18 = vpop.permute.xlu0 %1846 }
 0x406   : > { %v2026_v60 = vsel %vm1550_vm6, %v1931_v9, %v2025_v44  ;;  %v1975_v44 = vrot.slane %v1847_v18, %v5803_v52 }
 0x407   : > { %v1940_v25 = vsel %vm1405_vm1, %v1939_v51, %v1935_v4 }
 0x408   : > { %v1826_v21 = vpop.permute.xlu1 %1825  ;;  %v2027_v30 = vsel %vm1552_vm7, %v1940_v25, %v2026_v60 }
 0x409   : > { %v1944_v13 = vrot.slane %v1826_v21, %v5810_v8  ;;  %v1853_v26 = vpop.permute.xlu0 %1852 }
 0x40b   : > { %v1949_v2 = vsel %vm1405_vm1, %v1948_v6, %v1944_v13 }
 0x40c   : > { %v1832_v28 = vpop.permute.xlu1 %1831  ;;  %v2028_v1 = vsel %vm1554_vm8, %v1949_v2, %v2027_v30  ;;  %v1984_v2 = vrot.slane %v1853_v26, %v5803_v52 }
 0x40d   : > { %v2038_v15 = vsel %vm1565_vm9, %v2028_v1, 0.0  ;;  %v1859_v4 = vpop.permute.xlu0 %1858  ;;  %v1953_v30 = vrot.slane %v1832_v28, %v5810_v8 }
 0x40e   : > { %2039 = vadd.xlane.f32.xlu1 %v2038_v15 }
 0x410   : > { %v1835_v10 = vpop.permute.xlu1 %1834 }
 0x411   : > { %v1865_v17 = vpop.permute.xlu0 %1864  ;;  %v1957_v25 = vrot.slane %v1835_v10, %v5803_v52 }
 0x414   : > { %v1838_v54 = vpop.permute.xlu1 %1837 }
 0x415   : > { %v1871_v9 = vpop.permute.xlu0 %1870  ;;  %v1962_v6 = vrot.slane %v1838_v54, %v5810_v8  ;;  %v2002_v54 = vrot.slane %v1865_v17, %v5803_v52 }
 0x416   : > { %v2011_v26 = vrot.slane %v1871_v9, %v5803_v52 }
 0x418   : > { %v1841_v49 = vpop.permute.xlu1 %1840 }
 0x419   : > { %v1966_v43 = vrot.slane %v1841_v49, %v5803_v52  ;;  %v1993_v49 = vrot.slane %v1859_v4, %v5803_v52  ;;  %v1877_v28 = vpop.permute.xlu0 %1876 }
 0x41b   : > { %v1967_v1 = vsel %vm1405_vm1, %v1966_v43, %v1962_v6 }
 0x41c   : > { %v1844_v42 = vpop.permute.xlu1 %1843 }
 0x41d   : > { %v1971_v31 = vrot.slane %v1844_v42, %v5810_v8 }
 0x41f   : > { %v1976_v10 = vsel %vm1405_vm1, %v1975_v44, %v1971_v31 }
 0x420   : > { %v1850_v51 = vpop.permute.xlu1 %1849 }
 0x421   : > { %v1980_v13 = vrot.slane %v1850_v51, %v5810_v8  ;;  %v1958_v51 = vsel %vm1405_vm1, %v1957_v25, %v1953_v30 }
 0x422   : > { %v2029_v43 = vsel %vm1542_vm2, %v1967_v1, %v1958_v51 }
 0x423   : > { %v1985_v18 = vsel %vm1405_vm1, %v1984_v2, %v1980_v13  ;;  %v2030_v4 = vsel %vm1544_vm3, %v1976_v10, %v2029_v43  ;;  %v2020_v13 = vrot.slane %v1877_v28, %v5803_v52 }
 0x424   : > { %v1856_v29 = vpop.permute.xlu1 %1855  ;;  %v2031_v6 = vsel %vm1546_vm4, %v1985_v18, %v2030_v4 }
 0x425   : > { %v1989_v60 = vrot.slane %v1856_v29, %v5810_v8 }
 0x428   : > { %v1862_v21 = vpop.permute.xlu1 %1861 }
 0x429   : > { %v1998_v15 = vrot.slane %v1862_v21, %v5810_v8  ;;  %v1994_v21 = vsel %vm1405_vm1, %v1993_v49, %v1989_v60 }
 0x42a   : > { %v2032_v9 = vsel %vm1548_vm5, %v1994_v21, %v2031_v6 }
 0x42b   : > { %v2003_v31 = vsel %vm1405_vm1, %v2002_v54, %v1998_v15 }
 0x42c   : > { %v1868_v42 = vpop.permute.xlu1 %1867  ;;  %v2033_v2 = vsel %vm1550_vm6, %v2003_v31, %v2032_v9 }
 0x42d   : > { %v2007_v29 = vrot.slane %v1868_v42, %v5810_v8 }
 0x42f   : > { %v2012_v25 = vsel %vm1405_vm1, %v2011_v26, %v2007_v29 }
 0x430   : > { %v1874_v17 = vpop.permute.xlu1 %1873  ;;  %v2034_v60 = vsel %vm1552_vm7, %v2012_v25, %v2033_v2 }
 0x431   : > { %v2016_v44 = vrot.slane %v1874_v17, %v5810_v8 }
 0x433   : > { %v2021_v30 = vsel %vm1405_vm1, %v2020_v13, %v2016_v44 }
 0x434   : > { %v2035_v1 = vsel %vm1554_vm8, %v2021_v30, %v2034_v60 }
 0x435   : > { %v2041_v15 = vsel %vm1565_vm9, %v2035_v1, 0.0 }
 0x436   : > { %2042 = vadd.xlane.f32.xlu0 %v2041_v15 }
 0x49b   : > { %v2040_v49 = vpop.xlane.xlu1 %2039 }
 0x49c   : > { %4638 = vrcp.f32 %v2040_v49 }
 0x4a6   : > { %v4639_v10 = vpop.eup %4638 }
 0x4a7   : > { %v2051_v42 = vrot.slane %v4639_v10, %v5562_v38  ;;  %v2055_v18 = vrot.slane %v4639_v10, %v5572_v61  ;;  %v2059_v28 = vrot.slane %v4639_v10, %v5935_v39 }
 0x4a9   : > { %v2129_v54 = vmul.f32 %v5971_v24, %v2051_v42  ;;  %v2128_v51 = vmul.f32 %v5969_v37, %v2051_v42  ;;  %v2130_v29 = vmul.f32 %v5982_v53, %v2055_v18  ;;  %v2131_v26 = vmul.f32 %v5994_v40, %v2055_v18  ;;  %v7127_v42 = vld [vmem:[#allocation87_spill] sm:$0xff]  ;;  %v4506_v18 = vld [vmem:[#allocation10 + $0x20] sm:$0xff]  }
 0x4aa   : > { %v2132_v43 = vmul.f32 %v6007_v23, %v2059_v28  ;;  %v2133_v21 = vmul.f32 %v5980_v55, %v2059_v28  ;;  %v2063_v24 = vrot.slane %v4639_v10, %v5938_v27  ;;  %v2067_v53 = vrot.slane %v4639_v10, %v5944_v22  ;;  %v4509_v28 = vld [vmem:[#allocation10 + $0x38] sm:$0xff]  }
 0x4ab   : > { %2167 = vperm.xlu1 %4487, %v2129_v54   ;;  %2162 = vperm.xlu0 %4486, %v2128_v51   ;;  %v2071_v23 = vrot.slane %v4639_v10, %v5952_v45  ;;  %v4503_v51 = vld [vmem:[#allocation10 + $0x8] sm:$0xff]  }
 0x4ac   : > { %v2134_v37 = vmul.f32 %v6022_v32, %v2063_v24  ;;  %v2135_v4 = vmul.f32 %v5992_v57, %v2063_v24  ;;  %v2136_v40 = vmul.f32 %v6035_v36, %v2067_v53  ;;  %v2137_v31 = vmul.f32 %v6005_v62, %v2067_v53  ;;  %v7128_v24 = vld [vmem:[#allocation23_spill] sm:$0xff] }
 0x4ad   : > { %v2138_v55 = vmul.f32 %v6050_v34, %v2071_v23  ;;  %v2139_v6 = vmul.f32 %v6020_v46, %v2071_v23  ;;  %v2075_v32 = vrot.slane %v4639_v10, %v5958_v5  ;;  %v2079_v36 = vrot.slane %v4639_v10, %v5964_v14 }
 0x4af   : > { %2172 = vperm.xlu1 %4487, %v2130_v29   ;;  %2177 = vperm.xlu0 %4486, %v2131_v26   ;;  %v2140_v57 = vmul.f32 %v6063_v41, %v2075_v32  ;;  %v2141_v17 = vmul.f32 %v6033_v33, %v2075_v32  ;;  %v2142_v62 = vmul.f32 %v6072_v63, %v2079_v36  ;;  %v4507_v29 = vld [vmem:[#allocation10 + $0x28] sm:$0xff]   ;;  %v4508_v26 = vld [vmem:[#allocation10 + $0x30] sm:$0xff]  }
 0x4b0   : > { %v2143_v34 = vmul.f32 %v6048_v47, %v2079_v36 }
 0x4b3   : > { %2182 = vperm.xlu1 %4487, %v2132_v43   ;;  %2187 = vperm.xlu0 %4486, %v2133_v21  }
 0x4b7   : > { %2192 = vperm.xlu1 %4487, %v2134_v37   ;;  %2197 = vperm.xlu0 %4486, %v2135_v4   ;;  %v7129_v4 = vld [vmem:[#allocation21_spill] sm:$0xff] }
 0x4bb   : > { %2202 = vperm.xlu1 %4487, %v2136_v40   ;;  %2207 = vperm.xlu0 %4486, %v2137_v31  }
 0x4bf   : > { %2212 = vperm.xlu1 %4487, %v2138_v55   ;;  %2217 = vperm.xlu0 %4486, %v2139_v6   ;;  %v7130_v6 = vld [vmem:[#allocation26_spill] sm:$0xff] }
 0x4c3   : > { %v2043_v25 = vpop.xlane.xlu0 %2042  ;;  %2222 = vperm.xlu1 %4487, %v2140_v57   ;;  %2227 = vperm.xlu0 %4486, %v2141_v17   ;;  %v7131_v57 = vld [vmem:[#allocation29_spill] sm:$0xff] }
 0x4c4   : > { %4640 = vrcp.f32 %v2043_v25 }
 0x4c7   : > { %2232 = vperm.xlu1 %4487, %v2142_v62   ;;  %2237 = vperm.xlu0 %4486, %v2143_v34  }
 0x4ce   : > { %v4641_v46 = vpop.eup %4640 }
 0x4cf   : > { %v2083_v13 = vrot.slane %v4641_v46, %v5562_v38  ;;  %v2087_v33 = vrot.slane %v4641_v46, %v5572_v61  ;;  %v2091_v63 = vrot.slane %v4641_v46, %v5935_v39 }
 0x4d1   : > { %v2144_v44 = vmul.f32 %v6080_v50, %v2083_v13  ;;  %v2145_v41 = vmul.f32 %v6088_v35, %v2083_v13  ;;  %v2146_v9 = vmul.f32 %v6096_v19, %v2087_v33  ;;  %v2147_v2 = vmul.f32 %v6104_v16, %v2087_v33  ;;  %v7133_v33 = vld [vmem:[#allocation35_spill] sm:$0xff] }
 0x4d2   : > { %v2148_v47 = vmul.f32 %v6110_v20, %v2091_v63  ;;  %v2149_v30 = vmul.f32 %v6061_v11, %v2091_v63  ;;  %v2095_v50 = vrot.slane %v4641_v46, %v5938_v27  ;;  %v2099_v19 = vrot.slane %v4641_v46, %v5944_v22 }
 0x4d3   : > { %2242 = vperm.xlu1 %4487, %v2144_v44   ;;  %2247 = vperm.xlu0 %4486, %v2145_v41   ;;  %v2103_v20 = vrot.slane %v4641_v46, %v5952_v45  ;;  %v7132_v44 = vld [vmem:[#allocation32_spill] sm:$0xff] }
 0x4d4   : > { %v2150_v35 = vmul.f32 %v6115_v59, %v2095_v50  ;;  %v2151_v60 = vmul.f32 %v6070_v56, %v2095_v50  ;;  %v2152_v16 = vmul.f32 %v6118_v0, %v2099_v19  ;;  %v2153_v1 = vmul.f32 %v6078_v58, %v2099_v19  ;;  %v7126_v58 = vld [vmem:[#allocation88_spill] sm:$0xff]  ;;  %v7134_v19 = vld [vmem:[#allocation38_spill] sm:$0xff] }
 0x4d5   : > { %v2154_v11 = vmul.f32 %v6121_v48, %v2103_v20  ;;  %v2155_v15 = vmul.f32 %v6086_v7, %v2103_v20  ;;  %v2107_v59 = vrot.slane %v4641_v46, %v5958_v5  ;;  %v2111_v0 = vrot.slane %v4641_v46, %v5964_v14  ;;  %v4502_v48 = vld [vmem:[#allocation10] sm:$0xff]  }
 0x4d6   : > { %v5011_v7 = vmov 0.0  }
 0x4d7   : > { %2252 = vperm.xlu1 %4487, %v2146_v9   ;;  %2257 = vperm.xlu0 %4486, %v2147_v2   ;;  %v2156_v56 = vmul.f32 %v6124_v12, %v2107_v59  ;;  %v2157_v49 = vmul.f32 %v6094_v3, %v2107_v59  ;;  %v2158_v10 = vmul.f32 %v7126_v58, %v2111_v0  ;;  %v4504_v12 = vld [vmem:[#allocation10 + $0x10] sm:$0xff]   ;;  %v4505_v3 = vld [vmem:[#allocation10 + $0x18] sm:$0xff]  }
 0x4d8   : > { %v2159_v54 = vmul.f32 %v7127_v42, %v2111_v0  ;;  %4368 = vmatprep.subr.bf16.mxu1 %v5011_v7  ;;  %4384 = vmatprep.mubr.msk.bf16.mxu1 %vm5012_vm10, %v5011_v7  ;;  %v7136_v42 = vld [vmem:[#allocation44_spill] sm:$0xff] }
 0x4d9   : > { %4369 = vmatpush3.bf16.msra.mxu1 %v4502_v48  ;;  %v7137_v48 = vld [vmem:[#allocation47_spill] sm:$0xff] }
 0x4da   : > { %4370 = vmatprep.subr.bf16.mxu1 %v5011_v7 }
 0x4db   : > { %2262 = vperm.xlu1 %4487, %v2148_v47   ;;  %2267 = vperm.xlu0 %4486, %v2149_v30  }
 0x4dd   : > { %4371 = vmatpush3.bf16.msra.mxu1 %v4503_v51 }
 0x4de   : > { %4372 = vmatprep.subr.bf16.mxu1 %v5011_v7 }
 0x4df   : > { %2272 = vperm.xlu1 %4487, %v2150_v35   ;;  %2277 = vperm.xlu0 %4486, %v2151_v60  }
 0x4e1   : > { %4373 = vmatpush3.bf16.msra.mxu1 %v4504_v12 }
 0x4e2   : > { %4374 = vmatprep.subr.bf16.mxu1 %v5011_v7 }
 0x4e3   : > { %2282 = vperm.xlu1 %4487, %v2152_v16   ;;  %2287 = vperm.xlu0 %4486, %v2153_v1   ;;  %v7135_v1 = vld [vmem:[#allocation41_spill] sm:$0xff] }
 0x4e5   : > { %4375 = vmatpush3.bf16.msra.mxu1 %v4505_v3 }
 0x4e6   : > { %4376 = vmatprep.subr.bf16.mxu1 %v5011_v7 }
 0x4e7   : > { %2292 = vperm.xlu1 %4487, %v2154_v11   ;;  %2297 = vperm.xlu0 %4486, %v2155_v15  }
 0x4e9   : > { %4377 = vmatpush3.bf16.msra.mxu1 %v4506_v18 }
 0x4ea   : > { %4378 = vmatprep.subr.bf16.mxu1 %v5011_v7 }
 0x4eb   : > { %2302 = vperm.xlu1 %4487, %v2156_v56   ;;  %2307 = vperm.xlu0 %4486, %v2157_v49  }
 0x4ed   : > { %4379 = vmatpush3.bf16.msra.mxu1 %v4507_v29 }
 0x4ee   : > { %4380 = vmatprep.subr.bf16.mxu1 %v5011_v7 }
 0x4ef   : > { %2312 = vperm.xlu1 %4487, %v2158_v10   ;;  %2317 = vperm.xlu0 %4486, %v2159_v54  }
 0x4f1   : > { %4381 = vmatpush3.bf16.msra.mxu1 %v4508_v26 }
 0x4f2   : > { %4382 = vmatprep.subr.bf16.mxu1 %v5011_v7 }
 0x4f5   : > { %4383 = vmatpush3.bf16.msra.mxu1 %v4509_v28 }
 0x52a   : > { %v2168_v43 = vpop.permute.xlu1 %2167  ;;  %v2163_v21 = vpop.permute.xlu0 %2162 }
 0x52b   : > { %v2321_v37 = vmul.f32 %v2168_v43, %v7128_v24  ;;  %v2320_v53 = vmul.f32 %v2163_v21, %v7129_v4  ;;  %v7138_v4 = vld [vmem:[#allocation50_spill] sm:$0xff] }
 0x52d   : > { %v2352_v40 = vadd.f32 %v2321_v37, %v2320_v53 }
 0x52e   : > { %v2173_v31 = vpop.permute.xlu1 %2172  ;;  %v2178_v23 = vpop.permute.xlu0 %2177 }
 0x52f   : > { %v2353_v55 = vrot.slane %v2352_v40, 4  ;;  %v2322_v32 = vmul.f32 %v2173_v31, %v7130_v6  ;;  %v2323_v17 = vmul.f32 %v2178_v23, %v7131_v57  ;;  %v7139_v31 = vld [vmem:[#allocation53_spill] sm:$0xff] }
 0x531   : > { %v2354_v36 = vadd.f32 %v2353_v55, %v2352_v40  ;;  %v2359_v25 = vadd.f32 %v2323_v17, %v2322_v32 }
 0x532   : > { %v2183_v62 = vpop.permute.xlu1 %2182  ;;  %v2188_v34 = vpop.permute.xlu0 %2187 }
 0x533   : > { %v2355_v46 = vrot.slane %v2354_v36, 2  ;;  %v2360_v13 = vrot.slane %v2359_v25, 4  ;;  %v2324_v41 = vmul.f32 %v2183_v62, %v7132_v44  ;;  %v2325_v9 = vmul.f32 %v2188_v34, %v7133_v33  ;;  %v7140_v34 = vld [vmem:[#allocation56_spill] sm:$0xff] }
 0x535   : > { %v2356_v2 = vadd.f32 %v2355_v46, %v2354_v36  ;;  %v2361_v63 = vadd.f32 %v2360_v13, %v2359_v25  ;;  %v2366_v47 = vadd.f32 %v2325_v9, %v2324_v41  ;;  %v7141_v13 = vld [vmem:[#allocation59_spill] sm:$0xff] }
 0x536   : > { %v2193_v30 = vpop.permute.xlu1 %2192  ;;  %v2198_v50 = vpop.permute.xlu0 %2197 }
 0x537   : > { %v2362_v35 = vrot.slane %v2361_v63, 2  ;;  %v2367_v60 = vrot.slane %v2366_v47, 4  ;;  %v2326_v16 = vmul.f32 %v2193_v30, %v7134_v19  ;;  %v2327_v20 = vmul.f32 %v2198_v50, %v7135_v1  ;;  %v7142_v19 = vld [vmem:[#allocation62_spill] sm:$0xff]  ;;  %v7143_v1 = vld [vmem:[#allocation65_spill] sm:$0xff] }
 0x538   : > { %v2357_v11 = vrot.slane %v2356_v2, 1 }
 0x539   : > { %v2363_v15 = vadd.f32 %v2362_v35, %v2361_v63  ;;  %v2368_v59 = vadd.f32 %v2367_v60, %v2366_v47  ;;  %v2373_v56 = vadd.f32 %v2327_v20, %v2326_v16 }
 0x53a   : > { %v2203_v49 = vpop.permute.xlu1 %2202  ;;  %v2208_v0 = vpop.permute.xlu0 %2207  ;;  %v2358_v12 = vadd.f32 %v2357_v11, %v2356_v2 }
 0x53b   : > { %v2364_v58 = vrot.slane %v2363_v15, 1  ;;  %v2369_v10 = vrot.slane %v2368_v59, 2  ;;  %v2328_v54 = vmul.f32 %v2203_v49, %v7136_v42  ;;  %v2329_v7 = vmul.f32 %v2208_v0, %v7137_v48 }
 0x53c   : > { %v2374_v51 = vrot.slane %v2373_v56, 4 }
 0x53d   : > { %v2365_v3 = vadd.f32 %v2364_v58, %v2363_v15  ;;  %v2370_v18 = vadd.f32 %v2369_v10, %v2368_v59  ;;  %v2380_v29 = vadd.f32 %v2329_v7, %v2328_v54 }
 0x53e   : > { %v2375_v26 = vadd.f32 %v2374_v51, %v2373_v56  ;;  %v2213_v28 = vpop.permute.xlu1 %2212  ;;  %v2218_v43 = vpop.permute.xlu0 %2217 }
 0x53f   : > { %v2480_v21 = vsel %vm1542_vm2, %v2365_v3, %v2358_v12  ;;  %v2371_v24 = vrot.slane %v2370_v18, 1  ;;  %v2381_v37 = vrot.slane %v2380_v29, 4  ;;  %v2330_v53 = vmul.f32 %v2213_v28, %v7138_v4  ;;  %v7145_v4 = vld [vmem:[#allocation71_spill] sm:$0xff] }
 0x540   : > { %v2376_v40 = vrot.slane %v2375_v26, 2  ;;  %v2331_v23 = vmul.f32 %v2218_v43, %v7139_v31 }
 0x541   : > { %v2372_v55 = vadd.f32 %v2371_v24, %v2370_v18  ;;  %v2382_v6 = vadd.f32 %v2381_v37, %v2380_v29  ;;  %v7144_v24 = vld [vmem:[#allocation68_spill] sm:$0xff] }
 0x542   : > { %v2377_v32 = vadd.f32 %v2376_v40, %v2375_v26  ;;  %v2387_v57 = vadd.f32 %v2331_v23, %v2330_v53  ;;  %v2223_v17 = vpop.permute.xlu1 %2222  ;;  %v2228_v36 = vpop.permute.xlu0 %2227 }
 0x543   : > { %v2481_v25 = vsel %vm1544_vm3, %v2372_v55, %v2480_v21  ;;  %v2383_v62 = vrot.slane %v2382_v6, 2  ;;  %v2332_v46 = vmul.f32 %v2223_v17, %v7140_v34  ;;  %v2333_v44 = vmul.f32 %v2228_v36, %v7141_v13  ;;  %v7147_v36 = vld [vmem:[#allocation75_spill] sm:$0xff]  ;;  %v7148_v34 = vld [vmem:[#allocation74_spill] sm:$0xff] }
 0x544   : > { %v2378_v41 = vrot.slane %v2377_v32, 1  ;;  %v2388_v33 = vrot.slane %v2387_v57, 4 }
 0x545   : > { %v2384_v9 = vadd.f32 %v2383_v62, %v2382_v6  ;;  %v2394_v2 = vadd.f32 %v2333_v44, %v2332_v46 }
 0x546   : > { %v2379_v63 = vadd.f32 %v2378_v41, %v2377_v32  ;;  %v2389_v47 = vadd.f32 %v2388_v33, %v2387_v57  ;;  %v2233_v30 = vpop.permute.xlu1 %2232  ;;  %v2238_v50 = vpop.permute.xlu0 %2237  ;;  %v7146_v57 = vld [vmem:[#allocation73_spill] sm:$0xff] }
 0x547   : > { %v2385_v35 = vrot.slane %v2384_v9, 1  ;;  %v2395_v60 = vrot.slane %v2394_v2, 4  ;;  %v2334_v16 = vmul.f32 %v2233_v30, %v7142_v19  ;;  %v2335_v20 = vmul.f32 %v2238_v50, %v7143_v1  ;;  %v7151_v30 = vld [vmem:[#allocation78_spill] sm:$0xff] }
 0x548   : > { %v2482_v11 = vsel %vm1546_vm4, %v2379_v63, %v2481_v25  ;;  %v2390_v15 = vrot.slane %v2389_v47, 2  ;;  %v7150_v63 = vld [vmem:[#allocation77_spill] sm:$0xff] }
 0x549   : > { %v2386_v59 = vadd.f32 %v2385_v35, %v2384_v9  ;;  %v2396_v56 = vadd.f32 %v2395_v60, %v2394_v2  ;;  %v2401_v49 = vadd.f32 %v2335_v20, %v2334_v16 }
 0x54a   : > { %v2391_v0 = vadd.f32 %v2390_v15, %v2389_v47  ;;  %v7152_v15 = vld [vmem:[#allocation79_spill] sm:$0xff] }
 0x54b   : > { %v2483_v58 = vsel %vm1548_vm5, %v2386_v59, %v2482_v11  ;;  %v2397_v10 = vrot.slane %v2396_v56, 2  ;;  %v2402_v42 = vrot.slane %v2401_v49, 4 }
 0x54c   : > { %v2392_v54 = vrot.slane %v2391_v0, 1 }
 0x54d   : > { %v2398_v48 = vadd.f32 %v2397_v10, %v2396_v56  ;;  %v2403_v7 = vadd.f32 %v2402_v42, %v2401_v49  ;;  %v7153_v56 = vld [vmem:[#allocation80_spill] sm:$0xff] }
 0x54e   : > { %v2393_v51 = vadd.f32 %v2392_v54, %v2391_v0 }
 0x54f   : > { %v2399_v12 = vrot.slane %v2398_v48, 1  ;;  %v2404_v3 = vrot.slane %v2403_v7, 2 }
 0x550   : > { %v2484_v18 = vsel %vm1550_vm6, %v2393_v51, %v2483_v58 }
 0x551   : > { %v2400_v29 = vadd.f32 %v2399_v12, %v2398_v48  ;;  %v2405_v26 = vadd.f32 %v2404_v3, %v2403_v7  ;;  %v7154_v12 = vld [vmem:[#allocation81_spill] sm:$0xff] }
 0x552   : > { %v2243_v28 = vpop.permute.xlu1 %2242  ;;  %v2248_v43 = vpop.permute.xlu0 %2247 }
 0x553   : > { %v2406_v21 = vrot.slane %v2405_v26, 1  ;;  %v2336_v37 = vmul.f32 %v2243_v28, %v7144_v24  ;;  %v2337_v53 = vmul.f32 %v2248_v43, %v7145_v4  ;;  %v2485_v40 = vsel %vm1552_vm7, %v2400_v29, %v2484_v18  ;;  %v7155_v18 = vld [vmem:[#allocation82_spill] sm:$0xff] }
 0x555   : > { %v2407_v31 = vadd.f32 %v2406_v21, %v2405_v26  ;;  %v2408_v23 = vadd.f32 %v2337_v53, %v2336_v37 }
 0x556   : > { %v2253_v55 = vpop.permute.xlu1 %2252  ;;  %v2258_v6 = vpop.permute.xlu0 %2257 }
 0x557   : > { %v2409_v32 = vrot.slane %v2408_v23, 4  ;;  %v2338_v17 = vmul.f32 %v2253_v55, %v7146_v57  ;;  %v2339_v25 = vmul.f32 %v2258_v6, %v7147_v36  ;;  %v2486_v62 = vsel %vm1554_vm8, %v2407_v31, %v2485_v40  ;;  %v7156_v55 = vld [vmem:[#allocation83_spill] sm:$0xff]  ;;  %v7157_v57 = vld [vmem:[#allocation84_spill] sm:$0xff] }
 0x558   : > { %v6270_v46 = vadd.f32 %v2486_v62, %v7148_v34 }
 0x559   : > { %v2410_v13 = vadd.f32 %v2409_v32, %v2408_v23  ;;  %v2415_v44 = vadd.f32 %v2339_v25, %v2338_v17 }
 0x55a   : > { %7149 = vst [vmem:[#allocation88_spill] sm:$0xff] %v6270_v46  ;;  %v2263_v41 = vpop.permute.xlu1 %2262  ;;  %v2268_v33 = vpop.permute.xlu0 %2267 }
 0x55b   : > { %v2411_v9 = vrot.slane %v2410_v13, 2  ;;  %v2416_v2 = vrot.slane %v2415_v44, 4  ;;  %v2340_v47 = vmul.f32 %v2263_v41, %v7150_v63  ;;  %v2341_v50 = vmul.f32 %v2268_v33, %v7151_v30  ;;  %v7159_v63 = vld [vmem:[#allocation86_spill] sm:$0xff] }
 0x55d   : > { %v2412_v35 = vadd.f32 %v2411_v9, %v2410_v13  ;;  %v2417_v60 = vadd.f32 %v2416_v2, %v2415_v44  ;;  %v2422_v19 = vadd.f32 %v2341_v50, %v2340_v47  ;;  %v7158_v9 = vld [vmem:[#allocation85_spill] sm:$0xff] }
 0x55e   : > { %v2273_v16 = vpop.permute.xlu1 %2272  ;;  %v2278_v1 = vpop.permute.xlu0 %2277 }
 0x55f   : > { %v2418_v20 = vrot.slane %v2417_v60, 2  ;;  %v2423_v11 = vrot.slane %v2422_v19, 4  ;;  %v2342_v59 = vmul.f32 %v2273_v16, %v7152_v15  ;;  %v2343_v49 = vmul.f32 %v2278_v1, %v7153_v56 }
 0x560   : > { %v2413_v0 = vrot.slane %v2412_v35, 1 }
 0x561   : > { %v2419_v58 = vadd.f32 %v2418_v20, %v2417_v60  ;;  %v2424_v10 = vadd.f32 %v2423_v11, %v2422_v19  ;;  %v2429_v42 = vadd.f32 %v2343_v49, %v2342_v59  ;;  %v7160_v59 = vld [vmem:[#allocation20_spill] sm:$0xff]  ;;  %v7161_v49 = vld [vmem:[#allocation22_spill] sm:$0xff] }
 0x562   : > { %v2283_v54 = vpop.permute.xlu1 %2282  ;;  %v2288_v48 = vpop.permute.xlu0 %2287  ;;  %v2414_v28 = vadd.f32 %v2413_v0, %v2412_v35 }
 0x563   : > { %v2420_v7 = vrot.slane %v2419_v58, 1  ;;  %v2425_v51 = vrot.slane %v2424_v10, 2  ;;  %v2344_v3 = vmul.f32 %v2283_v54, %v7154_v12  ;;  %v2345_v29 = vmul.f32 %v2288_v48, %v7155_v18 }
 0x564   : > { %v2430_v26 = vrot.slane %v2429_v42, 4 }
 0x565   : > { %v2421_v43 = vadd.f32 %v2420_v7, %v2419_v58  ;;  %v2426_v21 = vadd.f32 %v2425_v51, %v2424_v10  ;;  %v2436_v24 = vadd.f32 %v2345_v29, %v2344_v3 }
 0x566   : > { %v2431_v37 = vadd.f32 %v2430_v26, %v2429_v42  ;;  %v2293_v4 = vpop.permute.xlu1 %2292  ;;  %v2298_v53 = vpop.permute.xlu0 %2297 }
 0x567   : > { %v2487_v40 = vsel %vm1542_vm2, %v2421_v43, %v2414_v28  ;;  %v2427_v31 = vrot.slane %v2426_v21, 1  ;;  %v2437_v23 = vrot.slane %v2436_v24, 4  ;;  %v2346_v6 = vmul.f32 %v2293_v4, %v7156_v55  ;;  %v7162_v55 = vld [vmem:[#allocation76_spill] sm:$0xff] }
 0x568   : > { %v2432_v32 = vrot.slane %v2431_v37, 2  ;;  %v2347_v17 = vmul.f32 %v2298_v53, %v7157_v57  ;;  %v4286_v57 = vld [vmem:[%s6979_s7] ss:$0 sm:$0xff] }
 0x569   : > { %v2428_v36 = vadd.f32 %v2427_v31, %v2426_v21  ;;  %v2438_v25 = vadd.f32 %v2437_v23, %v2436_v24 }
 0x56a   : > { %v2433_v62 = vadd.f32 %v2432_v32, %v2431_v37  ;;  %v2443_v34 = vadd.f32 %v2347_v17, %v2346_v6  ;;  %v2303_v13 = vpop.permute.xlu1 %2302  ;;  %v2308_v44 = vpop.permute.xlu0 %2307 }
 0x56b   : > { %v2488_v41 = vsel %vm1544_vm3, %v2428_v36, %v2487_v40  ;;  %v2439_v33 = vrot.slane %v2438_v25, 2  ;;  %v2348_v2 = vmul.f32 %v2303_v13, %v7158_v9  ;;  %v2349_v47 = vmul.f32 %v2308_v44, %v7159_v63  ;;  %v7164_v13 = vld [vmem:[#allocation72_spill] sm:$0xff] }
 0x56c   : > { %v2434_v30 = vrot.slane %v2433_v62, 1  ;;  %v2444_v50 = vrot.slane %v2443_v34, 4 }
 0x56d   : > { %v2440_v35 = vadd.f32 %v2439_v33, %v2438_v25  ;;  %v2450_v60 = vadd.f32 %v2349_v47, %v2348_v2 }
 0x56e   : > { %v2435_v19 = vadd.f32 %v2434_v30, %v2433_v62  ;;  %v2445_v16 = vadd.f32 %v2444_v50, %v2443_v34  ;;  %v2313_v1 = vpop.permute.xlu1 %2312  ;;  %v2318_v20 = vpop.permute.xlu0 %2317 }
 0x56f   : > { %v2441_v11 = vrot.slane %v2440_v35, 1  ;;  %v2451_v15 = vrot.slane %v2450_v60, 4  ;;  %v2350_v56 = vmul.f32 %v2313_v1, %v7160_v59  ;;  %v2351_v0 = vmul.f32 %v2318_v20, %v7161_v49 }
 0x570   : > { %v2489_v58 = vsel %vm1546_vm4, %v2435_v19, %v2488_v41  ;;  %v2446_v10 = vrot.slane %v2445_v16, 2 }
 0x571   : > { %v2442_v42 = vadd.f32 %v2441_v11, %v2440_v35  ;;  %v2452_v54 = vadd.f32 %v2451_v15, %v2450_v60  ;;  %v2457_v48 = vadd.f32 %v2351_v0, %v2350_v56 }
 0x572   : > { %v2447_v7 = vadd.f32 %v2446_v10, %v2445_v16  ;;  %v7165_v10 = vld [vmem:[#allocation25_spill] sm:$0xff] }
 0x573   : > { %v2490_v51 = vsel %vm1548_vm5, %v2442_v42, %v2489_v58  ;;  %v2453_v12 = vrot.slane %v2452_v54, 2  ;;  %v2458_v3 = vrot.slane %v2457_v48, 4 }
 0x574   : > { %v2448_v18 = vrot.slane %v2447_v7, 1 }
 0x575   : > { %v2454_v29 = vadd.f32 %v2453_v12, %v2452_v54  ;;  %v2459_v26 = vadd.f32 %v2458_v3, %v2457_v48  ;;  %v7166_v54 = vld [vmem:[#allocation28_spill] sm:$0xff] }
 0x576   : > { %v2449_v28 = vadd.f32 %v2448_v18, %v2447_v7  ;;  %v7167_v18 = vld [vmem:[#allocation24_spill] sm:$0xff] }
 0x577   : > { %v2455_v43 = vrot.slane %v2454_v29, 1  ;;  %v2460_v21 = vrot.slane %v2459_v26, 2 }
 0x578   : > { %v2491_v24 = vsel %vm1550_vm6, %v2449_v28, %v2490_v51 }
 0x579   : > { %v2456_v37 = vadd.f32 %v2455_v43, %v2454_v29  ;;  %v2461_v4 = vadd.f32 %v2460_v21, %v2459_v26  ;;  %v7168_v26 = vld [vmem:[#allocation27_spill] sm:$0xff] }
 0x57a   : > { %v7169_v43 = vld [vmem:[#allocation31_spill] sm:$0xff] }
 0x57b   : > { %v2462_v53 = vrot.slane %v2461_v4, 1  ;;  %v2492_v40 = vsel %vm1552_vm7, %v2456_v37, %v2491_v24  ;;  %v7170_v24 = vld [vmem:[#allocation34_spill] sm:$0xff] }
 0x57d   : > { %v2463_v31 = vadd.f32 %v2462_v53, %v2461_v4  ;;  %v7171_v53 = vld [vmem:[#allocation30_spill] sm:$0xff] }
 0x57f   : > { %v2493_v23 = vsel %vm1554_vm8, %v2463_v31, %v2492_v40  ;;  %v7172_v31 = vld [vmem:[#allocation33_spill] sm:$0xff] }
 0x580   : > { %v6292_v6 = vadd.f32 %v2493_v23, %v7162_v55  ;;  %v7173_v55 = vld [vmem:[#allocation37_spill] sm:$0xff] }
 0x582   : > { %7163 = vst [vmem:[#allocation87_spill] sm:$0xff] %v6292_v6  ;;  %v2498_v32 = vpack.c.bf16 %v6292_v6, %v6270_v46  ;;  %v7187_v6 = vld [vmem:[#allocation54_spill] sm:$0xff] }
 0x584   : > { %4385 = vmatmul.mubr.bf16.vlgmr.msra.gmra.mrb[40].mxu1 %v2498_v32 }
 0x657   : > { %v2604_v17 = vpop.f32.mrb[40].mxu1 }
 0x658   : > { %v2605_v36 = vadd.f32 %v4286_v57, %v2604_v17  ;;  %v4386_v25 = vpop.f32.mrb[41].mxu1 }
 0x659   : > { %v2607_v62 = vpop.f32.mrb[42].mxu1 }
 0x65a   : > { %v2613_v34 = vcombine.high %v2605_v36, %v2605_v36  ;;  %v2620_v44 = vrot.slane %v2605_v36, %v7164_v13  ;;  %v2608_v41 = vadd.f32 %v4286_v57, %v2607_v62  ;;  %v4387_v33 = vpop.f32.mrb[43].mxu1  ;;  %v7174_v57 = vld [vmem:[#allocation40_spill] sm:$0xff]  ;;  %v7176_v62 = vld [vmem:[#allocation39_spill] sm:$0xff] }
 0x65b   : > { %v7175_v36 = vld [vmem:[#allocation36_spill] sm:$0xff]  ;;  %v7178_v33 = vld [vmem:[#allocation46_spill] sm:$0xff] }
 0x65c   : > { %v2627_v9 = vrot.slane %v2613_v34, %v7164_v13  ;;  %v2628_v2 = vcombine.high %v2620_v44, %v2620_v44  ;;  %v2636_v63 = vrot.slane %v2620_v44, %v7164_v13  ;;  %v2662_v47 = vcombine.high %v2608_v41, %v2608_v41  ;;  %v7177_v44 = vld [vmem:[#allocation43_spill] sm:$0xff] }
 0x65d   : > { %v2669_v30 = vrot.slane %v2608_v41, %v7164_v13 }
 0x65e   : > { %v2629_v50 = vcombine.high %v2627_v9, %v2627_v9  ;;  %v2643_v35 = vrot.slane %v2627_v9, %v7164_v13  ;;  %v2650_v60 = vrot.slane %v2628_v2, %v7164_v13  ;;  %v2658_v19 = vcombine.high %v2636_v63, %v2636_v63  ;;  %v7179_v2 = vld [vmem:[#allocation42_spill] sm:$0xff] }
 0x65f   : > { %v2714_v16 = vrot.slane %v2636_v63, %v5562_v38  ;;  %v2676_v1 = vrot.slane %v2662_v47, %v7164_v13  ;;  %v2677_v20 = vcombine.high %v2669_v30, %v2669_v30  ;;  %v2685_v11 = vrot.slane %v2669_v30, %v7164_v13  ;;  %v7180_v47 = vld [vmem:[#allocation45_spill] sm:$0xff] }
 0x660   : > { %v2657_v15 = vrot.slane %v2629_v50, %v7164_v13  ;;  %v2659_v59 = vcombine.high %v2643_v35, %v2643_v35  ;;  %v2660_v56 = vcombine.high %v2650_v60, %v2650_v60  ;;  %v2718_v49 = vrot.slane %v2650_v60, %v5562_v38 }
 0x661   : > { %v2722_v0 = vrot.slane %v2658_v19, %v5562_v38  ;;  %v2730_v58 = vrot.slane %v2643_v35, %v5562_v38  ;;  %v2791_v42 = vadd.f32 %v2714_v16, %v7165_v10  ;;  %v2792_v48 = vadd.f32 %v2714_v16, %v7166_v54 }
 0x662   : > { %v2661_v7 = vcombine.high %v2657_v15, %v2657_v15  ;;  %v2726_v51 = vrot.slane %v2660_v56, %v5562_v38  ;;  %v2734_v12 = vrot.slane %v2657_v15, %v5562_v38  ;;  %v2738_v3 = vrot.slane %v2659_v59, %v5562_v38 }
 0x663   : > { %v2793_v29 = vadd.f32 %v7167_v18, %v2718_v49  ;;  %v2794_v28 = vadd.f32 %v7168_v26, %v2718_v49  ;;  %v2795_v21 = vadd.f32 %v2722_v0, %v7169_v43  ;;  %v2796_v37 = vadd.f32 %v2722_v0, %v7170_v24 }
 0x664   : > { %v2742_v4 = vrot.slane %v2661_v7, %v5562_v38  ;;  %v6323_v40 = vadd.f32 %v7171_v53, %v2726_v51  ;;  %v6326_v23 = vadd.f32 %v7172_v31, %v2726_v51  ;;  %v2799_v32 = vadd.f32 %v2730_v58, %v7173_v55  ;;  %v7181_v7 = vld [vmem:[#allocation49_spill] sm:$0xff]  ;;  %v7182_v51 = vld [vmem:[#allocation52_spill] sm:$0xff] }
 0x665   : > { %v2800_v17 = vadd.f32 %v2730_v58, %v7174_v57  ;;  %v6331_v25 = vadd.f32 %v7175_v36, %v2734_v12  ;;  %v6334_v34 = vadd.f32 %v7176_v62, %v2734_v12  ;;  %v6337_v41 = vadd.f32 %v2738_v3, %v7177_v44 }
 0x666   : > { %v6340_v9 = vadd.f32 %v2738_v3, %v7178_v33  ;;  %v6343_v63 = vadd.f32 %v7179_v2, %v2742_v4  ;;  %v6346_v30 = vadd.f32 %v7180_v47, %v2742_v4  ;;  %4642 = vtanh.f32 %v2791_v42  ;;  %v7183_v3 = vld [vmem:[#allocation48_spill] sm:$0xff] }
 0x667   : > { %4644 = vtanh.f32 %v2792_v48  ;;  %v2678_v50 = vcombine.high %v2676_v1, %v2676_v1  ;;  %v2692_v35 = vrot.slane %v2676_v1, %v7164_v13  ;;  %v2699_v60 = vrot.slane %v2677_v20, %v7164_v13  ;;  %v7190_v47 = vld [vmem:[#allocation64_spill] sm:$0xff] }
 0x668   : > { %4646 = vtanh.f32 %v2793_v29  ;;  %v2707_v19 = vcombine.high %v2685_v11, %v2685_v11  ;;  %v2746_v16 = vrot.slane %v2685_v11, %v5562_v38 }
 0x669   : > { %4648 = vtanh.f32 %v2794_v28  ;;  %v2706_v15 = vrot.slane %v2678_v50, %v7164_v13  ;;  %v2708_v59 = vcombine.high %v2692_v35, %v2692_v35  ;;  %v2709_v56 = vcombine.high %v2699_v60, %v2699_v60  ;;  %v7184_v28 = vld [vmem:[#allocation51_spill] sm:$0xff] }
 0x66a   : > { %v2750_v49 = vrot.slane %v2699_v60, %v5562_v38  ;;  %v2754_v0 = vrot.slane %v2707_v19, %v5562_v38  ;;  %v2762_v1 = vrot.slane %v2692_v35, %v5562_v38  ;;  %v2807_v11 = vadd.f32 %v2746_v16, %v7181_v7  ;;  %v7185_v50 = vld [vmem:[#allocation55_spill] sm:$0xff]  ;;  %v7186_v19 = vld [vmem:[#allocation58_spill] sm:$0xff] }
 0x66b   : > { %v2710_v58 = vcombine.high %v2706_v15, %v2706_v15  ;;  %v2758_v42 = vrot.slane %v2709_v56, %v5562_v38  ;;  %v2766_v20 = vrot.slane %v2706_v15, %v5562_v38  ;;  %v2770_v48 = vrot.slane %v2708_v59, %v5562_v38  ;;  %v7188_v15 = vld [vmem:[#allocation57_spill] sm:$0xff] }
 0x66c   : > { %v2808_v12 = vadd.f32 %v2746_v16, %v7182_v51  ;;  %v2809_v29 = vadd.f32 %v7183_v3, %v2750_v49  ;;  %v2810_v4 = vadd.f32 %v7184_v28, %v2750_v49  ;;  %v2811_v60 = vadd.f32 %v2754_v0, %v7185_v50  ;;  %v7189_v59 = vld [vmem:[#allocation61_spill] sm:$0xff]  ;;  %v7191_v28 = vld [vmem:[#allocation60_spill] sm:$0xff] }
 0x66d   : > { %v2774_v13 = vrot.slane %v2710_v58, %v5562_v38  ;;  %v2812_v56 = vadd.f32 %v2754_v0, %v7186_v19  ;;  %v6366_v35 = vadd.f32 %v7187_v6, %v2758_v42  ;;  %v6369_v46 = vadd.f32 %v7188_v15, %v2758_v42  ;;  %v6376_v58 = vld [vmem:[%s6980_s8] ss:$0 sm:$0xff]  ;;  %v7192_v0 = vld [vmem:[#allocation63_spill] sm:$0xff]  ;;  %v7196_v51 = vld [vmem:[#allocation69_spill] sm:$0xff] }
 0x66e   : > { %v2815_v7 = vadd.f32 %v2762_v1, %v7189_v59  ;;  %v2816_v16 = vadd.f32 %v2762_v1, %v7190_v47  ;;  %v6379_v50 = vadd.f32 %v7191_v28, %v2766_v20  ;;  %v6382_v19 = vadd.f32 %v7192_v0, %v2766_v20  ;;  %v7193_v6 = vld [vmem:[#allocation67_spill] sm:$0xff]  ;;  %v7194_v15 = vld [vmem:[#allocation70_spill] sm:$0xff] }
 0x66f   : > { %v6385_v3 = vadd.f32 %v2770_v48, %v7193_v6  ;;  %v6388_v59 = vadd.f32 %v2770_v48, %v7194_v15  ;;  %v7195_v1 = vld [vmem:[#allocation66_spill] sm:$0xff]  ;;  %v2822_v2 = vadd.f32 %v7196_v51, %v2774_v13  ;;  %4650 = vtanh.f32 %v2807_v11 }
 0x670   : > { %v4643_v49 = vpop.eup %4642  ;;  %v2821_v47 = vadd.f32 %v7195_v1, %v2774_v13  ;;  %4652 = vtanh.f32 %v2808_v12 }
 0x671   : > { %v4645_v42 = vpop.eup %4644  ;;  %v2862_v28 = vmul.f32 %v4643_v49, %v6376_v58  ;;  %4654 = vtanh.f32 %v2795_v21 }
 0x672   : > { %v4647_v33 = vpop.eup %4646  ;;  %v2863_v44 = vmul.f32 %v4645_v42, %v6376_v58  ;;  %4656 = vtanh.f32 %v2796_v37 }
 0x673   : > { %v4649_v62 = vpop.eup %4648  ;;  %2894 = vadd.xlane.f32.xlu1 %v2862_v28  ;;  %v2864_v48 = vmul.f32 %v4647_v33, %v6376_v58  ;;  %4658 = vtanh.f32 %v2799_v32 }
 0x674   : > { %2896 = vadd.xlane.f32.xlu0 %v2863_v44  ;;  %v2865_v20 = vmul.f32 %v4649_v62, %v6376_v58  ;;  %4660 = vtanh.f32 %v2800_v17 }
 0x675   : > { %4662 = vtanh.f32 %v2809_v29 }
 0x676   : > { %4664 = vtanh.f32 %v2810_v4 }
 0x677   : > { %2900 = vadd.xlane.f32.xlu1 %v2865_v20  ;;  %4666 = vtanh.f32 %v2811_v60 }
 0x678   : > { %2898 = vadd.xlane.f32.xlu0 %v2864_v48  ;;  %4668 = vtanh.f32 %v2812_v56 }
 0x679   : > { %v4651_v13 = vpop.eup %4650  ;;  %4670 = vtanh.f32 %v2822_v2 }
 0x67a   : > { %v4653_v42 = vpop.eup %4652  ;;  %v2878_v49 = vmul.f32 %v4651_v13, %v6376_v58  ;;  %4672 = vtanh.f32 %v2821_v47 }
 0x67b   : > { %v4655_v11 = vpop.eup %4654  ;;  %v2879_v44 = vmul.f32 %v4653_v42, %v6376_v58  ;;  %4674 = vtanh.f32 %v6323_v40 }
 0x67c   : > { %v4657_v12 = vpop.eup %4656  ;;  %2926 = vadd.xlane.f32.xlu0 %v2878_v49  ;;  %v2866_v21 = vmul.f32 %v4655_v11, %v6376_v58  ;;  %4676 = vtanh.f32 %v6326_v23 }
 0x67d   : > { %2928 = vadd.xlane.f32.xlu1 %v2879_v44  ;;  %v4659_v37 = vpop.eup %4658  ;;  %v2867_v32 = vmul.f32 %v4657_v12, %v6376_v58  ;;  %4678 = vtanh.f32 %v2815_v7 }
 0x67e   : > { %v4661_v17 = vpop.eup %4660  ;;  %v2870_v62 = vmul.f32 %v4659_v37, %v6376_v58  ;;  %4680 = vtanh.f32 %v2816_v16 }
 0x67f   : > { %v4663_v33 = vpop.eup %4662  ;;  %v2871_v29 = vmul.f32 %v4661_v17, %v6376_v58  ;;  %4682 = vtanh.f32 %v6331_v25 }
 0x680   : > { %2902 = vadd.xlane.f32.xlu0 %v2866_v21  ;;  %v4665_v28 = vpop.eup %4664  ;;  %v2880_v2 = vmul.f32 %v4663_v33, %v6376_v58  ;;  %4684 = vtanh.f32 %v6334_v34 }
 0x681   : > { %2904 = vadd.xlane.f32.xlu1 %v2867_v32  ;;  %v4667_v4 = vpop.eup %4666  ;;  %v2881_v47 = vmul.f32 %v4665_v28, %v6376_v58  ;;  %4686 = vtanh.f32 %v6337_v41 }
 0x682   : > { %v4669_v60 = vpop.eup %4668  ;;  %v2882_v56 = vmul.f32 %v4667_v4, %v6376_v58  ;;  %4688 = vtanh.f32 %v6340_v9 }
 0x683   : > { %v4671_v40 = vpop.eup %4670  ;;  %v2883_v20 = vmul.f32 %v4669_v60, %v6376_v58  ;;  %4690 = vtanh.f32 %v6366_v35 }
 0x684   : > { %2910 = vadd.xlane.f32.xlu0 %v2870_v62  ;;  %v4673_v23 = vpop.eup %4672  ;;  %v6410_v7 = vmul.f32 %v4671_v40, %v6376_v58  ;;  %4692 = vtanh.f32 %v6369_v46 }
 0x685   : > { %2912 = vadd.xlane.f32.xlu1 %v2871_v29  ;;  %v4675_v16 = vpop.eup %4674  ;;  %v2892_v48 = vmul.f32 %v4673_v23, %v6376_v58  ;;  %4694 = vtanh.f32 %v6379_v50 }
 0x686   : > { %v4677_v13 = vpop.eup %4676  ;;  %v2868_v25 = vmul.f32 %v4675_v16, %v6376_v58  ;;  %4696 = vtanh.f32 %v6382_v19 }
 0x687   : > { %v4679_v34 = vpop.eup %4678  ;;  %v2869_v42 = vmul.f32 %v4677_v13, %v6376_v58  ;;  %4698 = vtanh.f32 %v6385_v3 }
 0x688   : > { %2930 = vadd.xlane.f32.xlu0 %v2880_v2  ;;  %v4681_v49 = vpop.eup %4680  ;;  %v2886_v11 = vmul.f32 %v4679_v34, %v6376_v58  ;;  %4700 = vtanh.f32 %v6388_v59 }
 0x689   : > { %2932 = vadd.xlane.f32.xlu1 %v2881_v47  ;;  %v4683_v44 = vpop.eup %4682  ;;  %v2887_v41 = vmul.f32 %v4681_v49, %v6376_v58  ;;  %4702 = vtanh.f32 %v6343_v63 }
 0x68a   : > { %v4685_v12 = vpop.eup %4684  ;;  %v2872_v9 = vmul.f32 %v4683_v44, %v6376_v58  ;;  %4704 = vtanh.f32 %v6346_v30 }
 0x68b   : > { %v4687_v21 = vpop.eup %4686  ;;  %v2873_v35 = vmul.f32 %v4685_v12, %v6376_v58 }
 0x68c   : > { %2934 = vadd.xlane.f32.xlu0 %v2882_v56  ;;  %v4689_v37 = vpop.eup %4688  ;;  %v2874_v46 = vmul.f32 %v4687_v21, %v6376_v58 }
 0x68d   : > { %2936 = vadd.xlane.f32.xlu1 %v2883_v20  ;;  %v4691_v32 = vpop.eup %4690  ;;  %v2875_v50 = vmul.f32 %v4689_v37, %v6376_v58 }
 0x68e   : > { %v4693_v17 = vpop.eup %4692  ;;  %v2884_v19 = vmul.f32 %v4691_v32, %v6376_v58 }
 0x68f   : > { %v4695_v62 = vpop.eup %4694  ;;  %v2885_v3 = vmul.f32 %v4693_v17, %v6376_v58 }
 0x690   : > { %2906 = vadd.xlane.f32.xlu0 %v2868_v25  ;;  %v4697_v33 = vpop.eup %4696  ;;  %v2888_v59 = vmul.f32 %v4695_v62, %v6376_v58 }
 0x691   : > { %2908 = vadd.xlane.f32.xlu1 %v2869_v42  ;;  %v4699_v29 = vpop.eup %4698  ;;  %v2889_v28 = vmul.f32 %v4697_v33, %v6376_v58 }
 0x692   : > { %v4701_v2 = vpop.eup %4700  ;;  %v2890_v63 = vmul.f32 %v4699_v29, %v6376_v58 }
 0x693   : > { %v4703_v4 = vpop.eup %4702  ;;  %v2891_v47 = vmul.f32 %v4701_v2, %v6376_v58 }
 0x694   : > { %2942 = vadd.xlane.f32.xlu0 %v2886_v11  ;;  %v4705_v30 = vpop.eup %4704  ;;  %v2876_v60 = vmul.f32 %v4703_v4, %v6376_v58 }
 0x695   : > { %2944 = vadd.xlane.f32.xlu1 %v2887_v41  ;;  %v2877_v40 = vmul.f32 %v4705_v30, %v6376_v58 }
 0x698   : > { %2914 = vadd.xlane.f32.xlu0 %v2872_v9 }
 0x699   : > { %2916 = vadd.xlane.f32.xlu1 %v2873_v35 }
 0x69c   : > { %2918 = vadd.xlane.f32.xlu0 %v2874_v46 }
 0x69d   : > { %2920 = vadd.xlane.f32.xlu1 %v2875_v50 }
 0x6a0   : > { %2938 = vadd.xlane.f32.xlu0 %v2884_v19 }
 0x6a1   : > { %2940 = vadd.xlane.f32.xlu1 %v2885_v3 }
 0x6a4   : > { %2946 = vadd.xlane.f32.xlu0 %v2888_v59 }
 0x6a5   : > { %2948 = vadd.xlane.f32.xlu1 %v2889_v28 }
 0x6a8   : > { %2950 = vadd.xlane.f32.xlu0 %v2890_v63 }
 0x6a9   : > { %2952 = vadd.xlane.f32.xlu1 %v2891_v47 }
 0x6ac   : > { %2922 = vadd.xlane.f32.xlu0 %v2876_v60 }
 0x6ad   : > { %2924 = vadd.xlane.f32.xlu1 %v2877_v40 }
 0x6b0   : > { %2954 = vadd.xlane.f32.xlu0 %v2892_v48 }
 0x6b1   : > { %2956 = vadd.xlane.f32.xlu1 %v6410_v7 }
 0x700   : > { %v6443_v56 = vpop.xlane.xlu1 %2894 }
 0x701   : > { %v6441_v23 = vpop.xlane.xlu0 %2896  ;;  %v2993_v19 = vrot.slane %v6443_v56, %v5810_v8 }
 0x702   : > { %v2997_v17 = vrot.slane %v6441_v23, %v5803_v52 }
 0x704   : > { %v6447_v20 = vpop.xlane.xlu1 %2900  ;;  %v2998_v30 = vsel %vm1405_vm1, %v2997_v17, %v2993_v19 }
 0x705   : > { %v6445_v16 = vpop.xlane.xlu0 %2898  ;;  %v3006_v3 = vrot.slane %v6447_v20, %v5803_v52 }
 0x706   : > { %v3002_v33 = vrot.slane %v6445_v16, %v5810_v8 }
 0x708   : > { %v3007_v1 = vsel %vm1405_vm1, %v3006_v3, %v3002_v33 }
 0x709   : > { %v6449_v13 = vpop.xlane.xlu0 %2926 }
 0x70a   : > { %v6451_v25 = vpop.xlane.xlu1 %2928  ;;  %v3065_v40 = vrot.slane %v6449_v13, %v5810_v8 }
 0x70b   : > { %v3069_v60 = vrot.slane %v6451_v25, %v5803_v52 }
 0x70d   : > { %v6453_v34 = vpop.xlane.xlu0 %2902  ;;  %v3070_v55 = vsel %vm1405_vm1, %v3069_v60, %v3065_v40 }
 0x70e   : > { %v6455_v58 = vpop.xlane.xlu1 %2904  ;;  %v3011_v29 = vrot.slane %v6453_v34, %v5810_v8 }
 0x70f   : > { %v3015_v59 = vrot.slane %v6455_v58, %v5803_v52 }
 0x711   : > { %v6457_v42 = vpop.xlane.xlu0 %2910  ;;  %v3016_v15 = vsel %vm1405_vm1, %v3015_v59, %v3011_v29 }
 0x712   : > { %v6459_v48 = vpop.xlane.xlu1 %2912  ;;  %v3029_v0 = vrot.slane %v6457_v42, %v5810_v8 }
 0x713   : > { %v3033_v6 = vrot.slane %v6459_v48, %v5803_v52 }
 0x715   : > { %v6461_v7 = vpop.xlane.xlu0 %2930  ;;  %v3034_v24 = vsel %vm1405_vm1, %v3033_v6, %v3029_v0 }
 0x716   : > { %v6463_v49 = vpop.xlane.xlu1 %2932  ;;  %v3074_v2 = vrot.slane %v6461_v7, %v5810_v8 }
 0x717   : > { %v3078_v28 = vrot.slane %v6463_v49, %v5803_v52 }
 0x719   : > { %v6465_v11 = vpop.xlane.xlu0 %2934  ;;  %v3079_v17 = vsel %vm1405_vm1, %v3078_v28, %v3074_v2  ;;  %v3134_v2 = vsel %vm1542_vm2, %v3007_v1, %v2998_v30 }
 0x71a   : > { %v6467_v44 = vpop.xlane.xlu1 %2936  ;;  %v3083_v36 = vrot.slane %v6465_v11, %v5810_v8  ;;  %v3135_v53 = vsel %vm1544_vm3, %v3016_v15, %v3134_v2  ;;  %v3141_v43 = vsel %vm1542_vm2, %v3079_v17, %v3070_v55 }
 0x71b   : > { %v3087_v19 = vrot.slane %v6467_v44, %v5803_v52 }
 0x71d   : > { %v6469_v41 = vpop.xlane.xlu0 %2906  ;;  %v3088_v26 = vsel %vm1405_vm1, %v3087_v19, %v3083_v36 }
 0x71e   : > { %v6471_v12 = vpop.xlane.xlu1 %2908  ;;  %v3020_v4 = vrot.slane %v6469_v41, %v5810_v8  ;;  %v3142_v19 = vsel %vm1544_vm3, %v3088_v26, %v3141_v43 }
 0x71f   : > { %v3024_v63 = vrot.slane %v6471_v12, %v5803_v52 }
 0x721   : > { %v6473_v9 = vpop.xlane.xlu0 %2942  ;;  %v3025_v57 = vsel %vm1405_vm1, %v3024_v63, %v3020_v4 }
 0x722   : > { %v6475_v21 = vpop.xlane.xlu1 %2944  ;;  %v3136_v1 = vsel %vm1546_vm4, %v3025_v57, %v3135_v53  ;;  %v3101_v60 = vrot.slane %v6473_v9, %v5810_v8 }
 0x723   : > { %v3105_v30 = vrot.slane %v6475_v21, %v5803_v52 }
 0x725   : > { %v6477_v35 = vpop.xlane.xlu0 %2914  ;;  %v3106_v54 = vsel %vm1405_vm1, %v3105_v30, %v3101_v60 }
 0x726   : > { %v6479_v37 = vpop.xlane.xlu1 %2916  ;;  %v3038_v33 = vrot.slane %v6477_v35, %v5810_v8 }
 0x727   : > { %v3042_v3 = vrot.slane %v6479_v37, %v5803_v52 }
 0x729   : > { %v6481_v46 = vpop.xlane.xlu0 %2918  ;;  %v3043_v40 = vsel %vm1405_vm1, %v3042_v3, %v3038_v33  ;;  %v3137_v33 = vsel %vm1548_vm5, %v3034_v24, %v3136_v1 }
 0x72a   : > { %v6483_v32 = vpop.xlane.xlu1 %2920  ;;  %v3047_v4 = vrot.slane %v6481_v46, %v5810_v8 }
 0x72b   : > { %v3051_v63 = vrot.slane %v6483_v32, %v5803_v52 }
 0x72d   : > { %v6485_v50 = vpop.xlane.xlu0 %2938  ;;  %v3052_v53 = vsel %vm1405_vm1, %v3051_v63, %v3047_v4 }
 0x72e   : > { %v6491_v62 = vpop.xlane.xlu1 %2940  ;;  %v3092_v29 = vrot.slane %v6485_v50, %v5810_v8 }
 0x72f   : > { %v3096_v59 = vrot.slane %v6491_v62, %v5803_v52 }
 0x731   : > { %v6509_v47 = vpop.xlane.xlu0 %2946  ;;  %v3097_v18 = vsel %vm1405_vm1, %v3096_v59, %v3092_v29  ;;  %v3138_v29 = vsel %vm1550_vm6, %v3043_v40, %v3137_v33 }
 0x732   : > { %v6516_v51 = vpop.xlane.xlu1 %2948  ;;  %v3110_v6 = vrot.slane %v6509_v47, %v5810_v8  ;;  %v3143_v59 = vsel %vm1546_vm4, %v3097_v18, %v3142_v19  ;;  %v3139_v10 = vsel %vm1552_vm7, %v3052_v53, %v3138_v29 }
 0x733   : > { %v3114_v15 = vrot.slane %v6516_v51, %v5803_v52 }
 0x735   : > { %v6538_v28 = vpop.xlane.xlu0 %2950  ;;  %v3115_v2 = vsel %vm1405_vm1, %v3114_v15, %v3110_v6  ;;  %v3144_v15 = vsel %vm1548_vm5, %v3106_v54, %v3143_v59 }
 0x736   : > { %v6546_v31 = vpop.xlane.xlu1 %2952  ;;  %v3119_v36 = vrot.slane %v6538_v28, %v5810_v8  ;;  %v3145_v6 = vsel %vm1550_vm6, %v3115_v2, %v3144_v15 }
 0x737   : > { %v3123_v57 = vrot.slane %v6546_v31, %v5803_v52 }
 0x739   : > { %v6563_v55 = vpop.xlane.xlu0 %2922  ;;  %v3124_v26 = vsel %vm1405_vm1, %v3123_v57, %v3119_v36 }
 0x73a   : > { %v6570_v0 = vpop.xlane.xlu1 %2924  ;;  %v3056_v17 = vrot.slane %v6563_v55, %v5810_v8  ;;  %v3146_v60 = vsel %vm1552_vm7, %v3124_v26, %v3145_v6 }
 0x73b   : > { %v3060_v3 = vrot.slane %v6570_v0, %v5803_v52 }
 0x73d   : > { %v6581_v63 = vpop.xlane.xlu0 %2954  ;;  %v3061_v4 = vsel %vm1405_vm1, %v3060_v3, %v3056_v17 }
 0x73e   : > { %v6587_v43 = vpop.xlane.xlu1 %2956  ;;  %v3128_v24 = vrot.slane %v6581_v63, %v5810_v8  ;;  %v3140_v18 = vsel %vm1554_vm8, %v3061_v4, %v3139_v10 }
 0x73f   : > { %v3132_v1 = vrot.slane %v6587_v43, %v5803_v52  ;;  %v3150_v40 = vsel %vm1565_vm9, %v3140_v18, -inf }
 0x740   : > { %3151 = vmax.xlane.f32.xlu0 %v3150_v40 }
 0x741   : > { %v3133_v30 = vsel %vm1405_vm1, %v3132_v1, %v3128_v24 }
 0x742   : > { %v3147_v53 = vsel %vm1554_vm8, %v3133_v30, %v3146_v60 }
 0x743   : > { %v3153_v57 = vsel %vm1565_vm9, %v3147_v53, -inf }
 0x744   : > { %3154 = vmax.xlane.f32.xlu1 %v3153_v57 }
 0x7cd   : > { %v3152_v10 = vpop.xlane.xlu0 %3151 }
 0x7ce   : > { %v3161_v36 = vrot.slane %v3152_v10, %v5562_v38  ;;  %v3165_v17 = vrot.slane %v3152_v10, %v5572_v61  ;;  %v3169_v3 = vrot.slane %v3152_v10, %v5935_v39  ;;  %v3173_v4 = vrot.slane %v3152_v10, %v5938_v27 }
 0x7cf   : > { %v3181_v15 = vrot.slane %v3152_v10, %v5952_v45 }
 0x7d0   : > { %v3238_v19 = vsub.f32 %v6443_v56, %v3161_v36  ;;  %v3239_v54 = vsub.f32 %v6441_v23, %v3161_v36  ;;  %v3241_v33 = vsub.f32 %v6447_v20, %v3165_v17  ;;  %v3240_v59 = vsub.f32 %v6445_v16, %v3165_v17 }
 0x7d1   : > { %v3243_v26 = vsub.f32 %v6455_v58, %v3169_v3  ;;  %v3242_v18 = vsub.f32 %v6453_v34, %v3169_v3  ;;  %v3177_v23 = vrot.slane %v3152_v10, %v5944_v22  ;;  %v3245_v1 = vsub.f32 %v6471_v12, %v3173_v4 }
 0x7d2   : > { %v3270_v29 = vmul.f32 1.442695, %v3238_v19  ;;  %v3272_v2 = vmul.f32 1.442695, %v3239_v54  ;;  %v3276_v24 = vmul.f32 1.442695, %v3241_v33  ;;  %v3244_v16 = vsub.f32 %v6469_v41, %v3173_v4  ;;  %v6635_v33 = vpop.xlane.xlu1 %3154 }
 0x7d3   : > { %v3274_v56 = vmul.f32 1.442695, %v3240_v59  ;;  %v3280_v20 = vmul.f32 1.442695, %v3243_v26  ;;  %v3278_v40 = vmul.f32 1.442695, %v3242_v18  ;;  %v3247_v58 = vsub.f32 %v6459_v48, %v3177_v23 }
 0x7d4   : > { %4706 = vpow2.f32 %v3270_v29  ;;  %v3284_v6 = vmul.f32 1.442695, %v3245_v1  ;;  %v3246_v34 = vsub.f32 %v6457_v42, %v3177_v23  ;;  %v3282_v30 = vmul.f32 1.442695, %v3244_v16 }
 0x7d5   : > { %4708 = vpow2.f32 %v3272_v2  ;;  %v3185_v41 = vrot.slane %v3152_v10, %v5958_v5  ;;  %v3249_v12 = vsub.f32 %v6479_v37, %v3181_v15  ;;  %v3288_v57 = vmul.f32 1.442695, %v3247_v58 }
 0x7d6   : > { %4710 = vpow2.f32 %v3276_v24  ;;  %v3248_v48 = vsub.f32 %v6477_v35, %v3181_v15  ;;  %v3286_v42 = vmul.f32 1.442695, %v3246_v34  ;;  %v3189_v19 = vrot.slane %v3152_v10, %v5964_v14 }
 0x7d7   : > { %4712 = vpow2.f32 %v3274_v56  ;;  %v3251_v54 = vsub.f32 %v6483_v32, %v3185_v41  ;;  %v3292_v37 = vmul.f32 1.442695, %v3249_v12  ;;  %v3250_v3 = vsub.f32 %v6481_v46, %v3185_v41 }
 0x7d8   : > { %4714 = vpow2.f32 %v3280_v20  ;;  %v3290_v35 = vmul.f32 1.442695, %v3248_v48  ;;  %v3253_v10 = vsub.f32 %v6570_v0, %v3189_v19  ;;  %v3193_v2 = vrot.slane %v6635_v33, %v5562_v38 }
 0x7d9   : > { %4716 = vpow2.f32 %v3278_v40  ;;  %v3296_v32 = vmul.f32 1.442695, %v3251_v54  ;;  %v3252_v46 = vsub.f32 %v6563_v55, %v3189_v19  ;;  %v3294_v4 = vmul.f32 1.442695, %v3250_v3 }
 0x7da   : > { %4718 = vpow2.f32 %v3284_v6  ;;  %v3300_v18 = vmul.f32 1.442695, %v3253_v10  ;;  %v3197_v0 = vrot.slane %v6635_v33, %v5572_v61  ;;  %v3255_v56 = vsub.f32 %v6451_v25, %v3193_v2 }
 0x7db   : > { %4720 = vpow2.f32 %v3282_v30  ;;  %v3298_v23 = vmul.f32 1.442695, %v3252_v46  ;;  %v3254_v55 = vsub.f32 %v6449_v13, %v3193_v2  ;;  %v3201_v16 = vrot.slane %v6635_v33, %v5935_v39 }
 0x7dc   : > { %4722 = vpow2.f32 %v3288_v57  ;;  %v3257_v40 = vsub.f32 %v6463_v49, %v3197_v0  ;;  %v3304_v15 = vmul.f32 1.442695, %v3255_v56  ;;  %v3256_v25 = vsub.f32 %v6461_v7, %v3197_v0 }
 0x7dd   : > { %4724 = vpow2.f32 %v3286_v42  ;;  %v3302_v58 = vmul.f32 1.442695, %v3254_v55  ;;  %v3205_v34 = vrot.slane %v6635_v33, %v5938_v27  ;;  %v3259_v30 = vsub.f32 %v6467_v44, %v3201_v16 }
 0x7de   : > { %v6617_v60 = vpop.eup %4706  ;;  %4726 = vpow2.f32 %v3292_v37  ;;  %v3308_v49 = vmul.f32 1.442695, %v3257_v40  ;;  %v3258_v41 = vsub.f32 %v6465_v11, %v3201_v16  ;;  %v3306_v7 = vmul.f32 1.442695, %v3256_v25 }
 0x7df   : > { %v6619_v53 = vpop.eup %4708  ;;  %3367 = vperm.xlu0 %4486, %v6617_v60   ;;  %4728 = vpow2.f32 %v3290_v35  ;;  %v3209_v48 = vrot.slane %v6635_v33, %v5944_v22  ;;  %v3261_v42 = vsub.f32 %v6491_v62, %v3205_v34  ;;  %v3312_v44 = vmul.f32 1.442695, %v3259_v30 }
 0x7e0   : > { %3370 = vperm.xlu1 %4487, %v6619_v53   ;;  %v6626_v36 = vpop.eup %4710  ;;  %4730 = vpow2.f32 %v3296_v32  ;;  %v3260_v19 = vsub.f32 %v6485_v50, %v3205_v34  ;;  %v3310_v11 = vmul.f32 1.442695, %v3258_v41  ;;  %v3213_v3 = vrot.slane %v6635_v33, %v5952_v45 }
 0x7e1   : > { %v6628_v17 = vpop.eup %4712  ;;  %4732 = vpow2.f32 %v3294_v4  ;;  %v3263_v35 = vsub.f32 %v6475_v21, %v3209_v48  ;;  %v3316_v62 = vmul.f32 1.442695, %v3261_v42  ;;  %v3262_v10 = vsub.f32 %v6473_v9, %v3209_v48 }
 0x7e2   : > { %v6637_v59 = vpop.eup %4714  ;;  %4734 = vpow2.f32 %v3300_v18  ;;  %v3314_v50 = vmul.f32 1.442695, %v3260_v19  ;;  %v3217_v46 = vrot.slane %v6635_v33, %v5958_v5  ;;  %v3265_v4 = vsub.f32 %v6516_v51, %v3213_v3 }
 0x7e3   : > { %3376 = vperm.xlu0 %4486, %v6626_v36   ;;  %v6639_v29 = vpop.eup %4716  ;;  %4736 = vpow2.f32 %v3298_v23  ;;  %v3320_v21 = vmul.f32 1.442695, %v3263_v35  ;;  %v3264_v18 = vsub.f32 %v6509_v47, %v3213_v3  ;;  %v3318_v9 = vmul.f32 1.442695, %v3262_v10 }
 0x7e4   : > { %3373 = vperm.xlu1 %4487, %v6628_v17   ;;  %v6647_v26 = vpop.eup %4718  ;;  %4738 = vpow2.f32 %v3304_v15  ;;  %v3221_v23 = vrot.slane %v6635_v33, %v5964_v14  ;;  %v3267_v55 = vsub.f32 %v6546_v31, %v3217_v46  ;;  %v3324_v51 = vmul.f32 1.442695, %v3265_v4 }
 0x7e5   : > { %v6649_v24 = vpop.eup %4720  ;;  %4740 = vpow2.f32 %v3302_v58  ;;  %v3266_v16 = vsub.f32 %v6538_v28, %v3217_v46  ;;  %v3322_v47 = vmul.f32 1.442695, %v3264_v18 }
 0x7e6   : > { %v6657_v1 = vpop.eup %4722  ;;  %4742 = vpow2.f32 %v3308_v49  ;;  %v3269_v25 = vsub.f32 %v6587_v43, %v3221_v23  ;;  %v3328_v33 = vmul.f32 1.442695, %v3267_v55  ;;  %v3268_v31 = vsub.f32 %v6581_v63, %v3221_v23 }
 0x7e7   : > { %3382 = vperm.xlu0 %4486, %v6637_v59   ;;  %v6659_v20 = vpop.eup %4724  ;;  %4744 = vpow2.f32 %v3306_v7  ;;  %v3326_v58 = vmul.f32 1.442695, %v3266_v16 }
 0x7e8   : > { %3379 = vperm.xlu1 %4487, %v6639_v29   ;;  %v6667_v13 = vpop.eup %4726  ;;  %4746 = vpow2.f32 %v3312_v44  ;;  %v3332_v30 = vmul.f32 1.442695, %v3269_v25  ;;  %v3330_v43 = vmul.f32 1.442695, %v3268_v31 }
 0x7e9   : > { %v6669_v6 = vpop.eup %4728  ;;  %4748 = vpow2.f32 %v3310_v11 }
 0x7ea   : > { %v6677_v12 = vpop.eup %4730  ;;  %4750 = vpow2.f32 %v3316_v62 }
 0x7eb   : > { %3388 = vperm.xlu0 %4486, %v6647_v26   ;;  %v6679_v57 = vpop.eup %4732  ;;  %4752 = vpow2.f32 %v3314_v50 }
 0x7ec   : > { %3385 = vperm.xlu1 %4487, %v6649_v24   ;;  %v6687_v54 = vpop.eup %4734  ;;  %4754 = vpow2.f32 %v3320_v21 }
 0x7ed   : > { %v6689_v37 = vpop.eup %4736  ;;  %4756 = vpow2.f32 %v3318_v9 }
 0x7ee   : > { %v6697_v32 = vpop.eup %4738  ;;  %4758 = vpow2.f32 %v3324_v51 }
 0x7ef   : > { %3394 = vperm.xlu0 %4486, %v6657_v1   ;;  %v6699_v2 = vpop.eup %4740  ;;  %4760 = vpow2.f32 %v3322_v47 }
 0x7f0   : > { %3391 = vperm.xlu1 %4487, %v6659_v20   ;;  %v6707_v0 = vpop.eup %4742  ;;  %4762 = vpow2.f32 %v3328_v33 }
 0x7f1   : > { %v6709_v56 = vpop.eup %4744  ;;  %4764 = vpow2.f32 %v3326_v58 }
 0x7f2   : > { %v6717_v40 = vpop.eup %4746  ;;  %4766 = vpow2.f32 %v3332_v30 }
 0x7f3   : > { %3400 = vperm.xlu0 %4486, %v6667_v13   ;;  %v6719_v15 = vpop.eup %4748  ;;  %4768 = vpow2.f32 %v3330_v43 }
 0x7f4   : > { %3397 = vperm.xlu1 %4487, %v6669_v6   ;;  %v6725_v34 = vpop.eup %4750 }
 0x7f5   : > { %v6727_v28 = vpop.eup %4752 }
 0x7f6   : > { %v6731_v49 = vpop.eup %4754 }
 0x7f7   : > { %3406 = vperm.xlu0 %4486, %v6677_v12   ;;  %v6733_v41 = vpop.eup %4756 }
 0x7f8   : > { %3403 = vperm.xlu1 %4487, %v6679_v57   ;;  %v6737_v63 = vpop.eup %4758 }
 0x7f9   : > { %v6739_v7 = vpop.eup %4760 }
 0x7fa   : > { %v6743_v48 = vpop.eup %4762 }
 0x7fb   : > { %3412 = vperm.xlu0 %4486, %v6687_v54   ;;  %v6745_v42 = vpop.eup %4764 }
 0x7fc   : > { %3409 = vperm.xlu1 %4487, %v6689_v37   ;;  %v6749_v44 = vpop.eup %4766 }
 0x7fd   : > { %v6751_v19 = vpop.eup %4768 }
 0x7fe   : > { %7197 = vst [vmem:[#allocation23_spill] sm:$0xff] %v6751_v19 }
 0x7ff   : > { %3418 = vperm.xlu0 %4486, %v6697_v32  }
 0x800   : > { %3415 = vperm.xlu1 %4487, %v6699_v2  }
 0x803   : > { %3424 = vperm.xlu0 %4486, %v6707_v0  }
 0x804   : > { %3421 = vperm.xlu1 %4487, %v6709_v56  }
 0x807   : > { %3430 = vperm.xlu0 %4486, %v6717_v40  }
 0x808   : > { %3427 = vperm.xlu1 %4487, %v6719_v15  }
 0x80b   : > { %3436 = vperm.xlu0 %4486, %v6725_v34  }
 0x80c   : > { %3433 = vperm.xlu1 %4487, %v6727_v28  }
 0x80f   : > { %3442 = vperm.xlu0 %4486, %v6731_v49  }
 0x810   : > { %3439 = vperm.xlu1 %4487, %v6733_v41  }
 0x813   : > { %3448 = vperm.xlu0 %4486, %v6737_v63  }
 0x814   : > { %3445 = vperm.xlu1 %4487, %v6739_v7  }
 0x817   : > { %3454 = vperm.xlu0 %4486, %v6743_v48  }
 0x818   : > { %3451 = vperm.xlu1 %4487, %v6745_v42  }
 0x81b   : > { %3460 = vperm.xlu0 %4486, %v6749_v44  }
 0x81c   : > { %3457 = vperm.xlu1 %4487, %v6751_v19  }
 0x85e   : > { %v3368_v11 = vpop.permute.xlu0 %3367 }
 0x85f   : > { %v3371_v3 = vpop.permute.xlu1 %3370  ;;  %v3465_v33 = vrot.slane %v3368_v11, %v5810_v8 }
 0x860   : > { %v3469_v25 = vrot.slane %v3371_v3, %v5803_v52 }
 0x862   : > { %v3377_v35 = vpop.permute.xlu0 %3376 }
 0x863   : > { %v3374_v62 = vpop.permute.xlu1 %3373  ;;  %v3478_v23 = vrot.slane %v3377_v35, %v5803_v52 }
 0x864   : > { %v3474_v9 = vrot.slane %v3374_v62, %v5810_v8 }
 0x866   : > { %v3383_v10 = vpop.permute.xlu0 %3382  ;;  %v3479_v35 = vsel %vm1405_vm1, %v3478_v23, %v3474_v9 }
 0x867   : > { %v3380_v50 = vpop.permute.xlu1 %3379  ;;  %v3487_v16 = vrot.slane %v3383_v10, %v5803_v52 }
 0x868   : > { %v3483_v51 = vrot.slane %v3380_v50, %v5810_v8 }
 0x86a   : > { %v3389_v46 = vpop.permute.xlu0 %3388  ;;  %v3488_v19 = vsel %vm1405_vm1, %v3487_v16, %v3483_v51 }
 0x86b   : > { %v3386_v4 = vpop.permute.xlu1 %3385  ;;  %v3496_v58 = vrot.slane %v3389_v46, %v5803_v52 }
 0x86c   : > { %v3492_v31 = vrot.slane %v3386_v4, %v5810_v8  ;;  %v3470_v4 = vsel %vm1405_vm1, %v3469_v25, %v3465_v33 }
 0x86e   : > { %v3395_v21 = vpop.permute.xlu0 %3394  ;;  %v3497_v46 = vsel %vm1405_vm1, %v3496_v58, %v3492_v31 }
 0x86f   : > { %v3392_v18 = vpop.permute.xlu1 %3391  ;;  %v3505_v43 = vrot.slane %v3395_v21, %v5803_v52  ;;  %v3606_v21 = vsel %vm1542_vm2, %v3479_v35, %v3470_v4 }
 0x870   : > { %v3501_v30 = vrot.slane %v3392_v18, %v5810_v8  ;;  %v3607_v23 = vsel %vm1544_vm3, %v3488_v19, %v3606_v21 }
 0x871   : > { %v3608_v51 = vsel %vm1546_vm4, %v3497_v46, %v3607_v23 }
 0x872   : > { %v3401_v55 = vpop.permute.xlu0 %3400  ;;  %v3506_v9 = vsel %vm1405_vm1, %v3505_v43, %v3501_v30 }
 0x873   : > { %v3398_v47 = vpop.permute.xlu1 %3397  ;;  %v3514_v50 = vrot.slane %v3401_v55, %v5803_v52  ;;  %v3609_v33 = vsel %vm1548_vm5, %v3506_v9, %v3608_v51 }
 0x874   : > { %v3510_v62 = vrot.slane %v3398_v47, %v5810_v8 }
 0x876   : > { %v3407_v10 = vpop.permute.xlu0 %3406  ;;  %v3515_v55 = vsel %vm1405_vm1, %v3514_v50, %v3510_v62 }
 0x877   : > { %v3404_v3 = vpop.permute.xlu1 %3403  ;;  %v3523_v11 = vrot.slane %v3407_v10, %v5803_v52  ;;  %v3610_v58 = vsel %vm1550_vm6, %v3515_v55, %v3609_v33 }
 0x878   : > { %v3519_v18 = vrot.slane %v3404_v3, %v5810_v8 }
 0x87a   : > { %v3413_v47 = vpop.permute.xlu0 %3412  ;;  %v3524_v16 = vsel %vm1405_vm1, %v3523_v11, %v3519_v18 }
 0x87b   : > { %v3410_v10 = vpop.permute.xlu1 %3409  ;;  %v3532_v25 = vrot.slane %v3413_v47, %v5803_v52  ;;  %v3611_v19 = vsel %vm1552_vm7, %v3524_v16, %v3610_v58 }
 0x87c   : > { %v3528_v31 = vrot.slane %v3410_v10, %v5810_v8 }
 0x87e   : > { %v3419_v35 = vpop.permute.xlu0 %3418  ;;  %v3533_v30 = vsel %vm1405_vm1, %v3532_v25, %v3528_v31 }
 0x87f   : > { %v3416_v43 = vpop.permute.xlu1 %3415  ;;  %v3612_v62 = vsel %vm1554_vm8, %v3533_v30, %v3611_v19  ;;  %v3541_v31 = vrot.slane %v3419_v35, %v5803_v52 }
 0x880   : > { %v3622_v50 = vsel %vm1565_vm9, %v3612_v62, 0.0  ;;  %v3537_v33 = vrot.slane %v3416_v43, %v5810_v8 }
 0x881   : > { %3623 = vadd.xlane.f32.xlu1 %v3622_v50 }
 0x882   : > { %v3425_v3 = vpop.permute.xlu0 %3424 }
 0x883   : > { %v3422_v11 = vpop.permute.xlu1 %3421  ;;  %v3550_v47 = vrot.slane %v3425_v3, %v5803_v52 }
 0x884   : > { %v3546_v55 = vrot.slane %v3422_v11, %v5810_v8 }
 0x886   : > { %v3431_v4 = vpop.permute.xlu0 %3430  ;;  %v3551_v50 = vsel %vm1405_vm1, %v3550_v47, %v3546_v55 }
 0x887   : > { %v3428_v46 = vpop.permute.xlu1 %3427  ;;  %v3559_v10 = vrot.slane %v3431_v4, %v5803_v52 }
 0x888   : > { %v3555_v16 = vrot.slane %v3428_v46, %v5810_v8 }
 0x88a   : > { %v3437_v18 = vpop.permute.xlu0 %3436  ;;  %v3560_v46 = vsel %vm1405_vm1, %v3559_v10, %v3555_v16 }
 0x88b   : > { %v3434_v21 = vpop.permute.xlu1 %3433  ;;  %v3568_v30 = vrot.slane %v3437_v18, %v5803_v52 }
 0x88c   : > { %v3564_v58 = vrot.slane %v3434_v21, %v5810_v8  ;;  %v3542_v21 = vsel %vm1405_vm1, %v3541_v31, %v3537_v33 }
 0x88e   : > { %v3443_v9 = vpop.permute.xlu0 %3442  ;;  %v3569_v18 = vsel %vm1405_vm1, %v3568_v30, %v3564_v58 }
 0x88f   : > { %v3440_v23 = vpop.permute.xlu1 %3439  ;;  %v3577_v62 = vrot.slane %v3443_v9, %v5803_v52  ;;  %v3613_v9 = vsel %vm1542_vm2, %v3551_v50, %v3542_v21 }
 0x890   : > { %v3573_v19 = vrot.slane %v3440_v23, %v5810_v8  ;;  %v3614_v47 = vsel %vm1544_vm3, %v3560_v46, %v3613_v9 }
 0x891   : > { %v3615_v16 = vsel %vm1546_vm4, %v3569_v18, %v3614_v47 }
 0x892   : > { %v3449_v51 = vpop.permute.xlu0 %3448  ;;  %v3578_v55 = vsel %vm1405_vm1, %v3577_v62, %v3573_v19 }
 0x893   : > { %v3446_v25 = vpop.permute.xlu1 %3445  ;;  %v3586_v11 = vrot.slane %v3449_v51, %v5803_v52  ;;  %v3616_v31 = vsel %vm1548_vm5, %v3578_v55, %v3615_v16 }
 0x894   : > { %v3582_v3 = vrot.slane %v3446_v25, %v5810_v8 }
 0x896   : > { %v3455_v4 = vpop.permute.xlu0 %3454  ;;  %v3587_v51 = vsel %vm1405_vm1, %v3586_v11, %v3582_v3 }
 0x897   : > { %v3452_v43 = vpop.permute.xlu1 %3451  ;;  %v3595_v35 = vrot.slane %v3455_v4, %v5803_v52  ;;  %v3617_v30 = vsel %vm1550_vm6, %v3587_v51, %v3616_v31 }
 0x898   : > { %v3591_v23 = vrot.slane %v3452_v43, %v5810_v8 }
 0x89a   : > { %v3461_v25 = vpop.permute.xlu0 %3460  ;;  %v3596_v10 = vsel %vm1405_vm1, %v3595_v35, %v3591_v23 }
 0x89b   : > { %v3458_v4 = vpop.permute.xlu1 %3457  ;;  %v3604_v33 = vrot.slane %v3461_v25, %v5803_v52  ;;  %v3618_v62 = vsel %vm1552_vm7, %v3596_v10, %v3617_v30 }
 0x89c   : > { %v3600_v58 = vrot.slane %v3458_v4, %v5810_v8 }
 0x89e   : > { %v3605_v19 = vsel %vm1405_vm1, %v3604_v33, %v3600_v58 }
 0x89f   : > { %v3619_v50 = vsel %vm1554_vm8, %v3605_v19, %v3618_v62  ;;  %v7199_v19 = vld [vmem:[#allocation28_spill] sm:$0xff]  ;;  %v7200_v62 = vld [vmem:[#allocation25_spill] sm:$0xff] }
 0x8a0   : > { %v3625_v3 = vsel %vm1565_vm9, %v3619_v50, 0.0 }
 0x8a1   : > { %3626 = vadd.xlane.f32.xlu0 %v3625_v3 }
 0x90e   : > { %v3624_v11 = vpop.xlane.xlu1 %3623 }
 0x90f   : > { %4770 = vrcp.f32 %v3624_v11 }
 0x919   : > { %v4771_v46 = vpop.eup %4770 }
 0x91a   : > { %v3635_v52 = vrot.slane %v4771_v46, %v5562_v38  ;;  %v3639_v35 = vrot.slane %v4771_v46, %v5572_v61  ;;  %v3643_v23 = vrot.slane %v4771_v46, %v5935_v39 }
 0x91c   : > { %v3713_v43 = vmul.f32 %v6619_v53, %v3635_v52  ;;  %v3712_v8 = vmul.f32 %v6617_v60, %v3635_v52  ;;  %v3714_v21 = vmul.f32 %v6628_v17, %v3639_v35  ;;  %v3715_v18 = vmul.f32 %v6626_v36, %v3639_v35  ;;  %v7202_v52 = vld [vmem:[#allocation27_spill] sm:$0xff] }
 0x91d   : > { %v3716_v9 = vmul.f32 %v6639_v29, %v3643_v23  ;;  %v3717_v55 = vmul.f32 %v6637_v59, %v3643_v23  ;;  %v3647_v53 = vrot.slane %v4771_v46, %v5938_v27  ;;  %v3651_v17 = vrot.slane %v4771_v46, %v5944_v22 }
 0x91e   : > { %3751 = vperm.xlu1 %4487, %v3713_v43   ;;  %3746 = vperm.xlu0 %4486, %v3712_v8   ;;  %v3655_v29 = vrot.slane %v4771_v46, %v5952_v45 }
 0x91f   : > { %v3718_v60 = vmul.f32 %v6649_v24, %v3647_v53  ;;  %v3719_v47 = vmul.f32 %v6647_v26, %v3647_v53  ;;  %v3720_v36 = vmul.f32 %v6659_v20, %v3651_v17  ;;  %v3721_v51 = vmul.f32 %v6657_v1, %v3651_v17  ;;  %v7204_v53 = vld [vmem:[#allocation34_spill] sm:$0xff] }
 0x920   : > { %v3722_v25 = vmul.f32 %v6669_v6, %v3655_v29  ;;  %v3723_v24 = vmul.f32 %v6667_v13, %v3655_v29  ;;  %v3659_v26 = vrot.slane %v4771_v46, %v5958_v5  ;;  %v3663_v1 = vrot.slane %v4771_v46, %v5964_v14  ;;  %v7201_v46 = vld [vmem:[#allocation24_spill] sm:$0xff] }
 0x922   : > { %3756 = vperm.xlu1 %4487, %v3714_v21   ;;  %3761 = vperm.xlu0 %4486, %v3715_v18   ;;  %v3724_v16 = vmul.f32 %v6679_v57, %v3659_v26  ;;  %v3725_v20 = vmul.f32 %v6677_v12, %v3659_v26  ;;  %v3726_v10 = vmul.f32 %v6689_v37, %v3663_v1 }
 0x923   : > { %v3727_v4 = vmul.f32 %v6687_v54, %v3663_v1 }
 0x926   : > { %3766 = vperm.xlu1 %4487, %v3716_v9   ;;  %3771 = vperm.xlu0 %4486, %v3717_v55   ;;  %v7203_v9 = vld [vmem:[#allocation31_spill] sm:$0xff] }
 0x92a   : > { %3776 = vperm.xlu1 %4487, %v3718_v60   ;;  %3781 = vperm.xlu0 %4486, %v3719_v47  }
 0x92e   : > { %3786 = vperm.xlu1 %4487, %v3720_v36   ;;  %3791 = vperm.xlu0 %4486, %v3721_v51   ;;  %v3627_v59 = vpop.xlane.xlu0 %3626 }
 0x92f   : > { %4772 = vrcp.f32 %v3627_v59 }
 0x932   : > { %3796 = vperm.xlu1 %4487, %v3722_v25   ;;  %3801 = vperm.xlu0 %4486, %v3723_v24   ;;  %v7205_v24 = vld [vmem:[#allocation30_spill] sm:$0xff] }
 0x936   : > { %3806 = vperm.xlu1 %4487, %v3724_v16   ;;  %3811 = vperm.xlu0 %4486, %v3725_v20   ;;  %v7206_v16 = vld [vmem:[#allocation33_spill] sm:$0xff] }
 0x939   : > { %v4773_v33 = vpop.eup %4772 }
 0x93a   : > { %3816 = vperm.xlu1 %4487, %v3726_v10   ;;  %3821 = vperm.xlu0 %4486, %v3727_v4   ;;  %v3667_v13 = vrot.slane %v4773_v33, %v5562_v38  ;;  %v3671_v57 = vrot.slane %v4773_v33, %v5572_v61  ;;  %v3675_v37 = vrot.slane %v4773_v33, %v5935_v39 }
 0x93c   : > { %v3729_v6 = vmul.f32 %v6697_v32, %v3667_v13  ;;  %v3728_v31 = vmul.f32 %v6699_v2, %v3667_v13  ;;  %v3731_v12 = vmul.f32 %v6707_v0, %v3671_v57  ;;  %v3730_v58 = vmul.f32 %v6709_v56, %v3671_v57 }
 0x93d   : > { %v3733_v54 = vmul.f32 %v6717_v40, %v3675_v37  ;;  %v3732_v38 = vmul.f32 %v6719_v15, %v3675_v37  ;;  %v3679_v32 = vrot.slane %v4773_v33, %v5938_v27  ;;  %v3683_v0 = vrot.slane %v4773_v33, %v5944_v22  ;;  %v7208_v37 = vld [vmem:[#allocation40_spill] sm:$0xff] }
 0x93e   : > { %3831 = vperm.xlu0 %4486, %v3729_v6   ;;  %3826 = vperm.xlu1 %4487, %v3728_v31   ;;  %v3687_v40 = vrot.slane %v4773_v33, %v5952_v45 }
 0x93f   : > { %v3735_v61 = vmul.f32 %v6725_v34, %v3679_v32  ;;  %v3734_v2 = vmul.f32 %v6727_v28, %v3679_v32  ;;  %v3737_v39 = vmul.f32 %v6731_v49, %v3683_v0  ;;  %v3736_v56 = vmul.f32 %v6733_v41, %v3683_v0  ;;  %v7198_v41 = vld [vmem:[#allocation23_spill] sm:$0xff] }
 0x940   : > { %v3739_v27 = vmul.f32 %v6737_v63, %v3687_v40  ;;  %v3738_v15 = vmul.f32 %v6739_v7, %v3687_v40  ;;  %v3691_v34 = vrot.slane %v4773_v33, %v5958_v5  ;;  %v3695_v49 = vrot.slane %v4773_v33, %v5964_v14 }
 0x942   : > { %3841 = vperm.xlu0 %4486, %v3731_v12   ;;  %3836 = vperm.xlu1 %4487, %v3730_v58   ;;  %v3741_v22 = vmul.f32 %v6743_v48, %v3691_v34  ;;  %v3740_v28 = vmul.f32 %v6745_v42, %v3691_v34  ;;  %v3743_v45 = vmul.f32 %v6749_v44, %v3695_v49  ;;  %v7207_v12 = vld [vmem:[#allocation37_spill] sm:$0xff] }
 0x943   : > { %v3742_v30 = vmul.f32 %v7198_v41, %v3695_v49 }
 0x946   : > { %3851 = vperm.xlu0 %4486, %v3733_v54   ;;  %3846 = vperm.xlu1 %4487, %v3732_v38  }
 0x94a   : > { %3861 = vperm.xlu0 %4486, %v3735_v61   ;;  %3856 = vperm.xlu1 %4487, %v3734_v2  }
 0x94e   : > { %3871 = vperm.xlu0 %4486, %v3737_v39   ;;  %3866 = vperm.xlu1 %4487, %v3736_v56  }
 0x952   : > { %3881 = vperm.xlu0 %4486, %v3739_v27   ;;  %3876 = vperm.xlu1 %4487, %v3738_v15  }
 0x956   : > { %3891 = vperm.xlu0 %4486, %v3741_v22   ;;  %3886 = vperm.xlu1 %4487, %v3740_v28   ;;  %v7209_v22 = vld [vmem:[#allocation36_spill] sm:$0xff] }
 0x95a   : > { %3901 = vperm.xlu0 %4486, %v3743_v45   ;;  %3896 = vperm.xlu1 %4487, %v3742_v30   ;;  %v7210_v45 = vld [vmem:[#allocation39_spill] sm:$0xff] }
 0x99d   : > { %v3752_v63 = vpop.permute.xlu1 %3751  ;;  %v3747_v7 = vpop.permute.xlu0 %3746 }
 0x99e   : > { %v3905_v5 = vmul.f32 %v3752_v63, %v7199_v19  ;;  %v3904_v50 = vmul.f32 %v3747_v7, %v7200_v62 }
 0x9a0   : > { %v3936_v3 = vadd.f32 %v3905_v5, %v3904_v50 }
 0x9a1   : > { %v3757_v48 = vpop.permute.xlu1 %3756  ;;  %v3762_v11 = vpop.permute.xlu0 %3761 }
 0x9a2   : > { %v3937_v42 = vrot.slane %v3936_v3, 4  ;;  %v3906_v14 = vmul.f32 %v7201_v46, %v3757_v48  ;;  %v3907_v43 = vmul.f32 %v7202_v52, %v3762_v11  ;;  %v7211_v48 = vld [vmem:[#allocation43_spill] sm:$0xff] }
 0x9a4   : > { %v3938_v8 = vadd.f32 %v3937_v42, %v3936_v3  ;;  %v3943_v44 = vadd.f32 %v3907_v43, %v3906_v14  ;;  %v7212_v42 = vld [vmem:[#allocation46_spill] sm:$0xff] }
 0x9a5   : > { %v3767_v35 = vpop.permute.xlu1 %3766  ;;  %v3772_v21 = vpop.permute.xlu0 %3771 }
 0x9a6   : > { %v3939_v18 = vrot.slane %v3938_v8, 2  ;;  %v3944_v23 = vrot.slane %v3943_v44, 4  ;;  %v3908_v55 = vmul.f32 %v3767_v35, %v7203_v9  ;;  %v3909_v60 = vmul.f32 %v3772_v21, %v7204_v53 }
 0x9a8   : > { %v3940_v47 = vadd.f32 %v3939_v18, %v3938_v8  ;;  %v3945_v17 = vadd.f32 %v3944_v23, %v3943_v44  ;;  %v3950_v36 = vadd.f32 %v3909_v60, %v3908_v55  ;;  %v7213_v55 = vld [vmem:[#allocation42_spill] sm:$0xff]  ;;  %v7214_v60 = vld [vmem:[#allocation45_spill] sm:$0xff] }
 0x9a9   : > { %v3777_v51 = vpop.permute.xlu1 %3776  ;;  %v3782_v29 = vpop.permute.xlu0 %3781 }
 0x9aa   : > { %v3946_v59 = vrot.slane %v3945_v17, 2  ;;  %v3951_v25 = vrot.slane %v3950_v36, 4  ;;  %v3910_v26 = vmul.f32 %v7205_v24, %v3777_v51  ;;  %v3911_v20 = vmul.f32 %v7206_v16, %v3782_v29 }
 0x9ab   : > { %v3941_v1 = vrot.slane %v3940_v47, 1 }
 0x9ac   : > { %v3947_v10 = vadd.f32 %v3946_v59, %v3945_v17  ;;  %v3952_v4 = vadd.f32 %v3951_v25, %v3950_v36  ;;  %v3957_v33 = vadd.f32 %v3911_v20, %v3910_v26 }
 0x9ad   : > { %v3787_v13 = vpop.permute.xlu1 %3786  ;;  %v3792_v6 = vpop.permute.xlu0 %3791  ;;  %v3942_v32 = vadd.f32 %v3941_v1, %v3940_v47 }
 0x9ae   : > { %v3948_v31 = vrot.slane %v3947_v10, 1  ;;  %v3953_v57 = vrot.slane %v3952_v4, 2  ;;  %v3912_v58 = vmul.f32 %v3787_v13, %v7207_v12  ;;  %v3913_v54 = vmul.f32 %v3792_v6, %v7208_v37  ;;  %v7216_v13 = vld [vmem:[#allocation52_spill] sm:$0xff] }
 0x9af   : > { %v3958_v38 = vrot.slane %v3957_v33, 4 }
 0x9b0   : > { %v3949_v61 = vadd.f32 %v3948_v31, %v3947_v10  ;;  %v3954_v2 = vadd.f32 %v3953_v57, %v3952_v4  ;;  %v3964_v0 = vadd.f32 %v3913_v54, %v3912_v58  ;;  %v7215_v10 = vld [vmem:[#allocation49_spill] sm:$0xff] }
 0x9b1   : > { %v3959_v39 = vadd.f32 %v3958_v38, %v3957_v33  ;;  %v3797_v56 = vpop.permute.xlu1 %3796  ;;  %v3802_v40 = vpop.permute.xlu0 %3801 }
 0x9b2   : > { %v4064_v27 = vsel %vm1542_vm2, %v3949_v61, %v3942_v32  ;;  %v3955_v15 = vrot.slane %v3954_v2, 1  ;;  %v3965_v34 = vrot.slane %v3964_v0, 4  ;;  %v3914_v28 = vmul.f32 %v7209_v22, %v3797_v56  ;;  %v7217_v61 = vld [vmem:[#allocation48_spill] sm:$0xff] }
 0x9b3   : > { %v3960_v49 = vrot.slane %v3959_v39, 2  ;;  %v3915_v41 = vmul.f32 %v7210_v45, %v3802_v40 }
 0x9b4   : > { %v3956_v30 = vadd.f32 %v3955_v15, %v3954_v2  ;;  %v3966_v63 = vadd.f32 %v3965_v34, %v3964_v0  ;;  %v7218_v0 = vld [vmem:[#allocation51_spill] sm:$0xff] }
 0x9b5   : > { %v3961_v7 = vadd.f32 %v3960_v49, %v3959_v39  ;;  %v3971_v19 = vadd.f32 %v3915_v41, %v3914_v28  ;;  %v3807_v5 = vpop.permute.xlu1 %3806  ;;  %v3812_v62 = vpop.permute.xlu0 %3811 }
 0x9b6   : > { %v4065_v50 = vsel %vm1544_vm3, %v3956_v30, %v4064_v27  ;;  %v3967_v3 = vrot.slane %v3966_v63, 2  ;;  %v3916_v11 = vmul.f32 %v3807_v5, %v7211_v48  ;;  %v3917_v46 = vmul.f32 %v3812_v62, %v7212_v42  ;;  %v7220_v5 = vld [vmem:[#allocation58_spill] sm:$0xff] }
 0x9b7   : > { %v3962_v14 = vrot.slane %v3961_v7, 1  ;;  %v3972_v52 = vrot.slane %v3971_v19, 4 }
 0x9b8   : > { %v3968_v43 = vadd.f32 %v3967_v3, %v3966_v63  ;;  %v3978_v8 = vadd.f32 %v3917_v46, %v3916_v11  ;;  %v7219_v63 = vld [vmem:[#allocation55_spill] sm:$0xff] }
 0x9b9   : > { %v3963_v44 = vadd.f32 %v3962_v14, %v3961_v7  ;;  %v3973_v35 = vadd.f32 %v3972_v52, %v3971_v19  ;;  %v3817_v21 = vpop.permute.xlu1 %3816  ;;  %v3822_v18 = vpop.permute.xlu0 %3821 }
 0x9ba   : > { %v3969_v23 = vrot.slane %v3968_v43, 1  ;;  %v3979_v9 = vrot.slane %v3978_v8, 4  ;;  %v3918_v53 = vmul.f32 %v7213_v55, %v3817_v21  ;;  %v3919_v47 = vmul.f32 %v7214_v60, %v3822_v18  ;;  %v7223_v21 = vld [vmem:[#allocation88_spill] sm:$0xff] }
 0x9bb   : > { %v4066_v17 = vsel %vm1546_vm4, %v3963_v44, %v4065_v50  ;;  %v3974_v36 = vrot.slane %v3973_v35, 2  ;;  %v7222_v44 = vld [vmem:[#allocation57_spill] sm:$0xff] }
 0x9bc   : > { %v3970_v51 = vadd.f32 %v3969_v23, %v3968_v43  ;;  %v3980_v29 = vadd.f32 %v3979_v9, %v3978_v8  ;;  %v3985_v59 = vadd.f32 %v3919_v47, %v3918_v53  ;;  %v7221_v43 = vld [vmem:[#allocation54_spill] sm:$0xff] }
 0x9bd   : > { %v3975_v25 = vadd.f32 %v3974_v36, %v3973_v35  ;;  %v3827_v24 = vpop.permute.xlu1 %3826  ;;  %v3832_v26 = vpop.permute.xlu0 %3831 }
 0x9be   : > { %v4067_v16 = vsel %vm1548_vm5, %v3970_v51, %v4066_v17  ;;  %v3981_v20 = vrot.slane %v3980_v29, 2  ;;  %v3986_v1 = vrot.slane %v3985_v59, 4  ;;  %v3920_v4 = vmul.f32 %v3827_v24, %v7215_v10 }
 0x9bf   : > { %v3976_v33 = vrot.slane %v3975_v25, 1  ;;  %v3921_v6 = vmul.f32 %v3832_v26, %v7216_v13 }
 0x9c0   : > { %v3982_v31 = vadd.f32 %v3981_v20, %v3980_v29  ;;  %v3987_v57 = vadd.f32 %v3986_v1, %v3985_v59  ;;  %v7224_v29 = vld [vmem:[#allocation61_spill] sm:$0xff] }
 0x9c1   : > { %v3977_v12 = vadd.f32 %v3976_v33, %v3975_v25  ;;  %v3992_v58 = vadd.f32 %v3921_v6, %v3920_v4  ;;  %v3837_v37 = vpop.permute.xlu1 %3836  ;;  %v3842_v54 = vpop.permute.xlu0 %3841  ;;  %v7225_v25 = vld [vmem:[#allocation64_spill] sm:$0xff] }
 0x9c2   : > { %v3983_v38 = vrot.slane %v3982_v31, 1  ;;  %v3988_v32 = vrot.slane %v3987_v57, 2  ;;  %v3922_v2 = vmul.f32 %v7217_v61, %v3837_v37  ;;  %v3923_v39 = vmul.f32 %v7218_v0, %v3842_v54  ;;  %v7227_v54 = vld [vmem:[#allocation63_spill] sm:$0xff] }
 0x9c3   : > { %v4068_v56 = vsel %vm1550_vm6, %v3977_v12, %v4067_v16  ;;  %v3993_v40 = vrot.slane %v3992_v58, 4  ;;  %v7226_v12 = vld [vmem:[#allocation60_spill] sm:$0xff] }
 0x9c4   : > { %v3984_v27 = vadd.f32 %v3983_v38, %v3982_v31  ;;  %v3989_v15 = vadd.f32 %v3988_v32, %v3987_v57  ;;  %v3999_v34 = vadd.f32 %v3923_v39, %v3922_v2 }
 0x9c5   : > { %v3994_v22 = vadd.f32 %v3993_v40, %v3992_v58  ;;  %v3847_v28 = vpop.permute.xlu1 %3846  ;;  %v3852_v49 = vpop.permute.xlu0 %3851 }
 0x9c6   : > { %v4069_v45 = vsel %vm1552_vm7, %v3984_v27, %v4068_v56  ;;  %v3990_v41 = vrot.slane %v3989_v15, 1  ;;  %v4000_v30 = vrot.slane %v3999_v34, 4  ;;  %v3924_v7 = vmul.f32 %v3847_v28, %v7219_v63 }
 0x9c7   : > { %v3995_v19 = vrot.slane %v3994_v22, 2  ;;  %v3925_v62 = vmul.f32 %v3852_v49, %v7220_v5 }
 0x9c8   : > { %v3991_v50 = vadd.f32 %v3990_v41, %v3989_v15  ;;  %v4001_v3 = vadd.f32 %v4000_v30, %v3999_v34  ;;  %v7228_v15 = vld [vmem:[#allocation67_spill] sm:$0xff] }
 0x9c9   : > { %v3996_v48 = vadd.f32 %v3995_v19, %v3994_v22  ;;  %v4006_v11 = vadd.f32 %v3925_v62, %v3924_v7  ;;  %v3857_v42 = vpop.permute.xlu1 %3856  ;;  %v3862_v46 = vpop.permute.xlu0 %3861  ;;  %v7229_v22 = vld [vmem:[#allocation70_spill] sm:$0xff] }
 0x9ca   : > { %v4070_v14 = vsel %vm1554_vm8, %v3991_v50, %v4069_v45  ;;  %v4002_v52 = vrot.slane %v4001_v3, 2  ;;  %v3926_v8 = vmul.f32 %v7221_v43, %v3857_v42  ;;  %v3927_v35 = vmul.f32 %v7222_v44, %v3862_v46  ;;  %v7231_v46 = vld [vmem:[#allocation69_spill] sm:$0xff] }
 0x9cb   : > { %v4080_v18 = vadd.f32 %v4070_v14, %v7223_v21  ;;  %v4007_v23 = vrot.slane %v4006_v11, 4  ;;  %v3997_v9 = vrot.slane %v3996_v48, 1 }
 0x9cc   : > { %v4003_v55 = vadd.f32 %v4002_v52, %v4001_v3  ;;  %v4013_v53 = vadd.f32 %v3927_v35, %v3926_v8 }
 0x9cd   : > { %v4008_v60 = vadd.f32 %v4007_v23, %v4006_v11  ;;  %v3867_v47 = vpop.permute.xlu1 %3866  ;;  %v3872_v17 = vpop.permute.xlu0 %3871  ;;  %4082 = vst [vmem:[%s6901_s19] sm:$0xff] %v4080_v18  ;;  %v3998_v16 = vadd.f32 %v3997_v9, %v3996_v48  ;;  %v7230_v48 = vld [vmem:[#allocation66_spill] sm:$0xff] }
 0x9ce   : > { %v4004_v36 = vrot.slane %v4003_v55, 1  ;;  %v4014_v51 = vrot.slane %v4013_v53, 4  ;;  %v3928_v59 = vmul.f32 %v3867_v47, %v7224_v29  ;;  %v3929_v24 = vmul.f32 %v3872_v17, %v7225_v25 }
 0x9cf   : > { %v4009_v26 = vrot.slane %v4008_v60, 2 }
 0x9d0   : > { %v4005_v20 = vadd.f32 %v4004_v36, %v4003_v55  ;;  %v4015_v1 = vadd.f32 %v4014_v51, %v4013_v53  ;;  %v4020_v10 = vadd.f32 %v3929_v24, %v3928_v59 }
 0x9d1   : > { %v4010_v4 = vadd.f32 %v4009_v26, %v4008_v60  ;;  %v3877_v33 = vpop.permute.xlu1 %3876  ;;  %v3882_v13 = vpop.permute.xlu0 %3881  ;;  %v7232_v26 = vld [vmem:[#allocation87_spill] sm:$0xff] }
 0x9d2   : > { %v4071_v6 = vsel %vm1542_vm2, %v4005_v20, %v3998_v16  ;;  %v4016_v31 = vrot.slane %v4015_v1, 2  ;;  %v4021_v57 = vrot.slane %v4020_v10, 4  ;;  %v3930_v58 = vmul.f32 %v7226_v12, %v3877_v33 }
 0x9d3   : > { %v4011_v37 = vrot.slane %v4010_v4, 1  ;;  %v3931_v38 = vmul.f32 %v7227_v54, %v3882_v13 }
 0x9d4   : > { %v4017_v32 = vadd.f32 %v4016_v31, %v4015_v1  ;;  %v4022_v61 = vadd.f32 %v4021_v57, %v4020_v10 }
 0x9d5   : > { %v4012_v2 = vadd.f32 %v4011_v37, %v4010_v4  ;;  %v4027_v0 = vadd.f32 %v3931_v38, %v3930_v58  ;;  %v3887_v39 = vpop.permute.xlu1 %3886  ;;  %v3892_v56 = vpop.permute.xlu0 %3891 }
 0x9d6   : > { %v4018_v40 = vrot.slane %v4017_v32, 1  ;;  %v4023_v27 = vrot.slane %v4022_v61, 2  ;;  %v3932_v34 = vmul.f32 %v3887_v39, %v7228_v15  ;;  %v3933_v28 = vmul.f32 %v3892_v56, %v7229_v22 }
 0x9d7   : > { %v4072_v49 = vsel %vm1544_vm3, %v4012_v2, %v4071_v6  ;;  %v4028_v45 = vrot.slane %v4027_v0, 4 }
 0x9d8   : > { %v4019_v41 = vadd.f32 %v4018_v40, %v4017_v32  ;;  %v4024_v30 = vadd.f32 %v4023_v27, %v4022_v61  ;;  %v4034_v63 = vadd.f32 %v3933_v28, %v3932_v34 }
 0x9d9   : > { %v4029_v7 = vadd.f32 %v4028_v45, %v4027_v0  ;;  %v3897_v19 = vpop.permute.xlu1 %3896  ;;  %v3902_v5 = vpop.permute.xlu0 %3901 }
 0x9da   : > { %v4073_v62 = vsel %vm1546_vm4, %v4019_v41, %v4072_v49  ;;  %v4025_v50 = vrot.slane %v4024_v30, 1  ;;  %v4035_v3 = vrot.slane %v4034_v63, 4  ;;  %v3934_v11 = vmul.f32 %v7230_v48, %v3897_v19 }
 0x9db   : > { %v4030_v42 = vrot.slane %v4029_v7, 2  ;;  %v3935_v14 = vmul.f32 %v7231_v46, %v3902_v5 }
 0x9dc   : > { %v4026_v52 = vadd.f32 %v4025_v50, %v4024_v30  ;;  %v4036_v43 = vadd.f32 %v4035_v3, %v4034_v63 }
 0x9dd   : > { %v4031_v8 = vadd.f32 %v4030_v42, %v4029_v7  ;;  %v4041_v44 = vadd.f32 %v3935_v14, %v3934_v11 }
 0x9de   : > { %v4074_v35 = vsel %vm1548_vm5, %v4026_v52, %v4073_v62  ;;  %v4037_v21 = vrot.slane %v4036_v43, 2 }
 0x9df   : > { %v4032_v18 = vrot.slane %v4031_v8, 1  ;;  %v4042_v23 = vrot.slane %v4041_v44, 4 }
 0x9e0   : > { %v4038_v9 = vadd.f32 %v4037_v21, %v4036_v43 }
 0x9e1   : > { %v4033_v55 = vadd.f32 %v4032_v18, %v4031_v8  ;;  %v4043_v53 = vadd.f32 %v4042_v23, %v4041_v44 }
 0x9e2   : > { %v4039_v60 = vrot.slane %v4038_v9, 1 }
 0x9e3   : > { %v4075_v47 = vsel %vm1550_vm6, %v4033_v55, %v4074_v35  ;;  %v4044_v17 = vrot.slane %v4043_v53, 2 }
 0x9e4   : > { %v4040_v36 = vadd.f32 %v4039_v60, %v4038_v9 }
 0x9e5   : > { %v4045_v51 = vadd.f32 %v4044_v17, %v4043_v53 }
 0x9e6   : > { %v4076_v29 = vsel %vm1552_vm7, %v4040_v36, %v4075_v47 }
 0x9e7   : > { %v4046_v59 = vrot.slane %v4045_v51, 1 }
 0x9e9   : > { %v4047_v25 = vadd.f32 %v4046_v59, %v4045_v51 }
 0x9eb   : > { %v4077_v24 = vsel %vm1554_vm8, %v4047_v25, %v4076_v29 }
 0x9ec   : > { %v4081_v16 = vadd.f32 %v4077_v24, %v7232_v26 }
 0x9ee   : > { %4083 = vst [vmem:[%s6901_s19 + $0x8] sm:$0xff] %v4081_v16 }
 0x9ef   : > { %4931 = shalt.err (!%p4928_p3)
}
 0x9f0   : > { %s4932_s15 = scalar_lea.hbm %s6924_s21, 256  ;;  %s4936_s18 = scalar_lea.hbm %s6981_s9, 512 }
 0x9f1   : > { %p4933_p9 = scmp.ne.s32.totalorder %s6924_s21, %s4932_s15  ;;  %p4937_p7 = scmp.lt.u32.totalorder %s6924_s21, %s6981_s9 }
 0x9f2   : > { %p4938_p12 = scmp.lt.u32.totalorder %s4936_s18, %s4932_s15  ;;  %p4940_p1 = scmp.lt.u32.totalorder %s4932_s15, %s6924_s21 }
 0x9f3   : > { %p4934_p13 = pnand %p4933_p9, %p5211_p5 }
 0x9f4   : > { %p4939_p2 = por %p4938_p12, %p4937_p7 }
 0x9f5   : > { %p4935_p11 = pneg %p4934_p13 }
 0x9f6   : > { %p4941_p4 = por %p4940_p1, %p4939_p2 }
 0x9f8   : > { %p4942_p0 = pnand %p4941_p4, %p4935_p11 }
 0x9fa   : > { %4945 = shalt.err (!%p4942_p0)
}
 0x9fb   : > { %s5014_s2 = smov 128   ;;  %s5015_s3 = smov 8  }
 0x9fc   : > { %4408 = dma.vmem_to_hbm [thread:$0]  (%p5211_p5), %s6926_s25, 256, %s6924_s21, %s4085_s0, %s5014_s2, %s5014_s2, %s5015_s3  }
 0x9fd PF: > { %s7233_s19 = sld [smem:[#allocation17_spill]]  ;;  %s7234_s26 = sld [smem:[#allocation18_spill]] }
 0x9fe   : > { %p7236_p6 = scmp.ge.s32.totalorder %s4996_s12, 2 }
 0xa03   : > { %s4113_s22 = sand.u32 1, %s7233_s19   ;;  %p7235_p8 = scmp.ne.s32.totalorder %s7234_s26, 0 }
 0xa04   : > { %s4114_s14 = scalar_lea.sflag [#allocation4], %s4113_s22 }
 0xa05   : > { %p4428_p10 = pnand %p7236_p6, %p7235_p8 }
 0xa07   : > { %4979 = dma.done.wait (!%p4428_p10), %s4114_s14, 256  }
 0xa08   : > { %4981 = vsyncadd (!%p4428_p10), %s4114_s14, 4294967040  ;;  %s7237_s6 = sld [smem:[#allocation19_spill]]  ;;  %p26_p3 = scmp.ge.s32.totalorder %s5197_s24, 4  }
 0xa09   : > { %s7238_s30 = smov %s4988_s10  ;;  %s7239_s10 = smov %s4992_s11 }
 0xa0a   : > { %s7241_s12 = smov %s5197_s24  ;;  %28 = sbr.rel (!%p26_p3) target bundleno = 13 (0xd), region = 126 }
 0xa0e   : > { %s7240_s11 = smov %s7237_s6 }
 0xa11   :  { %4119 = vsyncpa [#allocation3], 1 }
 0xa12   :  { %4121 = vsyncpa [#allocation3 + $0x1], 1 }
 0xa13   :  { %4122 = vsyncpa [#allocation6], 1 }
 0xa14   :  { %4124 = vsyncpa [#allocation6 + $0x1], 1 }
 0xa15   :  { %4125 = vsyncpa [#allocation9], 1 }
 0xa16   :  { %4126 = vsyncpa [#allocation4], 1 }
 0xa17   :  { %4128 = vsyncpa [#allocation4 + $0x1], 1 }

</bundles_post_ra>
